<compile_context>
chip_gen: v5e
topology: v5e:2x2
jax: 0.10.0
libtpu: 0.0.40
codegen_flags: <defaults>
</compile_context>

<pallas_src>
import functools

import jax
import jax.numpy as jnp
from jax.experimental import pallas as pl
from jax.experimental.pallas import tpu as pltpu


def _round_up(x, m):
    return ((x + m - 1) // m) * m


def actor_cql_kernel(x_ref,
                     w1_ref, b1_ref,
                     w2_ref, b2_ref,
                     w3_ref, b3_ref,
                     wh_ref, bh_ref,
                     out_ref,
                     *, action_size, log_std_min, log_std_max):
    """Fused 3x(Linear+ReLU) trunk + single lane-dense [mu | log_std] head."""
    cdt = w1_ref.dtype  # compute dtype for MXU inputs (f32 or bf16)

    x = x_ref[...].astype(cdt)

    h = jnp.dot(x, w1_ref[...], preferred_element_type=jnp.float32) + b1_ref[...]
    h = jnp.maximum(h, 0.0)

    h = jnp.dot(h.astype(cdt), w2_ref[...],
                preferred_element_type=jnp.float32) + b2_ref[...]
    h = jnp.maximum(h, 0.0)

    h = jnp.dot(h.astype(cdt), w3_ref[...],
                preferred_element_type=jnp.float32) + b3_ref[...]
    h = jnp.maximum(h, 0.0)

    # One fused head matmul: columns [0, act) = mu, [act, 2*act) = log_std,
    # remaining columns are zero padding (discarded by the wrapper slice).
    head = jnp.dot(h.astype(cdt), wh_ref[...],
                   preferred_element_type=jnp.float32) + bh_ref[...]

    col = jax.lax.broadcasted_iota(jnp.int32, head.shape, dimension=1)
    is_log_std = (col >= action_size) & (col < 2 * action_size)
    head = jnp.where(is_log_std,
                     jnp.clip(head, log_std_min, log_std_max),
                     head)

    out_ref[...] = head.astype(out_ref.dtype)  # single unmasked lane-dense store


def actor_cql_forward(state, params, *,
                      log_std_min=-20.0, log_std_max=2.0,
                      block_b=256, compute_dtype=jnp.float32):
    """Batched-grid Pallas call: VMEM-resident weights, fused lane-dense head."""
    (w1, b1), (w2, b2), (w3, b3), (wmu, bmu), (wls, bls) = params
    state = state.astype(jnp.float32)

    batch, s_dim = state.shape
    hidden = w1.shape[1]
    hidden2 = w2.shape[1]
    act = wmu.shape[1]

    # ---- Fused head weights: [wmu | wls | 0-pad] -> lane-dense width (>=128).
    head_w = max(128, _round_up(2 * act, 128))
    wh = jnp.zeros((hidden, head_w), jnp.float32)
    wh = wh.at[:, :act].set(wmu).at[:, act:2 * act].set(wls)
    bh = jnp.zeros((1, head_w), jnp.float32)
    bh = bh.at[:, :act].set(bmu.reshape(1, -1)).at[:, act:2 * act].set(
        bls.reshape(1, -1))

    # Weights feed the MXU in compute_dtype; biases stay f32 (added post-acc).
    w1c = w1.astype(compute_dtype)
    w2c = w2.astype(compute_dtype)
    w3c = w3.astype(compute_dtype)
    whc = wh.astype(compute_dtype)
    b1c = b1.reshape(1, -1).astype(jnp.float32)
    b2c = b2.reshape(1, -1).astype(jnp.float32)
    b3c = b3.reshape(1, -1).astype(jnp.float32)
    bhc = bh.astype(jnp.float32)

    # ---- Batch tiling: multiple of 8 sublanes, capped at block_b.
    tb = min(block_b, _round_up(batch, 8))
    batch_p = _round_up(batch, tb)
    if batch_p != batch:
        state = jnp.pad(state, ((0, batch_p - batch), (0, 0)))
    grid = (batch_p // tb,)

    def resident(shape):
        # Constant block index -> fetched once, stays in VMEM for all steps.
        return pl.BlockSpec(shape, lambda i: (0, 0))

    kernel = functools.partial(actor_cql_kernel,
                               action_size=int(act),
                               log_std_min=float(log_std_min),
                               log_std_max=float(log_std_max))

    flops = 2 * batch_p * (s_dim * hidden + hidden * hidden2
                           + hidden2 * hidden + hidden * head_w)
    weight_bytes = sum(int(a.size) * a.dtype.itemsize
                       for a in (w1c, b1c, w2c, b2c, w3c, b3c, whc, bhc))
    bytes_accessed = (int(state.size) * state.dtype.itemsize
                      + weight_bytes + batch_p * head_w * 4)
    cost = pl.CostEstimate(flops=flops, transcendentals=0,
                           bytes_accessed=bytes_accessed)

    out = pl.pallas_call(
        kernel,
        out_shape=jax.ShapeDtypeStruct((batch_p, head_w), jnp.float32),
        grid=grid,
        in_specs=[
            pl.BlockSpec((tb, s_dim), lambda i: (i, 0)),   # state tile varies
            resident((s_dim, hidden)),  resident((1, hidden)),
            resident((hidden, hidden2)), resident((1, hidden2)),
            resident((hidden2, hidden)), resident((1, hidden)),
            resident((hidden, head_w)),  resident((1, head_w)),
        ],
        out_specs=pl.BlockSpec((tb, head_w), lambda i: (i, 0)),
        compiler_params=pltpu.CompilerParams(
            dimension_semantics=("parallel",)),
        cost_estimate=cost,
    )(state, w1c, b1c, w2c, b2c, w3c, b3c, whc, bhc)

    mu = out[:batch, :act]
    log_std = out[:batch, act:2 * act]
    return mu, log_std


def init_params(key, state_size, action_size, hidden_size, hidden_size2):
    """Deterministic init (PyTorch nn.Linear default: U(-1/sqrt(fan_in), ...)).

    Weights are stored transposed as (in_features, out_features) for the kernel.
    """
    def layer(key, fan_in, fan_out):
        kw, kb = jax.random.split(key)
        lim = 1.0 / (fan_in ** 0.5)
        w = jax.random.uniform(kw, (fan_in, fan_out), jnp.float32, -lim, lim)
        b = jax.random.uniform(kb, (1, fan_out), jnp.float32, -lim, lim)
        return w, b

    k1, k2, k3, k4, k5 = jax.random.split(key, 5)
    p1 = layer(k1, state_size, hidden_size)
    p2 = layer(k2, hidden_size, hidden_size2)
    p3 = layer(k3, hidden_size2, hidden_size)
    p_mu = layer(k4, hidden_size, action_size)
    p_ls = layer(k5, hidden_size, action_size)
    return (p1, p2, p3, p_mu, p_ls)


def reference_forward(state, params, log_std_min=-20.0, log_std_max=2.0):
    """Pure-JAX f32 reference for correctness checking."""
    (w1, b1), (w2, b2), (w3, b3), (wmu, bmu), (wls, bls) = params
    x = jnp.maximum(state @ w1 + b1, 0.0)
    x = jnp.maximum(x @ w2 + b2, 0.0)
    x = jnp.maximum(x @ w3 + b3, 0.0)
    mu = x @ wmu + bmu
    log_std = jnp.clip(x @ wls + bls, log_std_min, log_std_max)
    return mu, log_std


if __name__ == "__main__":
    # Module-default hidden widths (256/512 -> lane-dense); batch chosen so
    # the grid has an even number of steps (tb=256 -> 2 steps; good for v7x's
    # two TensorCores on the "parallel" batch axis).
    batch = 512
    state_size = 16
    action_size = 4
    hidden_size = 256
    hidden_size2 = 512

    key = jax.random.PRNGKey(0)
    k_params, k_state = jax.random.split(key)

    params = init_params(k_params, state_size, action_size,
                         hidden_size, hidden_size2)
    state = jax.random.normal(k_state, (batch, state_size), jnp.float32)

    mu_ref, log_std_ref = reference_forward(state, params)

    # --- f32 path (tight tolerance against the f32 reference) ---
    mu, log_std = actor_cql_forward(state, params)
    mu = jax.block_until_ready(mu)
    log_std = jax.block_until_ready(log_std)

    assert mu.shape == (batch, action_size), mu.shape
    assert log_std.shape == (batch, action_size), log_std.shape
    assert jnp.all(log_std >= -20.0) and jnp.all(log_std <= 2.0)
    assert jnp.allclose(mu, mu_ref, atol=1e-3, rtol=1e-3), \
        float(jnp.max(jnp.abs(mu - mu_ref)))
    assert jnp.allclose(log_std, log_std_ref, atol=1e-3, rtol=1e-3), \
        float(jnp.max(jnp.abs(log_std - log_std_ref)))

    # --- bf16 MXU path (v5e/v6e/v7x native), f32 accumulation/elementwise ---
    mu_bf, log_std_bf = actor_cql_forward(state, params,
                                          compute_dtype=jnp.bfloat16)
    mu_bf = jax.block_until_ready(mu_bf)
    log_std_bf = jax.block_until_ready(log_std_bf)

    assert jnp.all(log_std_bf >= -20.0) and jnp.all(log_std_bf <= 2.0)
    assert jnp.allclose(mu_bf, mu_ref, atol=5e-2, rtol=5e-2), \
        float(jnp.max(jnp.abs(mu_bf - mu_ref)))
    assert jnp.allclose(log_std_bf, log_std_ref, atol=5e-2, rtol=5e-2), \
        float(jnp.max(jnp.abs(log_std_bf - log_std_ref)))

    # TODO(synk): evaluate()/select_action() sampling (Normal.rsample, tanh
    # squash, log_prob) is left to plain JAX; only forward() is the hot kernel.
    print("KERNEL_OK")
</pallas_src>

<mosaic_0001>
module attributes {stable_mosaic.version = 11 : i64} {
  func.func @actor_cql_kernel(%arg0: i32, %arg1: memref<256x16xf32, #tpu.memory_space<vmem>>, %arg2: memref<16x256xf32, #tpu.memory_space<vmem>>, %arg3: memref<1x256xf32, #tpu.memory_space<vmem>>, %arg4: memref<256x512xf32, #tpu.memory_space<vmem>>, %arg5: memref<1x512xf32, #tpu.memory_space<vmem>>, %arg6: memref<512x256xf32, #tpu.memory_space<vmem>>, %arg7: memref<1x256xf32, #tpu.memory_space<vmem>>, %arg8: memref<256x128xf32, #tpu.memory_space<vmem>>, %arg9: memref<1x128xf32, #tpu.memory_space<vmem>>, %arg10: memref<256x128xf32, #tpu.memory_space<vmem>>) attributes {dimension_semantics = [#tpu.dimension_semantics<parallel>], iteration_bounds = array<i64: 2>, scalar_prefetch = 0 : i64, scratch_operands = 0 : i64, tpu.core_type = #tpu.core_type<tc>, window_params = [{transform_indices = @transform_0, window_bounds = array<i64: 256, 16>}, {pipeline_mode = #tpu.pipeline_mode<synchronous>, transform_indices = @transform_1, window_bounds = array<i64: 16, 256>}, {pipeline_mode = #tpu.pipeline_mode<synchronous>, transform_indices = @transform_2, window_bounds = array<i64: 1, 256>}, {pipeline_mode = #tpu.pipeline_mode<synchronous>, transform_indices = @transform_3, window_bounds = array<i64: 256, 512>}, {pipeline_mode = #tpu.pipeline_mode<synchronous>, transform_indices = @transform_4, window_bounds = array<i64: 1, 512>}, {pipeline_mode = #tpu.pipeline_mode<synchronous>, transform_indices = @transform_5, window_bounds = array<i64: 512, 256>}, {pipeline_mode = #tpu.pipeline_mode<synchronous>, transform_indices = @transform_6, window_bounds = array<i64: 1, 256>}, {pipeline_mode = #tpu.pipeline_mode<synchronous>, transform_indices = @transform_7, window_bounds = array<i64: 256, 128>}, {pipeline_mode = #tpu.pipeline_mode<synchronous>, transform_indices = @transform_8, window_bounds = array<i64: 1, 128>}, {transform_indices = @transform_9, window_bounds = array<i64: 256, 128>}]} {
    %c0 = arith.constant 0 : index
    %c0_0 = arith.constant 0 : index
    %0 = vector.load %arg1[%c0, %c0_0] : memref<256x16xf32, #tpu.memory_space<vmem>>, vector<256x16xf32>
    %c0_1 = arith.constant 0 : index
    %c0_2 = arith.constant 0 : index
    %1 = vector.load %arg2[%c0_1, %c0_2] : memref<16x256xf32, #tpu.memory_space<vmem>>, vector<16x256xf32>
    %cst = arith.constant dense<0.000000e+00> : vector<256x256xf32>
    %2 = tpu.matmul %0, %1, %cst {dimension_numbers = #tpu.dot_dimension_numbers<[1], [0], [0], [1], [0, 0, 1, 1], [], []>} : vector<256x16xf32>, vector<16x256xf32>, vector<256x256xf32> -> vector<256x256xf32>
    %c0_3 = arith.constant 0 : index
    %c0_4 = arith.constant 0 : index
    %3 = vector.load %arg3[%c0_3, %c0_4] : memref<1x256xf32, #tpu.memory_space<vmem>>, vector<1x256xf32>
    %4 = vector.broadcast %3 : vector<1x256xf32> to vector<256x256xf32>
    %5 = arith.addf %2, %4 : vector<256x256xf32>
    %cst_5 = arith.constant 0.000000e+00 : f32
    %6 = vector.broadcast %cst_5 : f32 to vector<256x256xf32>
    %7 = arith.maximumf %5, %6 : vector<256x256xf32>
    %c0_6 = arith.constant 0 : index
    %c0_7 = arith.constant 0 : index
    %8 = vector.load %arg4[%c0_6, %c0_7] : memref<256x512xf32, #tpu.memory_space<vmem>>, vector<256x512xf32>
    %cst_8 = arith.constant dense<0.000000e+00> : vector<256x512xf32>
    %9 = tpu.matmul %7, %8, %cst_8 {dimension_numbers = #tpu.dot_dimension_numbers<[1], [0], [0], [1], [0, 0, 1, 1], [], []>} : vector<256x256xf32>, vector<256x512xf32>, vector<256x512xf32> -> vector<256x512xf32>
    %c0_9 = arith.constant 0 : index
    %c0_10 = arith.constant 0 : index
    %10 = vector.load %arg5[%c0_9, %c0_10] : memref<1x512xf32, #tpu.memory_space<vmem>>, vector<1x512xf32>
    %11 = vector.broadcast %10 : vector<1x512xf32> to vector<256x512xf32>
    %12 = arith.addf %9, %11 : vector<256x512xf32>
    %cst_11 = arith.constant 0.000000e+00 : f32
    %13 = vector.broadcast %cst_11 : f32 to vector<256x512xf32>
    %14 = arith.maximumf %12, %13 : vector<256x512xf32>
    %c0_12 = arith.constant 0 : index
    %c0_13 = arith.constant 0 : index
    %15 = vector.load %arg6[%c0_12, %c0_13] : memref<512x256xf32, #tpu.memory_space<vmem>>, vector<512x256xf32>
    %cst_14 = arith.constant dense<0.000000e+00> : vector<256x256xf32>
    %16 = tpu.matmul %14, %15, %cst_14 {dimension_numbers = #tpu.dot_dimension_numbers<[1], [0], [0], [1], [0, 0, 1, 1], [], []>} : vector<256x512xf32>, vector<512x256xf32>, vector<256x256xf32> -> vector<256x256xf32>
    %c0_15 = arith.constant 0 : index
    %c0_16 = arith.constant 0 : index
    %17 = vector.load %arg7[%c0_15, %c0_16] : memref<1x256xf32, #tpu.memory_space<vmem>>, vector<1x256xf32>
    %18 = vector.broadcast %17 : vector<1x256xf32> to vector<256x256xf32>
    %19 = arith.addf %16, %18 : vector<256x256xf32>
    %cst_17 = arith.constant 0.000000e+00 : f32
    %20 = vector.broadcast %cst_17 : f32 to vector<256x256xf32>
    %21 = arith.maximumf %19, %20 : vector<256x256xf32>
    %c0_18 = arith.constant 0 : index
    %c0_19 = arith.constant 0 : index
    %22 = vector.load %arg8[%c0_18, %c0_19] : memref<256x128xf32, #tpu.memory_space<vmem>>, vector<256x128xf32>
    %cst_20 = arith.constant dense<0.000000e+00> : vector<256x128xf32>
    %23 = tpu.matmul %21, %22, %cst_20 {dimension_numbers = #tpu.dot_dimension_numbers<[1], [0], [0], [1], [0, 0, 1, 1], [], []>} : vector<256x256xf32>, vector<256x128xf32>, vector<256x128xf32> -> vector<256x128xf32>
    %c0_21 = arith.constant 0 : index
    %c0_22 = arith.constant 0 : index
    %24 = vector.load %arg9[%c0_21, %c0_22] : memref<1x128xf32, #tpu.memory_space<vmem>>, vector<1x128xf32>
    %25 = vector.broadcast %24 : vector<1x128xf32> to vector<256x128xf32>
    %26 = arith.addf %23, %25 : vector<256x128xf32>
    %27 = tpu.iota {dimensions = array<i32: 1>} : vector<256x128xi32>
    %c4_i32 = arith.constant 4 : i32
    %28 = vector.broadcast %c4_i32 : i32 to vector<256x128xi32>
    %29 = arith.cmpi sge, %27, %28 : vector<256x128xi32>
    %c8_i32 = arith.constant 8 : i32
    %30 = vector.broadcast %c8_i32 : i32 to vector<256x128xi32>
    %31 = arith.cmpi slt, %27, %30 : vector<256x128xi32>
    %32 = arith.andi %29, %31 : vector<256x128xi1>
    %cst_23 = arith.constant -2.000000e+01 : f32
    %cst_24 = arith.constant 2.000000e+00 : f32
    %33 = vector.broadcast %cst_23 : f32 to vector<256x128xf32>
    %34 = arith.maximumf %33, %26 : vector<256x128xf32>
    %35 = vector.broadcast %cst_24 : f32 to vector<256x128xf32>
    %36 = arith.minimumf %35, %34 : vector<256x128xf32>
    %37 = arith.select %32, %36, %26 : vector<256x128xi1>, vector<256x128xf32>
    %c0_25 = arith.constant 0 : index
    %c0_26 = arith.constant 0 : index
    %38 = vector.load %arg10[%c0_25, %c0_26] : memref<256x128xf32, #tpu.memory_space<vmem>>, vector<256x128xf32>
    tpu.vector_store %arg10[%c0_25, %c0_26], %37 {strides = array<i32>} : memref<256x128xf32, #tpu.memory_space<vmem>>, vector<256x128xf32>,
    return
  }
  func.func @transform_0(%arg0: i32) -> (i32, i32) {
    %c0_i32 = arith.constant 0 : i32
    %c0_i32_0 = arith.constant 0 : i32
    return %arg0, %c0_i32 : i32, i32
  }
  func.func @transform_1(%arg0: i32) -> (i32, i32) {
    %c0_i32 = arith.constant 0 : i32
    %c0_i32_0 = arith.constant 0 : i32
    %c0_i32_1 = arith.constant 0 : i32
    return %c0_i32, %c0_i32_0 : i32, i32
  }
  func.func @transform_2(%arg0: i32) -> (i32, i32) {
    %c0_i32 = arith.constant 0 : i32
    %c0_i32_0 = arith.constant 0 : i32
    %c0_i32_1 = arith.constant 0 : i32
    return %c0_i32, %c0_i32_0 : i32, i32
  }
  func.func @transform_3(%arg0: i32) -> (i32, i32) {
    %c0_i32 = arith.constant 0 : i32
    %c0_i32_0 = arith.constant 0 : i32
    %c0_i32_1 = arith.constant 0 : i32
    return %c0_i32, %c0_i32_0 : i32, i32
  }
  func.func @transform_4(%arg0: i32) -> (i32, i32) {
    %c0_i32 = arith.constant 0 : i32
    %c0_i32_0 = arith.constant 0 : i32
    %c0_i32_1 = arith.constant 0 : i32
    return %c0_i32, %c0_i32_0 : i32, i32
  }
  func.func @transform_5(%arg0: i32) -> (i32, i32) {
    %c0_i32 = arith.constant 0 : i32
    %c0_i32_0 = arith.constant 0 : i32
    %c0_i32_1 = arith.constant 0 : i32
    return %c0_i32, %c0_i32_0 : i32, i32
  }
  func.func @transform_6(%arg0: i32) -> (i32, i32) {
    %c0_i32 = arith.constant 0 : i32
    %c0_i32_0 = arith.constant 0 : i32
    %c0_i32_1 = arith.constant 0 : i32
    return %c0_i32, %c0_i32_0 : i32, i32
  }
  func.func @transform_7(%arg0: i32) -> (i32, i32) {
    %c0_i32 = arith.constant 0 : i32
    %c0_i32_0 = arith.constant 0 : i32
    %c0_i32_1 = arith.constant 0 : i32
    return %c0_i32, %c0_i32_0 : i32, i32
  }
  func.func @transform_8(%arg0: i32) -> (i32, i32) {
    %c0_i32 = arith.constant 0 : i32
    %c0_i32_0 = arith.constant 0 : i32
    %c0_i32_1 = arith.constant 0 : i32
    return %c0_i32, %c0_i32_0 : i32, i32
  }
  func.func @transform_9(%arg0: i32) -> (i32, i32) {
    %c0_i32 = arith.constant 0 : i32
    %c0_i32_0 = arith.constant 0 : i32
    return %arg0, %c0_i32 : i32, i32
  }
}

</mosaic_0001>

<bundles_post_ra>
// kernel: tpu_custom_call.1
= control target key start
LH: loop header
LB: loop body
LE: loop exit
PB: predicated region body
PF: predicated region fallthrough
CT: control target
= control target key end

     0   :  { %s6770_s0 = inlined_call_operand.vmem [shape: f32[512,16], index: 0, kind: input, shape index: {}]   ;;  %s6771_s1 = inlined_call_operand.vmem [shape: f32[16,256], index: 1, kind: input, shape index: {}]   ;;  %s6772_s2 = inlined_call_operand.vmem [shape: f32[1,256], index: 2, kind: input, shape index: {}]   ;;  %s6773_s3 = inlined_call_operand.hbm [shape: f32[256,512], index: 3, kind: input, shape index: {}]   ;;  %s6774_s4 = inlined_call_operand.vmem [shape: f32[1,512], index: 4, kind: input, shape index: {}]   ;;  %s6775_s5 = inlined_call_operand.hbm [shape: f32[512,256], index: 5, kind: input, shape index: {}]   ;;  %s6776_s6 = inlined_call_operand.vmem [shape: f32[1,256], index: 6, kind: input, shape index: {}]   ;;  %s6777_s7 = inlined_call_operand.vmem [shape: f32[256,128], index: 7, kind: input, shape index: {}]   ;;  %s6778_s8 = inlined_call_operand.vmem [shape: f32[1,128], index: 8, kind: input, shape index: {}]   ;;  %s6779_s9 = inlined_call_operand.hbm [shape: f32[512,128], index: 9, kind: output, shape index: {}]  }
   0x1   :  { %7130 = sst [smem:[#allocation128_spill]] %s6773_s3 }
   0x2   :  { %14 = vsyncpa [#allocation3], 0 }
   0x3   :  { %15 = vsyncpa [#allocation6], 0 }
   0x4   :  { %16 = vsyncpa [#allocation4], 0 }
   0x5   :  { %18 = vsyncpa [#allocation4 + $0x1], 0  ;;  %s3936_s30 = smov 0   ;;  %s3938_s10 = smov 0  }
   0x6   :  { %s3940_s11 = smov 0   ;;  %s3942_s12 = smov 0  }
   0x7 LB: > { %s3957_s13 = sadd.s32 4294967295, %s3876_s12   ;;  %s3564_s14 = sadd.s32 4294967294, %s3876_s12   ;;  %s3876_s12 = sphi %s3942_s12, %s7769_s12   ;;  %s3872_s11 = sphi %s3940_s11, %s7768_s11   ;;  %s3868_s10 = sphi %s3938_s10, %s7767_s10   ;;  %s3864_s30 = sphi %s3936_s30, %s7766_s30  }
   0x8   : > { %s3961_s15 = sadd.s32 1, %s3876_s12   ;;  %s225_s16 = sadd.s32 1, %s3872_s11 }
   0x9   : > { %s222_s17 = ssub.s32 %s3876_s12, %s3961_s15  ;;  %p235_p0 = scmp.ne.s32.totalorder %s3872_s11, %s3868_s10 }
   0xa   : > { %p223_p1 = scmp.eq.s32.totalorder %s222_s17, 0  ;;  %p236_p2 = scmp.eq.s32.totalorder %s3957_s13, 1 }
   0xb   : > { %p241_p3 = scmp.ne.s32.totalorder %s3868_s10, %s3864_s30  ;;  %p242_p4 = scmp.eq.s32.totalorder %s3564_s14, 1 }
   0xc   : > { %s3972_s18 = scalar_select %p223_p1, %s3872_s11, %s225_s16  }
   0xd   : > { %p3974_p5 = por %p236_p2, %p235_p0  ;;  %p3978_p6 = por %p242_p4, %p241_p3 }
   0xe   : > { %p3565_p7 = scmp.ge.s32.totalorder %s3876_s12, 1  ;;  %p249_p8 = scmp.lt.s32.totalorder %s3876_s12, 3 }
   0xf   : > { %p3698_p9 = scmp.eq.s32.totalorder %s3957_s13, 0  ;;  %s7134_s3 = sld [smem:[#allocation128_spill]] }
  0x10   : > { %p3985_p10 = pnand %p3565_p7, %p249_p8  ;;  %s3878_s25 = smov [#allocation2]  }
  0x11   : > { %s268_s26 = sshll.u32 %s3878_s25, 4  ;;  %s283_s29 = sshll.u32 %s6775_s5, 4  ;;  %s269_s26 = int_to_ptr.vmem [resolvable:$true] %s268_s26  ;;  %s284_s29 = int_to_ptr.hbm [resolvable:$true] %s283_s29 }
  0x12   : > { %p3687_p11 = pneg %p3985_p10  ;;  %s3879_s14 = smov 512  }
  0x13   : > { %s3880_s16 = smov 32   ;;  %s3881_s17 = smov [#allocation5]  }
  0x14   : > { %p3688_p12 = pnand %p3698_p9, %p3687_p11  ;;  %s285_s22 = sshll.u32 %s3881_s17, 4  ;;  %s286_s22 = int_to_ptr.vmem [resolvable:$true] %s285_s22 }
  0x15   : > { %s266_s24 = sshll.u32 %s7134_s3, 4  ;;  %s3882_s23 = smov 256   ;;  %s267_s24 = int_to_ptr.hbm [resolvable:$true] %s266_s24 }
  0x16   : > { %3690 = dma.hbm_to_vmem [thread:$0]  (!%p3688_p12), %s267_s24, 16384, %s269_s26, [#allocation3], %s3879_s14, %s3879_s14, %s3880_s16  }
  0x17   : > { %s3883_s3 = smov 16   ;;  %319 = sbr.rel (%p3985_p10) target bundleno = 1585 (0x631), region = 56 }
  0x18   : > { %3693 = dma.hbm_to_vmem [thread:$0]  (!%p3688_p12), %s284_s29, 16384, %s286_s22, [#allocation6], %s3882_s23, %s3882_s23, %s3883_s3  }
  0x1c   : > { %3851 = dma.done.wait (%p3698_p9), [#allocation3], 16384  }
  0x1d   : > { %3853 = vsyncadd (%p3698_p9), [#allocation3], 4294950912 }
  0x1e   : > { %3855 = dma.done.wait (%p3698_p9), [#allocation6], 16384  }
  0x1f   : > { %3857 = vsyncadd (%p3698_p9), [#allocation6], 4294950912  ;;  %s3573_s24 = sshll.u32 %s3957_s13, 5  ;;  %v402_v0 = vld [vmem:[%s6771_s1 + $0x10] sm:$0xff]  ;;  %v403_v1 = vld [vmem:[%s6771_s1 + $0x18] sm:$0xff]  ;;  %vm410_vm0 = vcmask 130048  }
  0x20   : > { %p362_p13 = scmp.lt.s32.totalorder %s3573_s24, 63  ;;  %v400_v2 = vld [vmem:[%s6771_s1] sm:$0xff]  ;;  %521 = vmatpush.msra.mxu0 %v402_v0  ;;  %634 = vmatpush.msra.mxu1 %v403_v1  ;;  %v401_v3 = vld [vmem:[%s6771_s1 + $0x8] sm:$0xff]  ;;  %s358_s22 = sand.u32 1, %s3868_s10  }
  0x21   : > { %v858_v5 = vld [vmem:[#allocation2 + $0x1e8] sm:$0xff]  ;;  %v857_v27 = vld [vmem:[#allocation2 + $0x1e0] sm:$0xff]  ;;  %s3572_s23 = sshll.u32 %s358_s22, 8 }
  0x22   : > { %s7771_s24 = smov (!%p362_p13, %s3573_s24), 63  ;;  %v922_v6 = vld [vmem:[#allocation2 + $0x3e8] sm:$0xff]  ;;  %522 = vmatpush.msra.mxu0 %v400_v2  ;;  %635 = vmatpush.msra.mxu1 %v401_v3  ;;  %v921_v28 = vld [vmem:[#allocation2 + $0x3e0] sm:$0xff] }
  0x23   : > { %s3574_s3 = sshll.u32 %s7771_s24, 3  ;;  %v854_v7 = vld [vmem:[#allocation2 + $0x1c8] sm:$0xff]  ;;  %v853_v29 = vld [vmem:[#allocation2 + $0x1c0] sm:$0xff]  ;;  %935 = vmatpush.msra.mxu2 %v857_v27  ;;  %1048 = vmatpush.msra.mxu3 %v921_v28  ;;  %s6562_s24 = scalar_lea.vmem [#allocation7], %s3572_s23 }
  0x24   : > { %s4013_s26 = scalar_lea.vmem %s6770_s0, %s3574_s3  ;;  %v918_v8 = vld [vmem:[#allocation2 + $0x3c8] sm:$0xff]  ;;  %1161 = vmatpush.msrb.mxu0 %v858_v5  ;;  %1274 = vmatpush.msrb.mxu1 %v922_v6  ;;  %v917_v30 = vld [vmem:[#allocation2 + $0x3c0] sm:$0xff]  ;;  %v923_v5 = vld [vmem:[#allocation2 + $0x3f0] sm:$0xff]  ;;  %s3644_s3 = sshll.u32 %s3957_s13, 8 }
  0x25   : > { %v368_v4 = vld [vmem:[%s4013_s26] sm:$0xff]  ;;  %v850_v9 = vld [vmem:[#allocation2 + $0x1a8] sm:$0xff]  ;;  %v370_v12 = vld [vmem:[%s4013_s26 + $0x10] sm:$0xff]  ;;  %936 = vmatpush.msra.mxu2 %v853_v29  ;;  %1049 = vmatpush.msra.mxu3 %v917_v30  ;;  %s3477_s27 = sshll.u32 %s6562_s24, 4  ;;  %s3465_s13 = scalar_lea.sflag [#allocation4], %s358_s22  ;;  %s3478_s27 = int_to_ptr.vmem [resolvable:$true] %s3477_s27 }
  0x26   : > { %3575 = vmatmul.msk.f32.vlgmr.msra.gmra.mxu0 %vm410_vm0, %v368_v4  ;;  %3607 = vmatmul.msk.f32.vlgmr.msra.gmra.mxu1 %vm410_vm0, %v368_v4  ;;  %v914_v10 = vld [vmem:[#allocation2 + $0x3a8] sm:$0xff]  ;;  %v371_v15 = vld [vmem:[%s4013_s26 + $0x18] sm:$0xff]  ;;  %v372_v16 = vld [vmem:[%s4013_s26 + $0x20] sm:$0xff]  ;;  %s3826_s23 = scalar_lea.hbm %s6779_s9, 512 }
  0x27   : > { %1162 = vmatpush.msrb.mxu0 %v854_v7  ;;  %1275 = vmatpush.msrb.mxu1 %v918_v8  ;;  %v369_v11 = vld [vmem:[%s4013_s26 + $0x8] sm:$0xff]  ;;  %v374_v20 = vld [vmem:[%s4013_s26 + $0x30] sm:$0xff]  ;;  %v375_v23 = vld [vmem:[%s4013_s26 + $0x38] sm:$0xff] }
  0x28   : > { %v846_v13 = vld [vmem:[#allocation2 + $0x188] sm:$0xff]  ;;  %v376_v24 = vld [vmem:[%s4013_s26 + $0x40] sm:$0xff]  ;;  %v378_v42 = vld [vmem:[%s4013_s26 + $0x50] sm:$0xff] }
  0x29   : > { %1163 = vmatpush.msrb.mxu0 %v850_v9  ;;  %1276 = vmatpush.msrb.mxu1 %v914_v10  ;;  %v910_v14 = vld [vmem:[#allocation2 + $0x388] sm:$0xff]  ;;  %v849_v31 = vld [vmem:[#allocation2 + $0x1a0] sm:$0xff]  ;;  %v379_v52 = vld [vmem:[%s4013_s26 + $0x58] sm:$0xff] }
  0x2a   : > { %v842_v17 = vld [vmem:[#allocation2 + $0x168] sm:$0xff]  ;;  %v913_v32 = vld [vmem:[#allocation2 + $0x3a0] sm:$0xff]  ;;  %937 = vmatpush.msra.mxu2 %v849_v31  ;;  %v859_v4 = vld [vmem:[#allocation2 + $0x1f0] sm:$0xff] }
  0x2b   : > { %1164 = vmatpush.msrb.mxu0 %v846_v13  ;;  %1277 = vmatpush.msrb.mxu1 %v910_v14  ;;  %v906_v18 = vld [vmem:[#allocation2 + $0x368] sm:$0xff]  ;;  %v845_v34 = vld [vmem:[#allocation2 + $0x180] sm:$0xff]  ;;  %v382_v6 = vld [vmem:[%s4013_s26 + $0x70] sm:$0xff] }
  0x2c   : > { %v373_v19 = vld [vmem:[%s4013_s26 + $0x28] sm:$0xff]  ;;  %1050 = vmatpush.msra.mxu3 %v913_v32  ;;  %v909_v35 = vld [vmem:[#allocation2 + $0x380] sm:$0xff]  ;;  %938 = vmatpush.msra.mxu2 %v845_v34  ;;  %v383_v9 = vld [vmem:[%s4013_s26 + $0x78] sm:$0xff] }
  0x2d   : > { %1165 = vmatpush.msrb.mxu0 %v842_v17  ;;  %1278 = vmatpush.msrb.mxu1 %v906_v18  ;;  %v838_v21 = vld [vmem:[#allocation2 + $0x148] sm:$0xff]  ;;  %v841_v36 = vld [vmem:[#allocation2 + $0x160] sm:$0xff]  ;;  %v855_v13 = vld [vmem:[#allocation2 + $0x1d0] sm:$0xff] }
  0x2e   : > { %3576 = vmatmul.msk.f32.gmra.mxu0 %vm410_vm0, %v369_v11  ;;  %3608 = vmatmul.msk.f32.gmra.mxu1 %vm410_vm0, %v369_v11  ;;  %v902_v22 = vld [vmem:[#allocation2 + $0x348] sm:$0xff]  ;;  %v905_v37 = vld [vmem:[#allocation2 + $0x360] sm:$0xff]  ;;  %v919_v14 = vld [vmem:[#allocation2 + $0x3d0] sm:$0xff] }
  0x2f   : > { %1166 = vmatpush.msrb.mxu0 %v838_v21  ;;  %1279 = vmatpush.msrb.mxu1 %v902_v22  ;;  %v834_v25 = vld [vmem:[#allocation2 + $0x128] sm:$0xff]  ;;  %v837_v38 = vld [vmem:[#allocation2 + $0x140] sm:$0xff]  ;;  %v851_v31 = vld [vmem:[#allocation2 + $0x1b0] sm:$0xff] }
  0x30   : > { %v898_v26 = vld [vmem:[#allocation2 + $0x328] sm:$0xff]  ;;  %1051 = vmatpush.msra.mxu3 %v909_v35  ;;  %v901_v39 = vld [vmem:[#allocation2 + $0x340] sm:$0xff]  ;;  %939 = vmatpush.msra.mxu2 %v841_v36  ;;  %v915_v32 = vld [vmem:[#allocation2 + $0x3b0] sm:$0xff] }
  0x31   : > { %1167 = vmatpush.msrb.mxu0 %v834_v25  ;;  %1280 = vmatpush.msrb.mxu1 %v898_v26  ;;  %v377_v33 = vld [vmem:[%s4013_s26 + $0x48] sm:$0xff]  ;;  %v833_v40 = vld [vmem:[#allocation2 + $0x120] sm:$0xff]  ;;  %v386_v35 = vld [vmem:[%s4013_s26 + $0x90] sm:$0xff] }
  0x32   : > { %1052 = vmatpush.msra.mxu3 %v905_v37  ;;  %v897_v41 = vld [vmem:[#allocation2 + $0x320] sm:$0xff]  ;;  %940 = vmatpush.msra.mxu2 %v837_v38  ;;  %v830_v43 = vld [vmem:[#allocation2 + $0x108] sm:$0xff] }
  0x33   : > { %v829_v44 = vld [vmem:[#allocation2 + $0x100] sm:$0xff]  ;;  %1168 = vmatpush.msrb.mxu0 %v830_v43  ;;  %v894_v46 = vld [vmem:[#allocation2 + $0x308] sm:$0xff] }
  0x34   : > { %1053 = vmatpush.msra.mxu3 %v901_v39  ;;  %941 = vmatpush.msra.mxu2 %v833_v40  ;;  %v893_v45 = vld [vmem:[#allocation2 + $0x300] sm:$0xff]  ;;  %v826_v63 = vld [vmem:[#allocation2 + $0xe8] sm:$0xff] }
  0x35   : > { %v825_v47 = vld [vmem:[#allocation2 + $0xe0] sm:$0xff]  ;;  %1281 = vmatpush.msrb.mxu1 %v894_v46  ;;  %1169 = vmatpush.msrb.mxu0 %v826_v63  ;;  %v890_v2 = vld [vmem:[#allocation2 + $0x2e8] sm:$0xff] }
  0x36   : > { %3577 = vmatmul.msk.f32.gmra.mxu0 %vm410_vm0, %v370_v12  ;;  %3609 = vmatmul.msk.f32.gmra.mxu1 %vm410_vm0, %v370_v12  ;;  %v889_v48 = vld [vmem:[#allocation2 + $0x2e0] sm:$0xff]  ;;  %v381_v3 = vld [vmem:[%s4013_s26 + $0x68] sm:$0xff] }
  0x37   : > { %1054 = vmatpush.msra.mxu3 %v897_v41  ;;  %942 = vmatpush.msra.mxu2 %v829_v44  ;;  %v821_v49 = vld [vmem:[#allocation2 + $0xc0] sm:$0xff]  ;;  %v822_v7 = vld [vmem:[#allocation2 + $0xc8] sm:$0xff]  ;;  %v387_v44 = vld [vmem:[%s4013_s26 + $0x98] sm:$0xff] }
  0x38   : > { %v885_v50 = vld [vmem:[#allocation2 + $0x2c0] sm:$0xff]  ;;  %1282 = vmatpush.msrb.mxu1 %v890_v2  ;;  %1170 = vmatpush.msrb.mxu0 %v822_v7  ;;  %v886_v8 = vld [vmem:[#allocation2 + $0x2c8] sm:$0xff]  ;;  %v390_v7 = vld [vmem:[%s4013_s26 + $0xb0] sm:$0xff] }
  0x39   : > { %1055 = vmatpush.msra.mxu3 %v893_v45  ;;  %943 = vmatpush.msra.mxu2 %v825_v47  ;;  %v817_v51 = vld [vmem:[#allocation2 + $0xa0] sm:$0xff]  ;;  %v818_v22 = vld [vmem:[#allocation2 + $0xa8] sm:$0xff] }
  0x3a   : > { %v881_v53 = vld [vmem:[#allocation2 + $0x2a0] sm:$0xff]  ;;  %1283 = vmatpush.msrb.mxu1 %v886_v8  ;;  %1171 = vmatpush.msrb.mxu0 %v818_v22  ;;  %v385_v26 = vld [vmem:[%s4013_s26 + $0x88] sm:$0xff] }
  0x3b   : > { %1056 = vmatpush.msra.mxu3 %v889_v48  ;;  %944 = vmatpush.msra.mxu2 %v821_v49  ;;  %v813_v54 = vld [vmem:[#allocation2 + $0x80] sm:$0xff]  ;;  %v814_v40 = vld [vmem:[#allocation2 + $0x88] sm:$0xff]  ;;  %v847_v49 = vld [vmem:[#allocation2 + $0x190] sm:$0xff] }
  0x3c   : > { %v877_v55 = vld [vmem:[#allocation2 + $0x280] sm:$0xff]  ;;  %1172 = vmatpush.msrb.mxu0 %v814_v40  ;;  %v878_v41 = vld [vmem:[#allocation2 + $0x288] sm:$0xff] }
  0x3d   : > { %1057 = vmatpush.msra.mxu3 %v885_v50  ;;  %945 = vmatpush.msra.mxu2 %v817_v51  ;;  %v809_v56 = vld [vmem:[#allocation2 + $0x60] sm:$0xff]  ;;  %v911_v50 = vld [vmem:[#allocation2 + $0x390] sm:$0xff] }
  0x3e   : > { %3578 = vmatmul.msk.f32.gmra.mxu0 %vm410_vm0, %v371_v15  ;;  %3610 = vmatmul.msk.f32.gmra.mxu1 %vm410_vm0, %v371_v15  ;;  %v873_v57 = vld [vmem:[#allocation2 + $0x260] sm:$0xff] }
  0x3f   : > { %1058 = vmatpush.msra.mxu3 %v881_v53  ;;  %946 = vmatpush.msra.mxu2 %v813_v54  ;;  %v805_v58 = vld [vmem:[#allocation2 + $0x40] sm:$0xff] }
  0x40   : > { %v869_v59 = vld [vmem:[#allocation2 + $0x240] sm:$0xff] }
  0x41   : > { %1059 = vmatpush.msra.mxu3 %v877_v55  ;;  %947 = vmatpush.msra.mxu2 %v809_v56  ;;  %v380_v60 = vld [vmem:[%s4013_s26 + $0x60] sm:$0xff] }
  0x42   : > { %v801_v61 = vld [vmem:[#allocation2 + $0x20] sm:$0xff] }
  0x43   : > { %1060 = vmatpush.msra.mxu3 %v873_v57  ;;  %948 = vmatpush.msra.mxu2 %v805_v58  ;;  %v865_v62 = vld [vmem:[#allocation2 + $0x220] sm:$0xff]  ;;  %v810_v58 = vld [vmem:[#allocation2 + $0x68] sm:$0xff] }
  0x44   : > { %v797_v0 = vld [vmem:[#allocation2] sm:$0xff]  ;;  %1173 = vmatpush.msrb.mxu0 %v810_v58 }
  0x45   : > { %1061 = vmatpush.msra.mxu3 %v869_v59  ;;  %949 = vmatpush.msra.mxu2 %v801_v61  ;;  %v861_v1 = vld [vmem:[#allocation2 + $0x200] sm:$0xff]  ;;  %v874_v59 = vld [vmem:[#allocation2 + $0x268] sm:$0xff] }
  0x46   : > { %3579 = vmatmul.msk.f32.gmra.mxu0 %vm410_vm0, %v372_v16  ;;  %3611 = vmatmul.msk.f32.gmra.mxu1 %vm410_vm0, %v372_v16  ;;  %v404_v10 = vld [vmem:[%s6772_s2] sm:$0x3] }
  0x47   : > { %1062 = vmatpush.msra.mxu3 %v865_v62  ;;  %950 = vmatpush.msra.mxu2 %v797_v0  ;;  %v4078_v11 = vperm.slane %v404_v10, 0  ;;  %v4080_v12 = vperm.slane %v404_v10, 1  ;;  %v384_v17 = vld [vmem:[%s4013_s26 + $0x80] sm:$0xff]  ;;  %v389_v62 = vld [vmem:[%s4013_s26 + $0xa8] sm:$0xff] }
  0x48   : > { %v388_v53 = vld [vmem:[%s4013_s26 + $0xa0] sm:$0xff] }
  0x49   : > { %1063 = vmatpush.msra.mxu3 %v861_v1  ;;  %1387 = vmatpush.msrb.mxu2 %v859_v4  ;;  %v907_v4 = vld [vmem:[#allocation2 + $0x370] sm:$0xff] }
  0x4b   : > { %1500 = vmatpush.msrb.mxu3 %v923_v5  ;;  %1388 = vmatpush.msrb.mxu2 %v855_v13 }
  0x4d   : > { %1501 = vmatpush.msrb.mxu3 %v919_v14  ;;  %1389 = vmatpush.msrb.mxu2 %v851_v31  ;;  %v806_v14 = vld [vmem:[#allocation2 + $0x48] sm:$0xff]  ;;  %v392_v31 = vld [vmem:[%s4013_s26 + $0xc0] sm:$0xff] }
  0x4e   : > { %3580 = vmatmul.msk.f32.gmra.mxu0 %vm410_vm0, %v373_v19  ;;  %3612 = vmatmul.msk.f32.gmra.mxu1 %vm410_vm0, %v373_v19 }
  0x4f   : > { %1502 = vmatpush.msrb.mxu3 %v915_v32  ;;  %1390 = vmatpush.msrb.mxu2 %v847_v49  ;;  %v835_v49 = vld [vmem:[#allocation2 + $0x130] sm:$0xff] }
  0x50   : > { %1174 = vmatpush.msrb.mxu0 %v806_v14 }
  0x51   : > { %1503 = vmatpush.msrb.mxu3 %v911_v50  ;;  %v899_v50 = vld [vmem:[#allocation2 + $0x330] sm:$0xff] }
  0x53   : > { %1504 = vmatpush.msrb.mxu3 %v907_v4 }
  0x56   : > { %3581 = vmatmul.msk.f32.gmra.mxu0 %vm410_vm0, %v374_v20  ;;  %3613 = vmatmul.msk.f32.gmra.mxu1 %vm410_vm0, %v374_v20 }
  0x5e   : > { %3582 = vmatmul.msk.f32.gmra.mxu0 %vm410_vm0, %v375_v23  ;;  %3614 = vmatmul.msk.f32.gmra.mxu1 %vm410_vm0, %v375_v23  ;;  %v882_v23 = vld [vmem:[#allocation2 + $0x2a8] sm:$0xff] }
  0x5f   : > { %1284 = vmatpush.msrb.mxu1 %v882_v23 }
  0x61   : > { %1285 = vmatpush.msrb.mxu1 %v878_v41 }
  0x63   : > { %1286 = vmatpush.msrb.mxu1 %v874_v59 }
  0x66   : > { %3583 = vmatmul.msk.f32.gmra.mxu0 %vm410_vm0, %v376_v24  ;;  %3615 = vmatmul.msk.f32.gmra.mxu1 %vm410_vm0, %v376_v24 }
  0x6e   : > { %3584 = vmatmul.msk.f32.gmra.mxu0 %vm410_vm0, %v377_v33  ;;  %3616 = vmatmul.msk.f32.gmra.mxu1 %vm410_vm0, %v377_v33 }
  0x76   : > { %3585 = vmatmul.msk.f32.gmra.mxu0 %vm410_vm0, %v378_v42  ;;  %3617 = vmatmul.msk.f32.gmra.mxu1 %vm410_vm0, %v378_v42 }
  0x7e   : > { %3586 = vmatmul.msk.f32.gmra.mxu0 %vm410_vm0, %v379_v52  ;;  %3618 = vmatmul.msk.f32.gmra.mxu1 %vm410_vm0, %v379_v52 }
  0x86   : > { %3587 = vmatmul.msk.f32.gmra.mxu0 %vm410_vm0, %v380_v60  ;;  %3619 = vmatmul.msk.f32.gmra.mxu1 %vm410_vm0, %v380_v60 }
  0x8e   : > { %3588 = vmatmul.msk.f32.gmra.mxu0 %vm410_vm0, %v381_v3  ;;  %3620 = vmatmul.msk.f32.gmra.mxu1 %vm410_vm0, %v381_v3  ;;  %v843_v3 = vld [vmem:[#allocation2 + $0x170] sm:$0xff] }
  0x8f   : > { %1391 = vmatpush.msrb.mxu2 %v843_v3 }
  0x96   : > { %3589 = vmatmul.msk.f32.gmra.mxu0 %vm410_vm0, %v382_v6  ;;  %3621 = vmatmul.msk.f32.gmra.mxu1 %vm410_vm0, %v382_v6 }
  0x9e   : > { %3590 = vmatmul.msk.f32.gmra.mxu0 %vm410_vm0, %v383_v9  ;;  %3622 = vmatmul.msk.f32.gmra.mxu1 %vm410_vm0, %v383_v9 }
  0xa3   : > { %v524_v15 = vpop.f32.mrf.mxu0  ;;  %v637_v16 = vpop.f32.mrf.mxu1 }
  0xa4   : > { %v525_v18 = vadd.f32 %v524_v15, %v4078_v11  ;;  %v638_v19 = vadd.f32 %v637_v16, %v4080_v12  ;;  %v870_v15 = vld [vmem:[#allocation2 + $0x248] sm:$0xff] }
  0xa5   : > { %1287 = vmatpush.msrb.mxu1 %v870_v15  ;;  %v396_v15 = vld [vmem:[%s4013_s26 + $0xe0] sm:$0xff] }
  0xa6   : > { %v4085_v20 = vmax.f32 %v525_v18, 0.0  ;;  %v4087_v21 = vmax.f32 %v638_v19, 0.0  ;;  %3591 = vmatmul.msk.f32.gmra.mxu0 %vm410_vm0, %v384_v17  ;;  %3623 = vmatmul.msk.f32.gmra.mxu1 %vm410_vm0, %v384_v17  ;;  %v391_v18 = vld [vmem:[%s4013_s26 + $0xb8] sm:$0xff] }
  0xa8   : > { %951 = vmatmul.f32.vlgmr.msra.gmra.mxu2 %v4085_v20  ;;  %1064 = vmatmul.f32.vlgmr.msra.gmra.mxu3 %v4087_v21 }
  0xab   : > { %v527_v24 = vpop.f32.mrf.mxu0  ;;  %v640_v25 = vpop.f32.mrf.mxu1 }
  0xac   : > { %v528_v27 = vadd.f32 %v527_v24, %v4078_v11  ;;  %v641_v28 = vadd.f32 %v640_v25, %v4080_v12  ;;  %v839_v25 = vld [vmem:[#allocation2 + $0x150] sm:$0xff] }
  0xad   : > { %1392 = vmatpush.msrb.mxu2 %v839_v25  ;;  %v924_v25 = vld [vmem:[#allocation2 + $0x3f8] sm:$0xff] }
  0xae   : > { %v4096_v29 = vmax.f32 %v528_v27, 0.0  ;;  %v4098_v30 = vmax.f32 %v641_v28, 0.0  ;;  %3592 = vmatmul.msk.f32.gmra.mxu0 %vm410_vm0, %v385_v26  ;;  %3624 = vmatmul.msk.f32.gmra.mxu1 %vm410_vm0, %v385_v26  ;;  %v903_v26 = vld [vmem:[#allocation2 + $0x350] sm:$0xff] }
  0xaf   : > { %1505 = vmatpush.msrb.mxu3 %v903_v26  ;;  %1393 = vmatpush.msrb.mxu2 %v835_v49 }
  0xb0   : > { %954 = vmatmul.f32.gmra.mxu2 %v4096_v29  ;;  %1067 = vmatmul.f32.gmra.mxu3 %v4098_v30 }
  0xb1   : > { %1506 = vmatpush.msrb.mxu3 %v899_v50 }
  0xb3   : > { %v530_v33 = vpop.f32.mrf.mxu0  ;;  %v643_v34 = vpop.f32.mrf.mxu1 }
  0xb4   : > { %v531_v36 = vadd.f32 %v530_v33, %v4078_v11  ;;  %v644_v37 = vadd.f32 %v643_v34, %v4080_v12 }
  0xb6   : > { %v4107_v38 = vmax.f32 %v531_v36, 0.0  ;;  %v4109_v39 = vmax.f32 %v644_v37, 0.0  ;;  %3593 = vmatmul.msk.f32.gmra.mxu0 %vm410_vm0, %v386_v35  ;;  %3625 = vmatmul.msk.f32.gmra.mxu1 %vm410_vm0, %v386_v35  ;;  %v802_v36 = vld [vmem:[#allocation2 + $0x28] sm:$0xff] }
  0xb7   : > { %1175 = vmatpush.msrb.mxu0 %v802_v36  ;;  %v866_v37 = vld [vmem:[#allocation2 + $0x228] sm:$0xff] }
  0xb8   : > { %957 = vmatmul.f32.gmra.mxu2 %v4107_v38  ;;  %1070 = vmatmul.f32.gmra.mxu3 %v4109_v39 }
  0xb9   : > { %1288 = vmatpush.msrb.mxu1 %v866_v37  ;;  %v827_v37 = vld [vmem:[#allocation2 + $0xf0] sm:$0xff] }
  0xbb   : > { %v533_v42 = vpop.f32.mrf.mxu0  ;;  %v646_v43 = vpop.f32.mrf.mxu1 }
  0xbc   : > { %v534_v45 = vadd.f32 %v533_v42, %v4078_v11  ;;  %v647_v46 = vadd.f32 %v646_v43, %v4080_v12  ;;  %v393_v42 = vld [vmem:[%s4013_s26 + $0xc8] sm:$0xff] }
  0xbe   : > { %v4118_v47 = vmax.f32 %v534_v45, 0.0  ;;  %v4120_v48 = vmax.f32 %v647_v46, 0.0  ;;  %3594 = vmatmul.msk.f32.gmra.mxu0 %vm410_vm0, %v387_v44  ;;  %3626 = vmatmul.msk.f32.gmra.mxu1 %vm410_vm0, %v387_v44 }
  0xc0   : > { %960 = vmatmul.f32.gmra.mxu2 %v4118_v47  ;;  %1073 = vmatmul.f32.gmra.mxu3 %v4120_v48 }
  0xc3   : > { %v536_v51 = vpop.f32.mrf.mxu0  ;;  %v649_v52 = vpop.f32.mrf.mxu1 }
  0xc4   : > { %v537_v54 = vadd.f32 %v536_v51, %v4078_v11  ;;  %v650_v55 = vadd.f32 %v649_v52, %v4080_v12 }
  0xc6   : > { %v4129_v56 = vmax.f32 %v537_v54, 0.0  ;;  %v4131_v57 = vmax.f32 %v650_v55, 0.0  ;;  %3595 = vmatmul.msk.f32.gmra.mxu0 %vm410_vm0, %v388_v53  ;;  %3627 = vmatmul.msk.f32.gmra.mxu1 %vm410_vm0, %v388_v53  ;;  %v394_v53 = vld [vmem:[%s4013_s26 + $0xd0] sm:$0xff] }
  0xc8   : > { %963 = vmatmul.f32.gmra.mxu2 %v4129_v56  ;;  %1076 = vmatmul.f32.gmra.mxu3 %v4131_v57 }
  0xcb   : > { %v539_v60 = vpop.f32.mrf.mxu0  ;;  %v652_v61 = vpop.f32.mrf.mxu1 }
  0xcc   : > { %v540_v63 = vadd.f32 %v539_v60, %v4078_v11  ;;  %v653_v0 = vadd.f32 %v652_v61, %v4080_v12  ;;  %v798_v60 = vld [vmem:[#allocation2 + $0x8] sm:$0xff] }
  0xcd   : > { %1176 = vmatpush.msrb.mxu0 %v798_v60  ;;  %v862_v61 = vld [vmem:[#allocation2 + $0x208] sm:$0xff]  ;;  %v399_v60 = vld [vmem:[%s4013_s26 + $0xf8] sm:$0xff] }
  0xce   : > { %v4140_v1 = vmax.f32 %v540_v63, 0.0  ;;  %v4142_v2 = vmax.f32 %v653_v0, 0.0  ;;  %3596 = vmatmul.msk.f32.gmra.mxu0 %vm410_vm0, %v389_v62  ;;  %3628 = vmatmul.msk.f32.gmra.mxu1 %vm410_vm0, %v389_v62  ;;  %v395_v0 = vld [vmem:[%s4013_s26 + $0xd8] sm:$0xff] }
  0xcf   : > { %1289 = vmatpush.msrb.mxu1 %v862_v61 }
  0xd0   : > { %966 = vmatmul.f32.gmra.mxu2 %v4140_v1  ;;  %1079 = vmatmul.f32.gmra.mxu3 %v4142_v2 }
  0xd1   : > { %1726 = vmatpush.msra.mxu1 %v924_v25  ;;  %v852_v25 = vld [vmem:[#allocation2 + $0x1b8] sm:$0xff] }
  0xd3   : > { %v542_v5 = vpop.f32.mrf.mxu0  ;;  %v655_v6 = vpop.f32.mrf.mxu1 }
  0xd4   : > { %v543_v8 = vadd.f32 %v542_v5, %v4078_v11  ;;  %v656_v9 = vadd.f32 %v655_v6, %v4080_v12 }
  0xd6   : > { %v4151_v10 = vmax.f32 %v543_v8, 0.0  ;;  %v4153_v13 = vmax.f32 %v656_v9, 0.0  ;;  %3597 = vmatmul.msk.f32.gmra.mxu0 %vm410_vm0, %v390_v7  ;;  %3629 = vmatmul.msk.f32.gmra.mxu1 %vm410_vm0, %v390_v7  ;;  %v831_v7 = vld [vmem:[#allocation2 + $0x110] sm:$0xff] }
  0xd7   : > { %v895_v8 = vld [vmem:[#allocation2 + $0x310] sm:$0xff]  ;;  %1394 = vmatpush.msrb.mxu2 %v831_v7 }
  0xd8   : > { %969 = vmatmul.f32.gmra.mxu2 %v4151_v10  ;;  %1082 = vmatmul.f32.gmra.mxu3 %v4153_v13 }
  0xd9   : > { %1507 = vmatpush.msrb.mxu3 %v895_v8  ;;  %1395 = vmatpush.msrb.mxu2 %v827_v37 }
  0xdb   : > { %v545_v16 = vpop.f32.mrf.mxu0  ;;  %v658_v17 = vpop.f32.mrf.mxu1 }
  0xdc   : > { %v546_v19 = vadd.f32 %v545_v16, %v4078_v11  ;;  %v659_v22 = vadd.f32 %v658_v17, %v4080_v12 }
  0xde   : > { %v4162_v23 = vmax.f32 %v546_v19, 0.0  ;;  %v4164_v24 = vmax.f32 %v659_v22, 0.0  ;;  %3598 = vmatmul.msk.f32.gmra.mxu0 %vm410_vm0, %v391_v18  ;;  %3630 = vmatmul.msk.f32.gmra.mxu1 %vm410_vm0, %v391_v18  ;;  %v860_v22 = vld [vmem:[#allocation2 + $0x1f8] sm:$0xff] }
  0xdf   : > { %1613 = vmatpush.msra.mxu0 %v860_v22 }
  0xe0   : > { %972 = vmatmul.f32.gmra.mxu2 %v4162_v23  ;;  %1085 = vmatmul.f32.gmra.mxu3 %v4164_v24 }
  0xe3   : > { %v548_v27 = vpop.f32.mrf.mxu0  ;;  %v661_v28 = vpop.f32.mrf.mxu1 }
  0xe4   : > { %v549_v32 = vadd.f32 %v548_v27, %v4078_v11  ;;  %v662_v33 = vadd.f32 %v661_v28, %v4080_v12  ;;  %v397_v28 = vld [vmem:[%s4013_s26 + $0xe8] sm:$0xff] }
  0xe6   : > { %v4173_v34 = vmax.f32 %v549_v32, 0.0  ;;  %v4175_v35 = vmax.f32 %v662_v33, 0.0  ;;  %3599 = vmatmul.msk.f32.gmra.mxu0 %vm410_vm0, %v392_v31  ;;  %3631 = vmatmul.msk.f32.gmra.mxu1 %vm410_vm0, %v392_v31 }
  0xe8   : > { %7135 = vst [vmem:[#allocation11_spill] sm:$0xff] %v4175_v35  ;;  %975 = vmatmul.f32.gmra.mxu2 %v4173_v34  ;;  %1088 = vmatmul.f32.gmra.mxu3 %v4175_v35 }
  0xeb   : > { %v551_v40 = vpop.f32.mrf.mxu0  ;;  %v664_v41 = vpop.f32.mrf.mxu1 }
  0xec   : > { %v552_v43 = vadd.f32 %v551_v40, %v4078_v11  ;;  %v665_v44 = vadd.f32 %v664_v41, %v4080_v12  ;;  %v891_v40 = vld [vmem:[#allocation2 + $0x2f0] sm:$0xff] }
  0xed   : > { %1508 = vmatpush.msrb.mxu3 %v891_v40 }
  0xee   : > { %v4184_v45 = vmax.f32 %v552_v43, 0.0  ;;  %v4186_v46 = vmax.f32 %v665_v44, 0.0  ;;  %3600 = vmatmul.msk.f32.gmra.mxu0 %vm410_vm0, %v393_v42  ;;  %3632 = vmatmul.msk.f32.gmra.mxu1 %vm410_vm0, %v393_v42  ;;  %v398_v43 = vld [vmem:[%s4013_s26 + $0xf0] sm:$0xff]  ;;  %s3476_s26 = scalar_lea.hbm %s6779_s9, %s3644_s3 }
  0xef   : > { %s3479_s28 = sshll.u32 %s3476_s26, 4  ;;  %s3480_s28 = int_to_ptr.hbm [resolvable:$true] %s3479_s28 }
  0xf0   : > { %7136 = vst [vmem:[#allocation12_spill] sm:$0xff] %v4184_v45  ;;  %978 = vmatmul.f32.gmra.mxu2 %v4184_v45  ;;  %1091 = vmatmul.f32.gmra.mxu3 %v4186_v46  ;;  %s3820_s29 = sshra.s32 %s3480_s28, 4  ;;  %s3821_s29 = int_to_ptr.hbm [resolvable:$true] %s3820_s29 }
  0xf1   : > { %7137 = vst [vmem:[#allocation13_spill] sm:$0xff] %v4186_v46  ;;  %s3822_s14 = scalar_lea.hbm %s3821_s29, 256  ;;  %p3827_p3 = scmp.lt.s32.totalorder %s3821_s29, %s6779_s9 }
  0xf2   : > { %p3823_p0 = scmp.ne.s32.totalorder %s3821_s29, %s3822_s14  ;;  %p3828_p4 = scmp.lt.s32.totalorder %s3826_s23, %s3822_s14 }
  0xf3   : > { %v554_v51 = vpop.f32.mrf.mxu0  ;;  %v667_v52 = vpop.f32.mrf.mxu1 }
  0xf4   : > { %v555_v54 = vadd.f32 %v554_v51, %v4078_v11  ;;  %v668_v55 = vadd.f32 %v667_v52, %v4080_v12  ;;  %v856_v52 = vld [vmem:[#allocation2 + $0x1d8] sm:$0xff]  ;;  %p3824_p1 = pnand %p3823_p0, %p3974_p5  ;;  %p3829_p7 = por %p3828_p4, %p3827_p3 }
  0xf5   : > { %1614 = vmatpush.msra.mxu0 %v856_v52  ;;  %v883_v52 = vld [vmem:[#allocation2 + $0x2b0] sm:$0xff] }
  0xf6   : > { %v4195_v58 = vmax.f32 %v555_v54, 0.0  ;;  %v4197_v59 = vmax.f32 %v668_v55, 0.0  ;;  %3601 = vmatmul.msk.f32.gmra.mxu0 %vm410_vm0, %v394_v53  ;;  %3633 = vmatmul.msk.f32.gmra.mxu1 %vm410_vm0, %v394_v53  ;;  %v920_v53 = vld [vmem:[#allocation2 + $0x3d8] sm:$0xff]  ;;  %p3825_p2 = pneg %p3824_p1 }
  0xf7   : > { %1727 = vmatpush.msra.mxu1 %v920_v53  ;;  %1615 = vmatpush.msra.mxu0 %v852_v25 }
  0xf8   : > { %7138 = vst [vmem:[#allocation14_spill] sm:$0xff] %v4195_v58  ;;  %981 = vmatmul.f32.gmra.mxu2 %v4195_v58  ;;  %1094 = vmatmul.f32.gmra.mxu3 %v4197_v59  ;;  %p3830_p8 = pnand %p3829_p7, %p3825_p2 }
  0xf9   : > { %7139 = vst [vmem:[#allocation15_spill] sm:$0xff] %v4197_v59 }
  0xfb   : > { %v557_v62 = vpop.f32.mrf.mxu0  ;;  %v670_v63 = vpop.f32.mrf.mxu1 }
  0xfc   : > { %v558_v3 = vadd.f32 %v557_v62, %v4078_v11  ;;  %v671_v4 = vadd.f32 %v670_v63, %v4080_v12 }
  0xfe   : > { %v4206_v5 = vmax.f32 %v558_v3, 0.0  ;;  %v4208_v6 = vmax.f32 %v671_v4, 0.0  ;;  %3602 = vmatmul.msk.f32.gmra.mxu0 %vm410_vm0, %v395_v0  ;;  %3634 = vmatmul.msk.f32.gmra.mxu1 %vm410_vm0, %v395_v0  ;;  %v823_v3 = vld [vmem:[#allocation2 + $0xd0] sm:$0xff] }
  0xff   : > { %v887_v4 = vld [vmem:[#allocation2 + $0x2d0] sm:$0xff]  ;;  %1396 = vmatpush.msrb.mxu2 %v823_v3 }
 0x100   : > { %7140 = vst [vmem:[#allocation16_spill] sm:$0xff] %v4206_v5  ;;  %984 = vmatmul.f32.gmra.mxu2 %v4206_v5  ;;  %1097 = vmatmul.f32.gmra.mxu3 %v4208_v6 }
 0x101   : > { %7141 = vst [vmem:[#allocation17_spill] sm:$0xff] %v4208_v6  ;;  %1509 = vmatpush.msrb.mxu3 %v887_v4 }
 0x103   : > { %v560_v9 = vpop.f32.mrf.mxu0  ;;  %v673_v14 = vpop.f32.mrf.mxu1  ;;  %1510 = vmatpush.msrb.mxu3 %v883_v52  ;;  %v879_v52 = vld [vmem:[#allocation2 + $0x290] sm:$0xff] }
 0x104   : > { %v561_v16 = vadd.f32 %v560_v9, %v4078_v11  ;;  %v674_v17 = vadd.f32 %v673_v14, %v4080_v12 }
 0x105   : > { %1511 = vmatpush.msrb.mxu3 %v879_v52 }
 0x106   : > { %v4217_v18 = vmax.f32 %v561_v16, 0.0  ;;  %v4219_v19 = vmax.f32 %v674_v17, 0.0  ;;  %3603 = vmatmul.msk.f32.gmra.mxu0 %vm410_vm0, %v396_v15  ;;  %3635 = vmatmul.msk.f32.gmra.mxu1 %vm410_vm0, %v396_v15  ;;  %v925_v17 = vld [vmem:[%s6774_s4] sm:$0xf] }
 0x107   : > { %v4271_v22 = vperm.slane %v925_v17, 0 }
 0x108   : > { %7142 = vst [vmem:[#allocation18_spill] sm:$0xff] %v4217_v18  ;;  %987 = vmatmul.f32.gmra.mxu2 %v4217_v18  ;;  %1100 = vmatmul.f32.gmra.mxu3 %v4219_v19 }
 0x109   : > { %7143 = vst [vmem:[#allocation19_spill] sm:$0xff] %v4219_v19 }
 0x10b   : > { %v563_v26 = vpop.f32.mrf.mxu0  ;;  %v676_v27 = vpop.f32.mrf.mxu1 }
 0x10c   : > { %v564_v31 = vadd.f32 %v563_v26, %v4078_v11  ;;  %v677_v32 = vadd.f32 %v676_v27, %v4080_v12  ;;  %v916_v26 = vld [vmem:[#allocation2 + $0x3b8] sm:$0xff] }
 0x10d   : > { %1728 = vmatpush.msra.mxu1 %v916_v26 }
 0x10e   : > { %v4228_v33 = vmax.f32 %v564_v31, 0.0  ;;  %v4230_v36 = vmax.f32 %v677_v32, 0.0  ;;  %3604 = vmatmul.msk.f32.gmra.mxu0 %vm410_vm0, %v397_v28  ;;  %3636 = vmatmul.msk.f32.gmra.mxu1 %vm410_vm0, %v397_v28 }
 0x110   : > { %7144 = vst [vmem:[#allocation20_spill] sm:$0xff] %v4228_v33  ;;  %990 = vmatmul.f32.gmra.mxu2 %v4228_v33  ;;  %1103 = vmatmul.f32.gmra.mxu3 %v4230_v36 }
 0x111   : > { %7145 = vst [vmem:[#allocation21_spill] sm:$0xff] %v4230_v36 }
 0x113   : > { %v566_v41 = vpop.f32.mrf.mxu0  ;;  %v679_v42 = vpop.f32.mrf.mxu1 }
 0x114   : > { %v567_v44 = vadd.f32 %v566_v41, %v4078_v11  ;;  %v680_v49 = vadd.f32 %v679_v42, %v4080_v12 }
 0x116   : > { %v4239_v50 = vmax.f32 %v567_v44, 0.0  ;;  %v4241_v51 = vmax.f32 %v680_v49, 0.0  ;;  %3605 = vmatmul.msk.f32.gmra.mxu0 %vm410_vm0, %v398_v43  ;;  %3637 = vmatmul.msk.f32.gmra.mxu1 %vm410_vm0, %v398_v43  ;;  %v819_v49 = vld [vmem:[#allocation2 + $0xb0] sm:$0xff] }
 0x117   : > { %1397 = vmatpush.msrb.mxu2 %v819_v49  ;;  %v815_v49 = vld [vmem:[#allocation2 + $0x90] sm:$0xff] }
 0x118   : > { %7146 = vst [vmem:[#allocation22_spill] sm:$0xff] %v4239_v50  ;;  %993 = vmatmul.f32.gmra.mxu2 %v4239_v50  ;;  %1106 = vmatmul.f32.gmra.mxu3 %v4241_v51 }
 0x119   : > { %7147 = vst [vmem:[#allocation23_spill] sm:$0xff] %v4241_v51  ;;  %1398 = vmatpush.msrb.mxu2 %v815_v49 }
 0x11b   : > { %v569_v54 = vpop.f32.mrf.mxu0  ;;  %v682_v55 = vpop.f32.mrf.mxu1 }
 0x11c   : > { %v570_v61 = vadd.f32 %v569_v54, %v4078_v11  ;;  %v683_v62 = vadd.f32 %v682_v55, %v4080_v12 }
 0x11e   : > { %v4250_v63 = vmax.f32 %v570_v61, 0.0  ;;  %v4252_v0 = vmax.f32 %v683_v62, 0.0  ;;  %3606 = vmatmul.msk.f32.gmra.mxu0 %vm410_vm0, %v399_v60  ;;  %3638 = vmatmul.msk.f32.gmra.mxu1 %vm410_vm0, %v399_v60 }
 0x120   : > { %996 = vmatmul.f32.gmra.mxu2 %v4250_v63  ;;  %1109 = vmatmul.f32.gmra.mxu3 %v4252_v0 }
 0x123   : > { %v572_v7 = vpop.f32.mrf.mxu0  ;;  %v685_v8 = vpop.f32.mrf.mxu1 }
 0x124   : > { %v573_v9 = vadd.f32 %v572_v7, %v4078_v11  ;;  %v686_v14 = vadd.f32 %v685_v8, %v4080_v12 }
 0x126   : > { %v4260_v15 = vmax.f32 %v573_v9, 0.0  ;;  %v4262_v16 = vmax.f32 %v686_v14, 0.0  ;;  %1177 = vmatmul.f32.vlgmr.msrb.gmra.mxu0 %v4085_v20  ;;  %1290 = vmatmul.f32.vlgmr.msrb.gmra.mxu1 %v4087_v21  ;;  %v848_v9 = vld [vmem:[#allocation2 + $0x198] sm:$0xff] }
 0x127   : > { %v912_v14 = vld [vmem:[#allocation2 + $0x398] sm:$0xff]  ;;  %1616 = vmatpush.msra.mxu0 %v848_v9 }
 0x128   : > { %999 = vmatmul.f32.gmra.mxu2 %v4260_v15  ;;  %1112 = vmatmul.f32.gmra.mxu3 %v4262_v16 }
 0x129   : > { %1729 = vmatpush.msra.mxu1 %v912_v14 }
 0x12b   : > { %v575_v27 = vpop.f32.mrf.mxu0  ;;  %v688_v28 = vpop.f32.mrf.mxu1 }
 0x12c   : > { %v576_v31 = vadd.f32 %v575_v27, %v4078_v11  ;;  %v689_v32 = vadd.f32 %v688_v28, %v4080_v12  ;;  %v952_v37 = vpop.f32.mrf.mxu2  ;;  %v1065_v40 = vpop.f32.mrf.mxu3 }
 0x12d   : > { %v953_v41 = vadd.f32 %v952_v37, %v4271_v22 }
 0x12e   : > { %v4276_v42 = vmax.f32 %v576_v31, 0.0  ;;  %v4278_v43 = vmax.f32 %v689_v32, 0.0  ;;  %1180 = vmatmul.f32.gmra.mxu0 %v4096_v29  ;;  %1293 = vmatmul.f32.gmra.mxu1 %v4098_v30 }
 0x12f   : > { %v4282_v44 = vadd.f32 %v1065_v40, %v953_v41 }
 0x130   : > { %1002 = vmatmul.f32.gmra.mxu2 %v4276_v42  ;;  %1115 = vmatmul.f32.gmra.mxu3 %v4278_v43 }
 0x131   : > { %7148 = vst [vmem:[#allocation24_spill] sm:$0xff] %v4282_v44 }
 0x133   : > { %v578_v53 = vpop.f32.mrf.mxu0  ;;  %v691_v54 = vpop.f32.mrf.mxu1 }
 0x134   : > { %v579_v55 = vadd.f32 %v578_v53, %v4078_v11  ;;  %v692_v60 = vadd.f32 %v691_v54, %v4080_v12  ;;  %v955_v61 = vpop.f32.mrf.mxu2  ;;  %v1068_v62 = vpop.f32.mrf.mxu3 }
 0x135   : > { %v956_v3 = vadd.f32 %v955_v61, %v4271_v22 }
 0x136   : > { %v4289_v4 = vmax.f32 %v579_v55, 0.0  ;;  %v4291_v7 = vmax.f32 %v692_v60, 0.0  ;;  %1183 = vmatmul.f32.gmra.mxu0 %v4107_v38  ;;  %1296 = vmatmul.f32.gmra.mxu1 %v4109_v39 }
 0x137   : > { %v4295_v8 = vadd.f32 %v1068_v62, %v956_v3 }
 0x138   : > { %1005 = vmatmul.f32.gmra.mxu2 %v4289_v4  ;;  %1118 = vmatmul.f32.gmra.mxu3 %v4291_v7 }
 0x139   : > { %7149 = vst [vmem:[#allocation25_spill] sm:$0xff] %v4295_v8 }
 0x13b   : > { %v581_v17 = vpop.f32.mrf.mxu0  ;;  %v694_v25 = vpop.f32.mrf.mxu1 }
 0x13c   : > { %v582_v26 = vadd.f32 %v581_v17, %v4078_v11  ;;  %v695_v27 = vadd.f32 %v694_v25, %v4080_v12  ;;  %v958_v28 = vpop.f32.mrf.mxu2  ;;  %v1071_v31 = vpop.f32.mrf.mxu3  ;;  %v844_v25 = vld [vmem:[#allocation2 + $0x178] sm:$0xff] }
 0x13d   : > { %v959_v32 = vadd.f32 %v958_v28, %v4271_v22  ;;  %1617 = vmatpush.msra.mxu0 %v844_v25 }
 0x13e   : > { %v4302_v37 = vmax.f32 %v582_v26, 0.0  ;;  %v4304_v40 = vmax.f32 %v695_v27, 0.0  ;;  %1186 = vmatmul.f32.gmra.mxu0 %v4118_v47  ;;  %1299 = vmatmul.f32.gmra.mxu1 %v4120_v48  ;;  %v908_v26 = vld [vmem:[#allocation2 + $0x378] sm:$0xff] }
 0x13f   : > { %v4308_v41 = vadd.f32 %v1071_v31, %v959_v32  ;;  %1730 = vmatpush.msra.mxu1 %v908_v26 }
 0x140   : > { %1008 = vmatmul.f32.gmra.mxu2 %v4302_v37  ;;  %1121 = vmatmul.f32.gmra.mxu3 %v4304_v40 }
 0x141   : > { %7150 = vst [vmem:[#allocation26_spill] sm:$0xff] %v4308_v41 }
 0x143   : > { %v584_v53 = vpop.f32.mrf.mxu0  ;;  %v697_v54 = vpop.f32.mrf.mxu1 }
 0x144   : > { %v585_v55 = vadd.f32 %v584_v53, %v4078_v11  ;;  %v698_v60 = vadd.f32 %v697_v54, %v4080_v12  ;;  %v961_v61 = vpop.f32.mrf.mxu2  ;;  %v1074_v62 = vpop.f32.mrf.mxu3 }
 0x145   : > { %v962_v3 = vadd.f32 %v961_v61, %v4271_v22  ;;  %v811_v61 = vld [vmem:[#allocation2 + $0x70] sm:$0xff] }
 0x146   : > { %v4315_v9 = vmax.f32 %v585_v55, 0.0  ;;  %v4317_v14 = vmax.f32 %v698_v60, 0.0  ;;  %1189 = vmatmul.f32.gmra.mxu0 %v4129_v56  ;;  %1302 = vmatmul.f32.gmra.mxu1 %v4131_v57 }
 0x147   : > { %v4321_v17 = vadd.f32 %v1074_v62, %v962_v3  ;;  %v875_v62 = vld [vmem:[#allocation2 + $0x270] sm:$0xff]  ;;  %1399 = vmatpush.msrb.mxu2 %v811_v61  ;;  %v840_v61 = vld [vmem:[#allocation2 + $0x158] sm:$0xff] }
 0x148   : > { %1011 = vmatmul.f32.gmra.mxu2 %v4315_v9  ;;  %1124 = vmatmul.f32.gmra.mxu3 %v4317_v14 }
 0x149   : > { %7151 = vst [vmem:[#allocation27_spill] sm:$0xff] %v4321_v17  ;;  %1512 = vmatpush.msrb.mxu3 %v875_v62  ;;  %v904_v62 = vld [vmem:[#allocation2 + $0x358] sm:$0xff]  ;;  %1618 = vmatpush.msra.mxu0 %v840_v61 }
 0x14a   : > { %1731 = vmatpush.msra.mxu1 %v904_v62  ;;  %v807_v62 = vld [vmem:[#allocation2 + $0x50] sm:$0xff] }
 0x14b   : > { %v587_v27 = vpop.f32.mrf.mxu0  ;;  %v700_v28 = vpop.f32.mrf.mxu1  ;;  %1400 = vmatpush.msrb.mxu2 %v807_v62 }
 0x14c   : > { %v588_v31 = vadd.f32 %v587_v27, %v4078_v11  ;;  %v701_v32 = vadd.f32 %v700_v28, %v4080_v12  ;;  %v964_v49 = vpop.f32.mrf.mxu2  ;;  %v1077_v52 = vpop.f32.mrf.mxu3 }
 0x14d   : > { %v965_v53 = vadd.f32 %v964_v49, %v4271_v22 }
 0x14e   : > { %v4328_v54 = vmax.f32 %v588_v31, 0.0  ;;  %v4330_v55 = vmax.f32 %v701_v32, 0.0  ;;  %1192 = vmatmul.f32.gmra.mxu0 %v4140_v1  ;;  %1305 = vmatmul.f32.gmra.mxu1 %v4142_v2 }
 0x14f   : > { %v4334_v60 = vadd.f32 %v1077_v52, %v965_v53 }
 0x150   : > { %1014 = vmatmul.f32.gmra.mxu2 %v4328_v54  ;;  %1127 = vmatmul.f32.gmra.mxu3 %v4330_v55 }
 0x151   : > { %7152 = vst [vmem:[#allocation28_spill] sm:$0xff] %v4334_v60 }
 0x153   : > { %v590_v3 = vpop.f32.mrf.mxu0  ;;  %v703_v25 = vpop.f32.mrf.mxu1 }
 0x154   : > { %v591_v26 = vadd.f32 %v590_v3, %v4078_v11  ;;  %v704_v27 = vadd.f32 %v703_v25, %v4080_v12  ;;  %v967_v28 = vpop.f32.mrf.mxu2  ;;  %v1080_v31 = vpop.f32.mrf.mxu3 }
 0x155   : > { %v968_v32 = vadd.f32 %v967_v28, %v4271_v22 }
 0x156   : > { %v4341_v49 = vmax.f32 %v591_v26, 0.0  ;;  %v4343_v52 = vmax.f32 %v704_v27, 0.0  ;;  %1195 = vmatmul.f32.gmra.mxu0 %v4151_v10  ;;  %1308 = vmatmul.f32.gmra.mxu1 %v4153_v13 }
 0x157   : > { %v4347_v53 = vadd.f32 %v1080_v31, %v968_v32 }
 0x158   : > { %1017 = vmatmul.f32.gmra.mxu2 %v4341_v49  ;;  %1130 = vmatmul.f32.gmra.mxu3 %v4343_v52 }
 0x159   : > { %7153 = vst [vmem:[#allocation29_spill] sm:$0xff] %v4347_v53 }
 0x15b   : > { %v593_v3 = vpop.f32.mrf.mxu0  ;;  %v706_v25 = vpop.f32.mrf.mxu1 }
 0x15c   : > { %v594_v26 = vadd.f32 %v593_v3, %v4078_v11  ;;  %v707_v27 = vadd.f32 %v706_v25, %v4080_v12  ;;  %v970_v28 = vpop.f32.mrf.mxu2  ;;  %v1083_v60 = vpop.f32.mrf.mxu3  ;;  %v871_v3 = vld [vmem:[#allocation2 + $0x250] sm:$0xff] }
 0x15d   : > { %v971_v17 = vadd.f32 %v970_v28, %v4271_v22  ;;  %1513 = vmatpush.msrb.mxu3 %v871_v3  ;;  %v836_v3 = vld [vmem:[#allocation2 + $0x138] sm:$0xff] }
 0x15e   : > { %v4354_v31 = vmax.f32 %v594_v26, 0.0  ;;  %v4356_v32 = vmax.f32 %v707_v27, 0.0  ;;  %1198 = vmatmul.f32.gmra.mxu0 %v4162_v23  ;;  %1311 = vmatmul.f32.gmra.mxu1 %v4164_v24 }
 0x15f   : > { %v4360_v61 = vadd.f32 %v1083_v60, %v971_v17  ;;  %1619 = vmatpush.msra.mxu0 %v836_v3 }
 0x160   : > { %1020 = vmatmul.f32.gmra.mxu2 %v4354_v31  ;;  %1133 = vmatmul.f32.gmra.mxu3 %v4356_v32 }
 0x161   : > { %7154 = vst [vmem:[#allocation30_spill] sm:$0xff] %v4360_v61 }
 0x163   : > { %v596_v25 = vpop.f32.mrf.mxu0  ;;  %v709_v28 = vpop.f32.mrf.mxu1 }
 0x164   : > { %v597_v26 = vadd.f32 %v596_v25, %v4078_v11  ;;  %v710_v27 = vadd.f32 %v709_v28, %v4080_v12  ;;  %v973_v53 = vpop.f32.mrf.mxu2  ;;  %v1086_v41 = vpop.f32.mrf.mxu3  ;;  %v900_v25 = vld [vmem:[#allocation2 + $0x338] sm:$0xff] }
 0x165   : > { %v974_v8 = vadd.f32 %v973_v53, %v4271_v22  ;;  %1732 = vmatpush.msra.mxu1 %v900_v25  ;;  %v803_v25 = vld [vmem:[#allocation2 + $0x30] sm:$0xff] }
 0x166   : > { %v4367_v17 = vmax.f32 %v597_v26, 0.0  ;;  %v4369_v60 = vmax.f32 %v710_v27, 0.0  ;;  %1201 = vmatmul.f32.gmra.mxu0 %v4173_v34  ;;  %1314 = vmatmul.f32.gmra.mxu1 %v4175_v35 }
 0x167   : > { %v4373_v62 = vadd.f32 %v1086_v41, %v974_v8  ;;  %1401 = vmatpush.msrb.mxu2 %v803_v25 }
 0x168   : > { %1023 = vmatmul.f32.gmra.mxu2 %v4367_v17  ;;  %1136 = vmatmul.f32.gmra.mxu3 %v4369_v60 }
 0x169   : > { %7155 = vst [vmem:[#allocation31_spill] sm:$0xff] %v4373_v62 }
 0x16b   : > { %v599_v28 = vpop.f32.mrf.mxu0  ;;  %v712_v53 = vpop.f32.mrf.mxu1 }
 0x16c   : > { %v600_v26 = vadd.f32 %v599_v28, %v4078_v11  ;;  %v713_v27 = vadd.f32 %v712_v53, %v4080_v12  ;;  %v976_v61 = vpop.f32.mrf.mxu2  ;;  %v1089_v44 = vpop.f32.mrf.mxu3  ;;  %v867_v28 = vld [vmem:[#allocation2 + $0x230] sm:$0xff] }
 0x16d   : > { %v977_v35 = vadd.f32 %v976_v61, %v4271_v22  ;;  %1514 = vmatpush.msrb.mxu3 %v867_v28  ;;  %v832_v28 = vld [vmem:[#allocation2 + $0x118] sm:$0xff] }
 0x16e   : > { %v4380_v8 = vmax.f32 %v600_v26, 0.0  ;;  %v4382_v41 = vmax.f32 %v713_v27, 0.0  ;;  %1204 = vmatmul.f32.gmra.mxu0 %v4184_v45  ;;  %1317 = vmatmul.f32.gmra.mxu1 %v4186_v46 }
 0x16f   : > { %v4386_v3 = vadd.f32 %v1089_v44, %v977_v35  ;;  %1620 = vmatpush.msra.mxu0 %v832_v28 }
 0x170   : > { %7156 = vst [vmem:[#allocation32_spill] sm:$0xff] %v4380_v8  ;;  %1026 = vmatmul.f32.gmra.mxu2 %v4380_v8  ;;  %1139 = vmatmul.f32.gmra.mxu3 %v4382_v41 }
 0x171   : > { %7157 = vst [vmem:[#allocation33_spill] sm:$0xff] %v4382_v41 }
 0x172   : > { %7158 = vst [vmem:[#allocation34_spill] sm:$0xff] %v4386_v3 }
 0x173   : > { %v602_v53 = vpop.f32.mrf.mxu0  ;;  %v715_v61 = vpop.f32.mrf.mxu1 }
 0x174   : > { %v603_v26 = vadd.f32 %v602_v53, %v4078_v11  ;;  %v716_v27 = vadd.f32 %v715_v61, %v4080_v12  ;;  %v979_v62 = vpop.f32.mrf.mxu2  ;;  %v1092_v45 = vpop.f32.mrf.mxu3  ;;  %v896_v53 = vld [vmem:[#allocation2 + $0x318] sm:$0xff] }
 0x175   : > { %v980_v46 = vadd.f32 %v979_v62, %v4271_v22  ;;  %1733 = vmatpush.msra.mxu1 %v896_v53  ;;  %v799_v53 = vld [vmem:[#allocation2 + $0x10] sm:$0xff] }
 0x176   : > { %v4393_v35 = vmax.f32 %v603_v26, 0.0  ;;  %v4395_v44 = vmax.f32 %v716_v27, 0.0  ;;  %1207 = vmatmul.f32.gmra.mxu0 %v4195_v58  ;;  %1320 = vmatmul.f32.gmra.mxu1 %v4197_v59 }
 0x177   : > { %v4399_v25 = vadd.f32 %v1092_v45, %v980_v46  ;;  %1402 = vmatpush.msrb.mxu2 %v799_v53 }
 0x178   : > { %7159 = vst [vmem:[#allocation35_spill] sm:$0xff] %v4393_v35  ;;  %1029 = vmatmul.f32.gmra.mxu2 %v4393_v35  ;;  %1142 = vmatmul.f32.gmra.mxu3 %v4395_v44 }
 0x179   : > { %7160 = vst [vmem:[#allocation36_spill] sm:$0xff] %v4395_v44 }
 0x17a   : > { %7161 = vst [vmem:[#allocation37_spill] sm:$0xff] %v4399_v25 }
 0x17b   : > { %v605_v61 = vpop.f32.mrf.mxu0  ;;  %v718_v62 = vpop.f32.mrf.mxu1 }
 0x17c   : > { %v606_v26 = vadd.f32 %v605_v61, %v4078_v11  ;;  %v719_v27 = vadd.f32 %v718_v62, %v4080_v12  ;;  %v982_v3 = vpop.f32.mrf.mxu2  ;;  %v1095_v58 = vpop.f32.mrf.mxu3  ;;  %v863_v61 = vld [vmem:[#allocation2 + $0x210] sm:$0xff] }
 0x17d   : > { %v983_v59 = vadd.f32 %v982_v3, %v4271_v22  ;;  %1515 = vmatpush.msrb.mxu3 %v863_v61  ;;  %v828_v61 = vld [vmem:[#allocation2 + $0xf8] sm:$0xff] }
 0x17e   : > { %v4406_v45 = vmax.f32 %v606_v26, 0.0  ;;  %v4408_v46 = vmax.f32 %v719_v27, 0.0  ;;  %1210 = vmatmul.f32.gmra.mxu0 %v4206_v5  ;;  %1323 = vmatmul.f32.gmra.mxu1 %v4208_v6 }
 0x17f   : > { %v4412_v28 = vadd.f32 %v1095_v58, %v983_v59  ;;  %1621 = vmatpush.msra.mxu0 %v828_v61 }
 0x180   : > { %7162 = vst [vmem:[#allocation38_spill] sm:$0xff] %v4406_v45  ;;  %1032 = vmatmul.f32.gmra.mxu2 %v4406_v45  ;;  %1145 = vmatmul.f32.gmra.mxu3 %v4408_v46 }
 0x181   : > { %7163 = vst [vmem:[#allocation39_spill] sm:$0xff] %v4408_v46 }
 0x182   : > { %7164 = vst [vmem:[#allocation40_spill] sm:$0xff] %v4412_v28 }
 0x183   : > { %v608_v62 = vpop.f32.mrf.mxu0  ;;  %v721_v3 = vpop.f32.mrf.mxu1 }
 0x184   : > { %v609_v26 = vadd.f32 %v608_v62, %v4078_v11  ;;  %v722_v27 = vadd.f32 %v721_v3, %v4080_v12  ;;  %v985_v25 = vpop.f32.mrf.mxu2  ;;  %v1098_v5 = vpop.f32.mrf.mxu3  ;;  %v892_v62 = vld [vmem:[#allocation2 + $0x2f8] sm:$0xff] }
 0x185   : > { %v986_v6 = vadd.f32 %v985_v25, %v4271_v22  ;;  %1734 = vmatpush.msra.mxu1 %v892_v62  ;;  %v1997_v62 = vld [vmem:[#allocation5 + $0xf0] sm:$0xff] }
 0x186   : > { %v4419_v58 = vmax.f32 %v609_v26, 0.0  ;;  %v4421_v59 = vmax.f32 %v722_v27, 0.0  ;;  %1213 = vmatmul.f32.gmra.mxu0 %v4217_v18  ;;  %1326 = vmatmul.f32.gmra.mxu1 %v4219_v19 }
 0x187   : > { %v4425_v53 = vadd.f32 %v1098_v5, %v986_v6  ;;  %2101 = vmatpush.msra.mxu2 %v1997_v62 }
 0x188   : > { %7165 = vst [vmem:[#allocation41_spill] sm:$0xff] %v4419_v58  ;;  %1035 = vmatmul.f32.gmra.mxu2 %v4419_v58  ;;  %1148 = vmatmul.f32.gmra.mxu3 %v4421_v59 }
 0x189   : > { %7166 = vst [vmem:[#allocation42_spill] sm:$0xff] %v4421_v59 }
 0x18a   : > { %7167 = vst [vmem:[#allocation43_spill] sm:$0xff] %v4425_v53 }
 0x18b   : > { %v611_v3 = vpop.f32.mrf.mxu0  ;;  %v724_v25 = vpop.f32.mrf.mxu1 }
 0x18c   : > { %v612_v26 = vadd.f32 %v611_v3, %v4078_v11  ;;  %v725_v27 = vadd.f32 %v724_v25, %v4080_v12  ;;  %v988_v28 = vpop.f32.mrf.mxu2  ;;  %v1101_v18 = vpop.f32.mrf.mxu3  ;;  %v2029_v3 = vld [vmem:[#allocation5 + $0x1f0] sm:$0xff] }
 0x18d   : > { %v989_v19 = vadd.f32 %v988_v28, %v4271_v22  ;;  %2214 = vmatpush.msra.mxu3 %v2029_v3  ;;  %v824_v3 = vld [vmem:[#allocation2 + $0xd8] sm:$0xff] }
 0x18e   : > { %v4432_v5 = vmax.f32 %v612_v26, 0.0  ;;  %v4434_v6 = vmax.f32 %v725_v27, 0.0  ;;  %1216 = vmatmul.f32.gmra.mxu0 %v4228_v33  ;;  %1329 = vmatmul.f32.gmra.mxu1 %v4230_v36 }
 0x18f   : > { %v4438_v61 = vadd.f32 %v1101_v18, %v989_v19  ;;  %1622 = vmatpush.msra.mxu0 %v824_v3 }
 0x190   : > { %7168 = vst [vmem:[#allocation44_spill] sm:$0xff] %v4432_v5  ;;  %1038 = vmatmul.f32.gmra.mxu2 %v4432_v5  ;;  %1151 = vmatmul.f32.gmra.mxu3 %v4434_v6 }
 0x191   : > { %7169 = vst [vmem:[#allocation45_spill] sm:$0xff] %v4434_v6 }
 0x192   : > { %7170 = vst [vmem:[#allocation46_spill] sm:$0xff] %v4438_v61 }
 0x193   : > { %v614_v25 = vpop.f32.mrf.mxu0  ;;  %v727_v28 = vpop.f32.mrf.mxu1 }
 0x194   : > { %v615_v26 = vadd.f32 %v614_v25, %v4078_v11  ;;  %v728_v27 = vadd.f32 %v727_v28, %v4080_v12  ;;  %v991_v53 = vpop.f32.mrf.mxu2  ;;  %v1104_v33 = vpop.f32.mrf.mxu3  ;;  %v888_v25 = vld [vmem:[#allocation2 + $0x2d8] sm:$0xff] }
 0x195   : > { %v992_v36 = vadd.f32 %v991_v53, %v4271_v22  ;;  %1735 = vmatpush.msra.mxu1 %v888_v25 }
 0x196   : > { %v4445_v18 = vmax.f32 %v615_v26, 0.0  ;;  %v4447_v19 = vmax.f32 %v728_v27, 0.0  ;;  %1219 = vmatmul.f32.gmra.mxu0 %v4239_v50  ;;  %1332 = vmatmul.f32.gmra.mxu1 %v4241_v51 }
 0x197   : > { %v4451_v62 = vadd.f32 %v1104_v33, %v992_v36 }
 0x198   : > { %7171 = vst [vmem:[#allocation47_spill] sm:$0xff] %v4445_v18  ;;  %1041 = vmatmul.f32.gmra.mxu2 %v4445_v18  ;;  %1154 = vmatmul.f32.gmra.mxu3 %v4447_v19 }
 0x199   : > { %7172 = vst [vmem:[#allocation48_spill] sm:$0xff] %v4451_v62 }
 0x19b   : > { %v617_v28 = vpop.f32.mrf.mxu0  ;;  %v730_v53 = vpop.f32.mrf.mxu1 }
 0x19c   : > { %v618_v26 = vadd.f32 %v617_v28, %v4078_v11  ;;  %v731_v27 = vadd.f32 %v730_v53, %v4080_v12  ;;  %v994_v61 = vpop.f32.mrf.mxu2  ;;  %v1107_v50 = vpop.f32.mrf.mxu3  ;;  %v1995_v11 = vld [vmem:[#allocation5 + $0xe0] sm:$0xff] }
 0x19d   : > { %v995_v51 = vadd.f32 %v994_v61, %v4271_v22  ;;  %v2027_v12 = vld [vmem:[#allocation5 + $0x1e0] sm:$0xff]  ;;  %2102 = vmatpush.msra.mxu2 %v1995_v11 }
 0x19e   : > { %v4458_v33 = vmax.f32 %v618_v26, 0.0  ;;  %v4460_v36 = vmax.f32 %v731_v27, 0.0  ;;  %1222 = vmatmul.f32.gmra.mxu0 %v4250_v63  ;;  %1335 = vmatmul.f32.gmra.mxu1 %v4252_v0  ;;  %v884_v27 = vld [vmem:[#allocation2 + $0x2b8] sm:$0xff] }
 0x19f   : > { %v4464_v3 = vadd.f32 %v1107_v50, %v995_v51  ;;  %2215 = vmatpush.msra.mxu3 %v2027_v12  ;;  %v820_v51 = vld [vmem:[#allocation2 + $0xb8] sm:$0xff]  ;;  %1736 = vmatpush.msra.mxu1 %v884_v27 }
 0x1a0   : > { %1044 = vmatmul.f32.gmra.mxu2 %v4458_v33  ;;  %1157 = vmatmul.f32.gmra.mxu3 %v4460_v36 }
 0x1a1   : > { %7173 = vst [vmem:[#allocation49_spill] sm:$0xff] %v4464_v3  ;;  %1623 = vmatpush.msra.mxu0 %v820_v51  ;;  %v2025_v51 = vld [vmem:[#allocation5 + $0x1d0] sm:$0xff] }
 0x1a2   : > { %2216 = vmatpush.msra.mxu3 %v2025_v51 }
 0x1a3   : > { %v4468_v25 = vpop.f32.mrf.mxu0  ;;  %v4470_v61 = vpop.f32.mrf.mxu1 }
 0x1a4   : > { %7174 = vst [vmem:[#allocation50_spill] sm:$0xff] %v4468_v25  ;;  %v997_v28 = vpop.f32.mrf.mxu2  ;;  %v1110_v53 = vpop.f32.mrf.mxu3 }
 0x1a5   : > { %7175 = vst [vmem:[#allocation51_spill] sm:$0xff] %v4470_v61  ;;  %v998_v26 = vadd.f32 %v997_v28, %v4271_v22 }
 0x1a6   : > { %1225 = vmatmul.f32.gmra.mxu0 %v4260_v15  ;;  %1338 = vmatmul.f32.gmra.mxu1 %v4262_v16 }
 0x1a7   : > { %v4475_v50 = vadd.f32 %v1110_v53, %v998_v26  ;;  %v1993_v26 = vld [vmem:[#allocation5 + $0xd0] sm:$0xff] }
 0x1a8   : > { %1403 = vmatmul.f32.vlgmr.msrb.gmra.mxu2 %v4085_v20  ;;  %1516 = vmatmul.f32.vlgmr.msrb.gmra.mxu3 %v4087_v21 }
 0x1a9   : > { %7176 = vst [vmem:[#allocation52_spill] sm:$0xff] %v4475_v50  ;;  %2103 = vmatpush.msra.mxu2 %v1993_v26  ;;  %v880_v26 = vld [vmem:[#allocation2 + $0x298] sm:$0xff] }
 0x1aa   : > { %1737 = vmatpush.msra.mxu1 %v880_v26 }
 0x1ab   : > { %v4479_v11 = vpop.f32.mrf.mxu0  ;;  %v4481_v12 = vpop.f32.mrf.mxu1 }
 0x1ac   : > { %7177 = vst [vmem:[#allocation53_spill] sm:$0xff] %v4479_v11  ;;  %v1000_v3 = vpop.f32.mrf.mxu2  ;;  %v1113_v28 = vpop.f32.mrf.mxu3 }
 0x1ad   : > { %7178 = vst [vmem:[#allocation54_spill] sm:$0xff] %v4481_v12  ;;  %v1001_v62 = vadd.f32 %v1000_v3, %v4271_v22 }
 0x1ae   : > { %1228 = vmatmul.f32.gmra.mxu0 %v4276_v42  ;;  %1341 = vmatmul.f32.gmra.mxu1 %v4278_v43 }
 0x1af   : > { %v4486_v53 = vadd.f32 %v1113_v28, %v1001_v62  ;;  %v816_v28 = vld [vmem:[#allocation2 + $0x98] sm:$0xff] }
 0x1b0   : > { %1406 = vmatmul.f32.gmra.mxu2 %v4096_v29  ;;  %1519 = vmatmul.f32.gmra.mxu3 %v4098_v30 }
 0x1b1   : > { %7179 = vst [vmem:[#allocation55_spill] sm:$0xff] %v4486_v53  ;;  %1624 = vmatpush.msra.mxu0 %v816_v28  ;;  %v2023_v28 = vld [vmem:[#allocation5 + $0x1c0] sm:$0xff] }
 0x1b2   : > { %2217 = vmatpush.msra.mxu3 %v2023_v28 }
 0x1b3   : > { %v4490_v27 = vpop.f32.mrf.mxu0  ;;  %v4492_v50 = vpop.f32.mrf.mxu1 }
 0x1b4   : > { %7180 = vst [vmem:[#allocation56_spill] sm:$0xff] %v4490_v27  ;;  %v1003_v12 = vpop.f32.mrf.mxu2  ;;  %v1116_v3 = vpop.f32.mrf.mxu3 }
 0x1b5   : > { %7181 = vst [vmem:[#allocation57_spill] sm:$0xff] %v4492_v50  ;;  %v1004_v11 = vadd.f32 %v1003_v12, %v4271_v22 }
 0x1b6   : > { %1231 = vmatmul.f32.gmra.mxu0 %v4289_v4  ;;  %1344 = vmatmul.f32.gmra.mxu1 %v4291_v7 }
 0x1b7   : > { %v4497_v62 = vadd.f32 %v1116_v3, %v1004_v11  ;;  %v1991_v3 = vld [vmem:[#allocation5 + $0xc0] sm:$0xff] }
 0x1b8   : > { %1409 = vmatmul.f32.gmra.mxu2 %v4107_v38  ;;  %1522 = vmatmul.f32.gmra.mxu3 %v4109_v39 }
 0x1b9   : > { %7182 = vst [vmem:[#allocation58_spill] sm:$0xff] %v4497_v62  ;;  %2104 = vmatpush.msra.mxu2 %v1991_v3  ;;  %v876_v3 = vld [vmem:[#allocation2 + $0x278] sm:$0xff] }
 0x1ba   : > { %1738 = vmatpush.msra.mxu1 %v876_v3 }
 0x1bb   : > { %v4501_v51 = vpop.f32.mrf.mxu0  ;;  %v4503_v53 = vpop.f32.mrf.mxu1 }
 0x1bc   : > { %7183 = vst [vmem:[#allocation59_spill] sm:$0xff] %v4501_v51  ;;  %v1006_v50 = vpop.f32.mrf.mxu2  ;;  %v1119_v12 = vpop.f32.mrf.mxu3 }
 0x1bd   : > { %7184 = vst [vmem:[#allocation60_spill] sm:$0xff] %v4503_v53  ;;  %v1007_v27 = vadd.f32 %v1006_v50, %v4271_v22 }
 0x1be   : > { %1234 = vmatmul.f32.gmra.mxu0 %v4302_v37  ;;  %1347 = vmatmul.f32.gmra.mxu1 %v4304_v40 }
 0x1bf   : > { %v4508_v11 = vadd.f32 %v1119_v12, %v1007_v27  ;;  %v812_v12 = vld [vmem:[#allocation2 + $0x78] sm:$0xff] }
 0x1c0   : > { %1412 = vmatmul.f32.gmra.mxu2 %v4118_v47  ;;  %1525 = vmatmul.f32.gmra.mxu3 %v4120_v48 }
 0x1c1   : > { %7185 = vst [vmem:[#allocation61_spill] sm:$0xff] %v4508_v11  ;;  %1625 = vmatpush.msra.mxu0 %v812_v12  ;;  %v2021_v12 = vld [vmem:[#allocation5 + $0x1b0] sm:$0xff] }
 0x1c2   : > { %2218 = vmatpush.msra.mxu3 %v2021_v12 }
 0x1c3   : > { %v4512_v26 = vpop.f32.mrf.mxu0  ;;  %v4514_v62 = vpop.f32.mrf.mxu1 }
 0x1c4   : > { %7186 = vst [vmem:[#allocation62_spill] sm:$0xff] %v4512_v26  ;;  %v1009_v53 = vpop.f32.mrf.mxu2  ;;  %v1122_v50 = vpop.f32.mrf.mxu3 }
 0x1c5   : > { %7187 = vst [vmem:[#allocation63_spill] sm:$0xff] %v4514_v62  ;;  %v1010_v51 = vadd.f32 %v1009_v53, %v4271_v22 }
 0x1c6   : > { %1237 = vmatmul.f32.gmra.mxu0 %v4315_v9  ;;  %1350 = vmatmul.f32.gmra.mxu1 %v4317_v14 }
 0x1c7   : > { %v4519_v27 = vadd.f32 %v1122_v50, %v1010_v51  ;;  %v1989_v50 = vld [vmem:[#allocation5 + $0xb0] sm:$0xff] }
 0x1c8   : > { %1415 = vmatmul.f32.gmra.mxu2 %v4129_v56  ;;  %1528 = vmatmul.f32.gmra.mxu3 %v4131_v57 }
 0x1c9   : > { %7188 = vst [vmem:[#allocation64_spill] sm:$0xff] %v4519_v27  ;;  %2105 = vmatpush.msra.mxu2 %v1989_v50  ;;  %v872_v50 = vld [vmem:[#allocation2 + $0x258] sm:$0xff] }
 0x1ca   : > { %1739 = vmatpush.msra.mxu1 %v872_v50 }
 0x1cb   : > { %v4523_v28 = vpop.f32.mrf.mxu0  ;;  %v4525_v11 = vpop.f32.mrf.mxu1 }
 0x1cc   : > { %7189 = vst [vmem:[#allocation65_spill] sm:$0xff] %v4523_v28  ;;  %v1012_v62 = vpop.f32.mrf.mxu2  ;;  %v1125_v53 = vpop.f32.mrf.mxu3 }
 0x1cd   : > { %7190 = vst [vmem:[#allocation66_spill] sm:$0xff] %v4525_v11  ;;  %v1013_v26 = vadd.f32 %v1012_v62, %v4271_v22 }
 0x1ce   : > { %1240 = vmatmul.f32.gmra.mxu0 %v4328_v54  ;;  %1353 = vmatmul.f32.gmra.mxu1 %v4330_v55 }
 0x1cf   : > { %v4530_v51 = vadd.f32 %v1125_v53, %v1013_v26  ;;  %v808_v53 = vld [vmem:[#allocation2 + $0x58] sm:$0xff] }
 0x1d0   : > { %1418 = vmatmul.f32.gmra.mxu2 %v4140_v1  ;;  %1531 = vmatmul.f32.gmra.mxu3 %v4142_v2 }
 0x1d1   : > { %7191 = vst [vmem:[#allocation67_spill] sm:$0xff] %v4530_v51  ;;  %1626 = vmatpush.msra.mxu0 %v808_v53  ;;  %v2019_v53 = vld [vmem:[#allocation5 + $0x1a0] sm:$0xff] }
 0x1d2   : > { %2219 = vmatpush.msra.mxu3 %v2019_v53  ;;  %v868_v53 = vld [vmem:[#allocation2 + $0x238] sm:$0xff] }
 0x1d3   : > { %v4534_v3 = vpop.f32.mrf.mxu0  ;;  %v4536_v27 = vpop.f32.mrf.mxu1  ;;  %1740 = vmatpush.msra.mxu1 %v868_v53  ;;  %v2017_v53 = vld [vmem:[#allocation5 + $0x190] sm:$0xff] }
 0x1d4   : > { %7192 = vst [vmem:[#allocation68_spill] sm:$0xff] %v4534_v3  ;;  %v1015_v11 = vpop.f32.mrf.mxu2  ;;  %v1128_v62 = vpop.f32.mrf.mxu3  ;;  %2220 = vmatpush.msra.mxu3 %v2017_v53  ;;  %v864_v53 = vld [vmem:[#allocation2 + $0x218] sm:$0xff] }
 0x1d5   : > { %7193 = vst [vmem:[#allocation69_spill] sm:$0xff] %v4536_v27  ;;  %v1016_v28 = vadd.f32 %v1015_v11, %v4271_v22  ;;  %1741 = vmatpush.msra.mxu1 %v864_v53  ;;  %v2015_v53 = vld [vmem:[#allocation5 + $0x180] sm:$0xff] }
 0x1d6   : > { %1243 = vmatmul.f32.gmra.mxu0 %v4341_v49  ;;  %1356 = vmatmul.f32.gmra.mxu1 %v4343_v52 }
 0x1d7   : > { %v4541_v26 = vadd.f32 %v1128_v62, %v1016_v28  ;;  %v1987_v62 = vld [vmem:[#allocation5 + $0xa0] sm:$0xff]  ;;  %2221 = vmatpush.msra.mxu3 %v2015_v53  ;;  %v2093_v53 = vld [vmem:[#allocation5 + $0x3f0] sm:$0xff] }
 0x1d8   : > { %1421 = vmatmul.f32.gmra.mxu2 %v4151_v10  ;;  %1534 = vmatmul.f32.gmra.mxu3 %v4153_v13 }
 0x1d9   : > { %7194 = vst [vmem:[#allocation70_spill] sm:$0xff] %v4541_v26  ;;  %2106 = vmatpush.msra.mxu2 %v1987_v62  ;;  %v804_v62 = vld [vmem:[#allocation2 + $0x38] sm:$0xff]  ;;  %2440 = vmatpush.msrb.mxu1 %v2093_v53  ;;  %v2013_v53 = vld [vmem:[#allocation5 + $0x170] sm:$0xff] }
 0x1da   : > { %1627 = vmatpush.msra.mxu0 %v804_v62  ;;  %v1985_v62 = vld [vmem:[#allocation5 + $0x90] sm:$0xff]  ;;  %2222 = vmatpush.msra.mxu3 %v2013_v53  ;;  %v2091_v53 = vld [vmem:[#allocation5 + $0x3e0] sm:$0xff] }
 0x1db   : > { %v4545_v12 = vpop.f32.mrf.mxu0  ;;  %v4547_v51 = vpop.f32.mrf.mxu1  ;;  %2107 = vmatpush.msra.mxu2 %v1985_v62  ;;  %v800_v62 = vld [vmem:[#allocation2 + $0x18] sm:$0xff]  ;;  %2441 = vmatpush.msrb.mxu1 %v2091_v53 }
 0x1dc   : > { %7195 = vst [vmem:[#allocation71_spill] sm:$0xff] %v4545_v12  ;;  %v1018_v27 = vpop.f32.mrf.mxu2  ;;  %v1131_v11 = vpop.f32.mrf.mxu3  ;;  %1628 = vmatpush.msra.mxu0 %v800_v62  ;;  %v1983_v62 = vld [vmem:[#allocation5 + $0x80] sm:$0xff] }
 0x1dd   : > { %7196 = vst [vmem:[#allocation72_spill] sm:$0xff] %v4547_v51  ;;  %v1019_v3 = vadd.f32 %v1018_v27, %v4271_v22  ;;  %2108 = vmatpush.msra.mxu2 %v1983_v62  ;;  %v2061_v62 = vld [vmem:[#allocation5 + $0x2f0] sm:$0xff] }
 0x1de   : > { %1246 = vmatmul.f32.gmra.mxu0 %v4354_v31  ;;  %1359 = vmatmul.f32.gmra.mxu1 %v4356_v32 }
 0x1df   : > { %v4552_v28 = vadd.f32 %v1131_v11, %v1019_v3  ;;  %v7201_v11 = vld [vmem:[#allocation11_spill] sm:$0xff]  ;;  %2327 = vmatpush.msrb.mxu0 %v2061_v62  ;;  %v1981_v62 = vld [vmem:[#allocation5 + $0x70] sm:$0xff] }
 0x1e0   : > { %1424 = vmatmul.f32.gmra.mxu2 %v4162_v23  ;;  %1537 = vmatmul.f32.gmra.mxu3 %v4164_v24 }
 0x1e1   : > { %7197 = vst [vmem:[#allocation73_spill] sm:$0xff] %v4552_v28  ;;  %2109 = vmatpush.msra.mxu2 %v1981_v62  ;;  %v2059_v62 = vld [vmem:[#allocation5 + $0x2e0] sm:$0xff] }
 0x1e2   : > { %2328 = vmatpush.msrb.mxu0 %v2059_v62  ;;  %v2011_v62 = vld [vmem:[#allocation5 + $0x160] sm:$0xff] }
 0x1e3   : > { %v4556_v50 = vpop.f32.mrf.mxu0  ;;  %v4558_v26 = vpop.f32.mrf.mxu1  ;;  %2223 = vmatpush.msra.mxu3 %v2011_v62  ;;  %v2057_v62 = vld [vmem:[#allocation5 + $0x2d0] sm:$0xff] }
 0x1e4   : > { %7198 = vst [vmem:[#allocation74_spill] sm:$0xff] %v4556_v50  ;;  %v1021_v51 = vpop.f32.mrf.mxu2  ;;  %v1134_v27 = vpop.f32.mrf.mxu3  ;;  %2329 = vmatpush.msrb.mxu0 %v2057_v62  ;;  %v1977_v62 = vld [vmem:[#allocation5 + $0x50] sm:$0xff] }
 0x1e5   : > { %7199 = vst [vmem:[#allocation75_spill] sm:$0xff] %v4558_v26  ;;  %v1022_v12 = vadd.f32 %v1021_v51, %v4271_v22 }
 0x1e6   : > { %1249 = vmatmul.f32.gmra.mxu0 %v4367_v17  ;;  %1362 = vmatmul.f32.gmra.mxu1 %v4369_v60 }
 0x1e7   : > { %v4563_v3 = vadd.f32 %v1134_v27, %v1022_v12  ;;  %v7205_v27 = vld [vmem:[#allocation12_spill] sm:$0xff] }
 0x1e8   : > { %1427 = vmatmul.f32.gmra.mxu2 %v4173_v34  ;;  %1540 = vmatmul.f32.gmra.mxu3 %v7201_v11 }
 0x1e9   : > { %7200 = vst [vmem:[#allocation76_spill] sm:$0xff] %v4563_v3  ;;  %v7206_v3 = vld [vmem:[#allocation13_spill] sm:$0xff] }
 0x1eb   : > { %v4567_v28 = vpop.f32.mrf.mxu0  ;;  %v4569_v26 = vpop.f32.mrf.mxu1 }
 0x1ec   : > { %7202 = vst [vmem:[#allocation11_spill] sm:$0xff] %v4567_v28  ;;  %v1024_v50 = vpop.f32.mrf.mxu2  ;;  %v1137_v51 = vpop.f32.mrf.mxu3 }
 0x1ed   : > { %7203 = vst [vmem:[#allocation77_spill] sm:$0xff] %v4569_v26  ;;  %v1025_v61 = vadd.f32 %v1024_v50, %v4271_v22 }
 0x1ee   : > { %1252 = vmatmul.f32.gmra.mxu0 %v4380_v8  ;;  %1365 = vmatmul.f32.gmra.mxu1 %v4382_v41 }
 0x1ef   : > { %v4574_v12 = vadd.f32 %v1137_v51, %v1025_v61  ;;  %v7210_v51 = vld [vmem:[#allocation14_spill] sm:$0xff] }
 0x1f0   : > { %1430 = vmatmul.f32.gmra.mxu2 %v7205_v27  ;;  %1543 = vmatmul.f32.gmra.mxu3 %v7206_v3 }
 0x1f1   : > { %7204 = vst [vmem:[#allocation78_spill] sm:$0xff] %v4574_v12  ;;  %v7211_v12 = vld [vmem:[#allocation15_spill] sm:$0xff] }
 0x1f3   : > { %v4578_v28 = vpop.f32.mrf.mxu0  ;;  %v4580_v26 = vpop.f32.mrf.mxu1 }
 0x1f4   : > { %7207 = vst [vmem:[#allocation12_spill] sm:$0xff] %v4578_v28  ;;  %v1027_v25 = vpop.f32.mrf.mxu2  ;;  %v1140_v50 = vpop.f32.mrf.mxu3 }
 0x1f5   : > { %7208 = vst [vmem:[#allocation13_spill] sm:$0xff] %v4580_v26  ;;  %v1028_v8 = vadd.f32 %v1027_v25, %v4271_v22 }
 0x1f6   : > { %1255 = vmatmul.f32.gmra.mxu0 %v4393_v35  ;;  %1368 = vmatmul.f32.gmra.mxu1 %v4395_v44 }
 0x1f7   : > { %v4585_v61 = vadd.f32 %v1140_v50, %v1028_v8  ;;  %v7215_v50 = vld [vmem:[#allocation16_spill] sm:$0xff] }
 0x1f8   : > { %1433 = vmatmul.f32.gmra.mxu2 %v7210_v51  ;;  %1546 = vmatmul.f32.gmra.mxu3 %v7211_v12 }
 0x1f9   : > { %7209 = vst [vmem:[#allocation79_spill] sm:$0xff] %v4585_v61  ;;  %v7216_v61 = vld [vmem:[#allocation17_spill] sm:$0xff] }
 0x1fb   : > { %v4589_v28 = vpop.f32.mrf.mxu0  ;;  %v4591_v26 = vpop.f32.mrf.mxu1 }
 0x1fc   : > { %7212 = vst [vmem:[#allocation14_spill] sm:$0xff] %v4589_v28  ;;  %v1030_v41 = vpop.f32.mrf.mxu2  ;;  %v1143_v25 = vpop.f32.mrf.mxu3 }
 0x1fd   : > { %7213 = vst [vmem:[#allocation15_spill] sm:$0xff] %v4591_v26  ;;  %v1031_v35 = vadd.f32 %v1030_v41, %v4271_v22 }
 0x1fe   : > { %1258 = vmatmul.f32.gmra.mxu0 %v4406_v45  ;;  %1371 = vmatmul.f32.gmra.mxu1 %v4408_v46 }
 0x1ff   : > { %v4596_v8 = vadd.f32 %v1143_v25, %v1031_v35  ;;  %v7220_v25 = vld [vmem:[#allocation18_spill] sm:$0xff] }
 0x200   : > { %1436 = vmatmul.f32.gmra.mxu2 %v7215_v50  ;;  %1549 = vmatmul.f32.gmra.mxu3 %v7216_v61 }
 0x201   : > { %7214 = vst [vmem:[#allocation80_spill] sm:$0xff] %v4596_v8  ;;  %v7221_v8 = vld [vmem:[#allocation19_spill] sm:$0xff] }
 0x203   : > { %v4600_v28 = vpop.f32.mrf.mxu0  ;;  %v4602_v26 = vpop.f32.mrf.mxu1 }
 0x204   : > { %7217 = vst [vmem:[#allocation16_spill] sm:$0xff] %v4600_v28  ;;  %v1033_v44 = vpop.f32.mrf.mxu2  ;;  %v1146_v41 = vpop.f32.mrf.mxu3 }
 0x205   : > { %7218 = vst [vmem:[#allocation17_spill] sm:$0xff] %v4602_v26  ;;  %v1034_v45 = vadd.f32 %v1033_v44, %v4271_v22 }
 0x206   : > { %1261 = vmatmul.f32.gmra.mxu0 %v4419_v58  ;;  %1374 = vmatmul.f32.gmra.mxu1 %v4421_v59 }
 0x207   : > { %v4607_v35 = vadd.f32 %v1146_v41, %v1034_v45  ;;  %v7225_v41 = vld [vmem:[#allocation20_spill] sm:$0xff] }
 0x208   : > { %1439 = vmatmul.f32.gmra.mxu2 %v7220_v25  ;;  %1552 = vmatmul.f32.gmra.mxu3 %v7221_v8 }
 0x209   : > { %7219 = vst [vmem:[#allocation81_spill] sm:$0xff] %v4607_v35  ;;  %v7226_v35 = vld [vmem:[#allocation21_spill] sm:$0xff] }
 0x20b   : > { %v4611_v28 = vpop.f32.mrf.mxu0  ;;  %v4613_v26 = vpop.f32.mrf.mxu1 }
 0x20c   : > { %7222 = vst [vmem:[#allocation18_spill] sm:$0xff] %v4611_v28  ;;  %v1036_v46 = vpop.f32.mrf.mxu2  ;;  %v1149_v44 = vpop.f32.mrf.mxu3 }
 0x20d   : > { %7223 = vst [vmem:[#allocation19_spill] sm:$0xff] %v4613_v26  ;;  %v1037_v58 = vadd.f32 %v1036_v46, %v4271_v22 }
 0x20e   : > { %1264 = vmatmul.f32.gmra.mxu0 %v4432_v5  ;;  %1377 = vmatmul.f32.gmra.mxu1 %v4434_v6 }
 0x20f   : > { %v4618_v45 = vadd.f32 %v1149_v44, %v1037_v58  ;;  %v7230_v44 = vld [vmem:[#allocation22_spill] sm:$0xff] }
 0x210   : > { %1442 = vmatmul.f32.gmra.mxu2 %v7225_v41  ;;  %1555 = vmatmul.f32.gmra.mxu3 %v7226_v35 }
 0x211   : > { %7224 = vst [vmem:[#allocation82_spill] sm:$0xff] %v4618_v45  ;;  %v7231_v45 = vld [vmem:[#allocation23_spill] sm:$0xff] }
 0x213   : > { %v4622_v28 = vpop.f32.mrf.mxu0  ;;  %v4624_v26 = vpop.f32.mrf.mxu1 }
 0x214   : > { %7227 = vst [vmem:[#allocation20_spill] sm:$0xff] %v4622_v28  ;;  %v1039_v59 = vpop.f32.mrf.mxu2  ;;  %v1152_v46 = vpop.f32.mrf.mxu3 }
 0x215   : > { %7228 = vst [vmem:[#allocation21_spill] sm:$0xff] %v4624_v26  ;;  %v1040_v5 = vadd.f32 %v1039_v59, %v4271_v22 }
 0x216   : > { %1267 = vmatmul.f32.gmra.mxu0 %v4445_v18  ;;  %1380 = vmatmul.f32.gmra.mxu1 %v4447_v19 }
 0x217   : > { %v4629_v58 = vadd.f32 %v1152_v46, %v1040_v5  ;;  %v1979_v46 = vld [vmem:[#allocation5 + $0x60] sm:$0xff] }
 0x218   : > { %1445 = vmatmul.f32.gmra.mxu2 %v7230_v44  ;;  %1558 = vmatmul.f32.gmra.mxu3 %v7231_v45 }
 0x219   : > { %7229 = vst [vmem:[#allocation83_spill] sm:$0xff] %v4629_v58  ;;  %2110 = vmatpush.msra.mxu2 %v1979_v46 }
 0x21b   : > { %v4633_v28 = vpop.f32.mrf.mxu0  ;;  %v4635_v26 = vpop.f32.mrf.mxu1  ;;  %2111 = vmatpush.msra.mxu2 %v1977_v62 }
 0x21c   : > { %7232 = vst [vmem:[#allocation22_spill] sm:$0xff] %v4633_v28  ;;  %v1042_v6 = vpop.f32.mrf.mxu2  ;;  %v1155_v59 = vpop.f32.mrf.mxu3 }
 0x21d   : > { %7233 = vst [vmem:[#allocation23_spill] sm:$0xff] %v4635_v26  ;;  %v1043_v18 = vadd.f32 %v1042_v6, %v4271_v22 }
 0x21e   : > { %1270 = vmatmul.f32.gmra.mxu0 %v4458_v33  ;;  %1383 = vmatmul.f32.gmra.mxu1 %v4460_v36 }
 0x21f   : > { %v4640_v5 = vadd.f32 %v1155_v59, %v1043_v18  ;;  %v4658_v59 = vld [vmem:[%s6774_s4] sm:$0xf] }
 0x220   : > { %1448 = vmatmul.f32.gmra.mxu2 %v4250_v63  ;;  %1561 = vmatmul.f32.gmra.mxu3 %v4252_v0  ;;  %v4661_v46 = vperm.slane %v4658_v59, 2 }
 0x221   : > { %7234 = vst [vmem:[#allocation84_spill] sm:$0xff] %v4640_v5 }
 0x223   : > { %v4644_v53 = vpop.f32.mrf.mxu0  ;;  %v4646_v58 = vpop.f32.mrf.mxu1 }
 0x224   : > { %v1045_v26 = vpop.f32.mrf.mxu2  ;;  %v1158_v6 = vpop.f32.mrf.mxu3 }
 0x225   : > { %v1046_v28 = vadd.f32 %v1045_v26, %v4271_v22  ;;  %v2089_v22 = vld [vmem:[#allocation5 + $0x3d0] sm:$0xff] }
 0x226   : > { %1629 = vmatmul.f32.vlgmr.msra.gmra.mxu0 %v4085_v20  ;;  %1742 = vmatmul.f32.vlgmr.msra.gmra.mxu1 %v4087_v21 }
 0x227   : > { %v4651_v18 = vadd.f32 %v1158_v6, %v1046_v28  ;;  %2442 = vmatpush.msrb.mxu1 %v2089_v22  ;;  %v2009_v22 = vld [vmem:[#allocation5 + $0x150] sm:$0xff] }
 0x228   : > { %1451 = vmatmul.f32.gmra.mxu2 %v4260_v15  ;;  %1564 = vmatmul.f32.gmra.mxu3 %v4262_v16 }
 0x229   : > { %7235 = vst [vmem:[#allocation85_spill] sm:$0xff] %v4651_v18  ;;  %2224 = vmatpush.msra.mxu3 %v2009_v22 }
 0x22b   : > { %v4663_v20 = vpop.f32.mrf.mxu0  ;;  %v4665_v21 = vpop.f32.mrf.mxu1 }
 0x22c   : > { %7236 = vst [vmem:[#allocation86_spill] sm:$0xff] %v4663_v20  ;;  %v1404_v26 = vpop.f32.mrf.mxu2  ;;  %v1517_v28 = vpop.f32.mrf.mxu3 }
 0x22d   : > { %7237 = vst [vmem:[#allocation87_spill] sm:$0xff] %v4665_v21  ;;  %v1405_v6 = vadd.f32 %v1404_v26, %v4661_v46 }
 0x22e   : > { %1632 = vmatmul.f32.gmra.mxu0 %v4096_v29  ;;  %1745 = vmatmul.f32.gmra.mxu1 %v4098_v30 }
 0x22f   : > { %v4670_v18 = vadd.f32 %v1517_v28, %v1405_v6  ;;  %v2055_v28 = vld [vmem:[#allocation5 + $0x2c0] sm:$0xff] }
 0x230   : > { %1454 = vmatmul.f32.gmra.mxu2 %v4276_v42  ;;  %1567 = vmatmul.f32.gmra.mxu3 %v4278_v43  ;;  %v2087_v6 = vld [vmem:[#allocation5 + $0x3c0] sm:$0xff] }
 0x231   : > { %7238 = vst [vmem:[#allocation88_spill] sm:$0xff] %v4670_v18  ;;  %2330 = vmatpush.msrb.mxu0 %v2055_v28  ;;  %2443 = vmatpush.msrb.mxu1 %v2087_v6 }
 0x233   : > { %v4674_v5 = vpop.f32.mrf.mxu0  ;;  %v4676_v21 = vpop.f32.mrf.mxu1 }
 0x234   : > { %7239 = vst [vmem:[#allocation89_spill] sm:$0xff] %v4676_v21  ;;  %v1407_v20 = vpop.f32.mrf.mxu2  ;;  %v1520_v26 = vpop.f32.mrf.mxu3 }
 0x235   : > { %v1408_v29 = vadd.f32 %v1407_v20, %v4661_v46 }
 0x236   : > { %1635 = vmatmul.f32.gmra.mxu0 %v4107_v38  ;;  %1748 = vmatmul.f32.gmra.mxu1 %v4109_v39 }
 0x237   : > { %v4681_v30 = vadd.f32 %v1520_v26, %v1408_v29  ;;  %v1975_v26 = vld [vmem:[#allocation5 + $0x40] sm:$0xff] }
 0x238   : > { %1457 = vmatmul.f32.gmra.mxu2 %v4289_v4  ;;  %1570 = vmatmul.f32.gmra.mxu3 %v4291_v7  ;;  %v2007_v29 = vld [vmem:[#allocation5 + $0x140] sm:$0xff] }
 0x239   : > { %7240 = vst [vmem:[#allocation90_spill] sm:$0xff] %v4681_v30  ;;  %2112 = vmatpush.msra.mxu2 %v1975_v26  ;;  %2225 = vmatpush.msra.mxu3 %v2007_v29 }
 0x23b   : > { %v4685_v62 = vpop.f32.mrf.mxu0  ;;  %v4687_v22 = vpop.f32.mrf.mxu1 }
 0x23c   : > { %7241 = vst [vmem:[#allocation91_spill] sm:$0xff] %v4687_v22  ;;  %v1410_v21 = vpop.f32.mrf.mxu2  ;;  %v1523_v20 = vpop.f32.mrf.mxu3 }
 0x23d   : > { %v1411_v38 = vadd.f32 %v1410_v21, %v4661_v46 }
 0x23e   : > { %1638 = vmatmul.f32.gmra.mxu0 %v4118_v47  ;;  %1751 = vmatmul.f32.gmra.mxu1 %v4120_v48 }
 0x23f   : > { %v4692_v39 = vadd.f32 %v1523_v20, %v1411_v38  ;;  %v2053_v20 = vld [vmem:[#allocation5 + $0x2b0] sm:$0xff] }
 0x240   : > { %1460 = vmatmul.f32.gmra.mxu2 %v4302_v37  ;;  %1573 = vmatmul.f32.gmra.mxu3 %v4304_v40  ;;  %v2085_v38 = vld [vmem:[#allocation5 + $0x3b0] sm:$0xff] }
 0x241   : > { %7242 = vst [vmem:[#allocation92_spill] sm:$0xff] %v4692_v39  ;;  %2331 = vmatpush.msrb.mxu0 %v2053_v20  ;;  %2444 = vmatpush.msrb.mxu1 %v2085_v38 }
 0x243   : > { %v4696_v28 = vpop.f32.mrf.mxu0  ;;  %v4698_v6 = vpop.f32.mrf.mxu1 }
 0x244   : > { %7243 = vst [vmem:[#allocation93_spill] sm:$0xff] %v4698_v6  ;;  %v1413_v22 = vpop.f32.mrf.mxu2  ;;  %v1526_v21 = vpop.f32.mrf.mxu3 }
 0x245   : > { %v1414_v47 = vadd.f32 %v1413_v22, %v4661_v46 }
 0x246   : > { %1641 = vmatmul.f32.gmra.mxu0 %v4129_v56  ;;  %1754 = vmatmul.f32.gmra.mxu1 %v4131_v57 }
 0x247   : > { %v4703_v48 = vadd.f32 %v1526_v21, %v1414_v47  ;;  %v1973_v21 = vld [vmem:[#allocation5 + $0x30] sm:$0xff] }
 0x248   : > { %1463 = vmatmul.f32.gmra.mxu2 %v4315_v9  ;;  %1576 = vmatmul.f32.gmra.mxu3 %v4317_v14  ;;  %v2005_v47 = vld [vmem:[#allocation5 + $0x130] sm:$0xff] }
 0x249   : > { %7244 = vst [vmem:[#allocation94_spill] sm:$0xff] %v4703_v48  ;;  %2113 = vmatpush.msra.mxu2 %v1973_v21  ;;  %2226 = vmatpush.msra.mxu3 %v2005_v47 }
 0x24b   : > { %v4707_v26 = vpop.f32.mrf.mxu0  ;;  %v4709_v29 = vpop.f32.mrf.mxu1 }
 0x24c   : > { %7245 = vst [vmem:[#allocation95_spill] sm:$0xff] %v4709_v29  ;;  %v1416_v6 = vpop.f32.mrf.mxu2  ;;  %v1529_v22 = vpop.f32.mrf.mxu3 }
 0x24d   : > { %v1417_v56 = vadd.f32 %v1416_v6, %v4661_v46 }
 0x24e   : > { %1644 = vmatmul.f32.gmra.mxu0 %v4140_v1  ;;  %1757 = vmatmul.f32.gmra.mxu1 %v4142_v2 }
 0x24f   : > { %v4714_v57 = vadd.f32 %v1529_v22, %v1417_v56  ;;  %v2051_v22 = vld [vmem:[#allocation5 + $0x2a0] sm:$0xff] }
 0x250   : > { %1466 = vmatmul.f32.gmra.mxu2 %v4328_v54  ;;  %1579 = vmatmul.f32.gmra.mxu3 %v4330_v55  ;;  %v2083_v56 = vld [vmem:[#allocation5 + $0x3a0] sm:$0xff] }
 0x251   : > { %7246 = vst [vmem:[#allocation96_spill] sm:$0xff] %v4714_v57  ;;  %2332 = vmatpush.msrb.mxu0 %v2051_v22  ;;  %2445 = vmatpush.msrb.mxu1 %v2083_v56 }
 0x253   : > { %v4718_v20 = vpop.f32.mrf.mxu0  ;;  %v4720_v38 = vpop.f32.mrf.mxu1 }
 0x254   : > { %7247 = vst [vmem:[#allocation97_spill] sm:$0xff] %v4720_v38  ;;  %v1419_v29 = vpop.f32.mrf.mxu2  ;;  %v1532_v6 = vpop.f32.mrf.mxu3 }
 0x255   : > { %v1420_v1 = vadd.f32 %v1419_v29, %v4661_v46 }
 0x256   : > { %1647 = vmatmul.f32.gmra.mxu0 %v4151_v10  ;;  %1760 = vmatmul.f32.gmra.mxu1 %v4153_v13 }
 0x257   : > { %v4725_v2 = vadd.f32 %v1532_v6, %v1420_v1  ;;  %v1971_v6 = vld [vmem:[#allocation5 + $0x20] sm:$0xff] }
 0x258   : > { %1469 = vmatmul.f32.gmra.mxu2 %v4341_v49  ;;  %1582 = vmatmul.f32.gmra.mxu3 %v4343_v52  ;;  %v2003_v1 = vld [vmem:[#allocation5 + $0x120] sm:$0xff] }
 0x259   : > { %7248 = vst [vmem:[#allocation98_spill] sm:$0xff] %v4725_v2  ;;  %2114 = vmatpush.msra.mxu2 %v1971_v6  ;;  %2227 = vmatpush.msra.mxu3 %v2003_v1 }
 0x25b   : > { %v4729_v21 = vpop.f32.mrf.mxu0  ;;  %v4731_v47 = vpop.f32.mrf.mxu1 }
 0x25c   : > { %7249 = vst [vmem:[#allocation99_spill] sm:$0xff] %v4729_v21  ;;  %v1422_v38 = vpop.f32.mrf.mxu2  ;;  %v1535_v29 = vpop.f32.mrf.mxu3 }
 0x25d   : > { %7250 = vst [vmem:[#allocation100_spill] sm:$0xff] %v4731_v47  ;;  %v1423_v10 = vadd.f32 %v1422_v38, %v4661_v46 }
 0x25e   : > { %1650 = vmatmul.f32.gmra.mxu0 %v4162_v23  ;;  %1763 = vmatmul.f32.gmra.mxu1 %v4164_v24 }
 0x25f   : > { %v4736_v13 = vadd.f32 %v1535_v29, %v1423_v10  ;;  %v2049_v29 = vld [vmem:[#allocation5 + $0x290] sm:$0xff] }
 0x260   : > { %1472 = vmatmul.f32.gmra.mxu2 %v4354_v31  ;;  %1585 = vmatmul.f32.gmra.mxu3 %v4356_v32  ;;  %v2081_v10 = vld [vmem:[#allocation5 + $0x390] sm:$0xff] }
 0x261   : > { %7251 = vst [vmem:[#allocation101_spill] sm:$0xff] %v4736_v13  ;;  %2333 = vmatpush.msrb.mxu0 %v2049_v29  ;;  %2446 = vmatpush.msrb.mxu1 %v2081_v10  ;;  %v1969_v29 = vld [vmem:[#allocation5 + $0x10] sm:$0xff] }
 0x262   : > { %v2001_v10 = vld [vmem:[#allocation5 + $0x110] sm:$0xff]  ;;  %2115 = vmatpush.msra.mxu2 %v1969_v29  ;;  %v2047_v29 = vld [vmem:[#allocation5 + $0x280] sm:$0xff] }
 0x263   : > { %v4740_v22 = vpop.f32.mrf.mxu0  ;;  %v4742_v56 = vpop.f32.mrf.mxu1  ;;  %2228 = vmatpush.msra.mxu3 %v2001_v10  ;;  %v2079_v10 = vld [vmem:[#allocation5 + $0x380] sm:$0xff]  ;;  %2334 = vmatpush.msrb.mxu0 %v2047_v29 }
 0x264   : > { %7252 = vst [vmem:[#allocation102_spill] sm:$0xff] %v4740_v22  ;;  %v1425_v47 = vpop.f32.mrf.mxu2  ;;  %v1538_v38 = vpop.f32.mrf.mxu3  ;;  %2447 = vmatpush.msrb.mxu1 %v2079_v10  ;;  %v1967_v29 = vld [vmem:[#allocation5] sm:$0xff] }
 0x265   : > { %7253 = vst [vmem:[#allocation103_spill] sm:$0xff] %v4742_v56  ;;  %v1426_v23 = vadd.f32 %v1425_v47, %v4661_v46  ;;  %v1999_v10 = vld [vmem:[#allocation5 + $0x100] sm:$0xff]  ;;  %2116 = vmatpush.msra.mxu2 %v1967_v29  ;;  %v2045_v29 = vld [vmem:[#allocation5 + $0x270] sm:$0xff] }
 0x266   : > { %1653 = vmatmul.f32.gmra.mxu0 %v4173_v34  ;;  %1766 = vmatmul.f32.gmra.mxu1 %v7201_v11 }
 0x267   : > { %v4747_v24 = vadd.f32 %v1538_v38, %v1426_v23  ;;  %v7258_v38 = vld [vmem:[#allocation32_spill] sm:$0xff]  ;;  %v7259_v23 = vld [vmem:[#allocation33_spill] sm:$0xff]  ;;  %2229 = vmatpush.msra.mxu3 %v1999_v10  ;;  %2335 = vmatpush.msrb.mxu0 %v2045_v29  ;;  %v1998_v29 = vld [vmem:[#allocation5 + $0xf8] sm:$0xff] }
 0x268   : > { %1475 = vmatmul.f32.gmra.mxu2 %v4367_v17  ;;  %1588 = vmatmul.f32.gmra.mxu3 %v4369_v60  ;;  %v2077_v10 = vld [vmem:[#allocation5 + $0x370] sm:$0xff] }
 0x269   : > { %7254 = vst [vmem:[#allocation104_spill] sm:$0xff] %v4747_v24  ;;  %2448 = vmatpush.msrb.mxu1 %v2077_v10  ;;  %v2030_v10 = vld [vmem:[#allocation5 + $0x1f8] sm:$0xff]  ;;  %2553 = vmatpush.msrb.mxu2 %v1998_v29  ;;  %v2075_v29 = vld [vmem:[#allocation5 + $0x360] sm:$0xff]  ;;  %v7291_v24 = vld [vmem:[#allocation53_spill] sm:$0xff] }
 0x26a   : > { %2666 = vmatpush.msrb.mxu3 %v2030_v10  ;;  %v4818_v10 = vperm.slane %v4658_v59, 1 }
 0x26b   : > { %v4751_v6 = vpop.f32.mrf.mxu0  ;;  %v4753_v1 = vpop.f32.mrf.mxu1  ;;  %2449 = vmatpush.msrb.mxu1 %v2075_v29  ;;  %v2028_v29 = vld [vmem:[#allocation5 + $0x1e8] sm:$0xff] }
 0x26c   : > { %7255 = vst [vmem:[#allocation105_spill] sm:$0xff] %v4751_v6  ;;  %v1428_v56 = vpop.f32.mrf.mxu2  ;;  %v1541_v47 = vpop.f32.mrf.mxu3  ;;  %2667 = vmatpush.msrb.mxu3 %v2028_v29  ;;  %v1182_v21 = vadd.f32 %v7291_v24, %v4818_v10  ;;  %v7293_v29 = vld [vmem:[#allocation54_spill] sm:$0xff] }
 0x26d   : > { %7256 = vst [vmem:[#allocation106_spill] sm:$0xff] %v4753_v1  ;;  %v1429_v34 = vadd.f32 %v1428_v56, %v4661_v46 }
 0x26e   : > { %1656 = vmatmul.f32.gmra.mxu0 %v7205_v27  ;;  %1769 = vmatmul.f32.gmra.mxu1 %v7206_v3 }
 0x26f   : > { %v4758_v11 = vadd.f32 %v1541_v47, %v1429_v34  ;;  %v7263_v47 = vld [vmem:[#allocation35_spill] sm:$0xff]  ;;  %v7264_v34 = vld [vmem:[#allocation36_spill] sm:$0xff] }
 0x270   : > { %1478 = vmatmul.f32.gmra.mxu2 %v7258_v38  ;;  %1591 = vmatmul.f32.gmra.mxu3 %v7259_v23 }
 0x271   : > { %7257 = vst [vmem:[#allocation107_spill] sm:$0xff] %v4758_v11 }
 0x273   : > { %v4762_v6 = vpop.f32.mrf.mxu0  ;;  %v4764_v1 = vpop.f32.mrf.mxu1 }
 0x274   : > { %7260 = vst [vmem:[#allocation32_spill] sm:$0xff] %v4762_v6  ;;  %v1431_v22 = vpop.f32.mrf.mxu2  ;;  %v1544_v56 = vpop.f32.mrf.mxu3 }
 0x275   : > { %7261 = vst [vmem:[#allocation33_spill] sm:$0xff] %v4764_v1  ;;  %v1432_v27 = vadd.f32 %v1431_v22, %v4661_v46 }
 0x276   : > { %1659 = vmatmul.f32.gmra.mxu0 %v7210_v51  ;;  %1772 = vmatmul.f32.gmra.mxu1 %v7211_v12 }
 0x277   : > { %v4769_v3 = vadd.f32 %v1544_v56, %v1432_v27  ;;  %v7268_v56 = vld [vmem:[#allocation38_spill] sm:$0xff]  ;;  %v7269_v27 = vld [vmem:[#allocation39_spill] sm:$0xff] }
 0x278   : > { %1481 = vmatmul.f32.gmra.mxu2 %v7263_v47  ;;  %1594 = vmatmul.f32.gmra.mxu3 %v7264_v34 }
 0x279   : > { %7262 = vst [vmem:[#allocation108_spill] sm:$0xff] %v4769_v3 }
 0x27b   : > { %v4773_v6 = vpop.f32.mrf.mxu0  ;;  %v4775_v1 = vpop.f32.mrf.mxu1 }
 0x27c   : > { %7265 = vst [vmem:[#allocation35_spill] sm:$0xff] %v4773_v6  ;;  %v1434_v11 = vpop.f32.mrf.mxu2  ;;  %v1547_v22 = vpop.f32.mrf.mxu3 }
 0x27d   : > { %7266 = vst [vmem:[#allocation36_spill] sm:$0xff] %v4775_v1  ;;  %v1435_v51 = vadd.f32 %v1434_v11, %v4661_v46 }
 0x27e   : > { %1662 = vmatmul.f32.gmra.mxu0 %v7215_v50  ;;  %1775 = vmatmul.f32.gmra.mxu1 %v7216_v61 }
 0x27f   : > { %v4780_v12 = vadd.f32 %v1547_v22, %v1435_v51  ;;  %v7273_v22 = vld [vmem:[#allocation41_spill] sm:$0xff]  ;;  %v7274_v51 = vld [vmem:[#allocation42_spill] sm:$0xff] }
 0x280   : > { %1484 = vmatmul.f32.gmra.mxu2 %v7268_v56  ;;  %1597 = vmatmul.f32.gmra.mxu3 %v7269_v27 }
 0x281   : > { %7267 = vst [vmem:[#allocation109_spill] sm:$0xff] %v4780_v12 }
 0x283   : > { %v4784_v6 = vpop.f32.mrf.mxu0  ;;  %v4786_v1 = vpop.f32.mrf.mxu1 }
 0x284   : > { %7270 = vst [vmem:[#allocation38_spill] sm:$0xff] %v4784_v6  ;;  %v1437_v3 = vpop.f32.mrf.mxu2  ;;  %v1550_v11 = vpop.f32.mrf.mxu3 }
 0x285   : > { %7271 = vst [vmem:[#allocation39_spill] sm:$0xff] %v4786_v1  ;;  %v1438_v50 = vadd.f32 %v1437_v3, %v4661_v46 }
 0x286   : > { %1665 = vmatmul.f32.gmra.mxu0 %v7220_v25  ;;  %1778 = vmatmul.f32.gmra.mxu1 %v7221_v8 }
 0x287   : > { %v4791_v61 = vadd.f32 %v1550_v11, %v1438_v50  ;;  %v7278_v11 = vld [vmem:[#allocation44_spill] sm:$0xff]  ;;  %v7279_v50 = vld [vmem:[#allocation45_spill] sm:$0xff] }
 0x288   : > { %1487 = vmatmul.f32.gmra.mxu2 %v7273_v22  ;;  %1600 = vmatmul.f32.gmra.mxu3 %v7274_v51 }
 0x289   : > { %7272 = vst [vmem:[#allocation110_spill] sm:$0xff] %v4791_v61 }
 0x28b   : > { %v4795_v6 = vpop.f32.mrf.mxu0  ;;  %v4797_v1 = vpop.f32.mrf.mxu1 }
 0x28c   : > { %7275 = vst [vmem:[#allocation41_spill] sm:$0xff] %v4795_v6  ;;  %v1440_v12 = vpop.f32.mrf.mxu2  ;;  %v1553_v3 = vpop.f32.mrf.mxu3 }
 0x28d   : > { %7276 = vst [vmem:[#allocation42_spill] sm:$0xff] %v4797_v1  ;;  %v1441_v25 = vadd.f32 %v1440_v12, %v4661_v46 }
 0x28e   : > { %1668 = vmatmul.f32.gmra.mxu0 %v7225_v41  ;;  %1781 = vmatmul.f32.gmra.mxu1 %v7226_v35 }
 0x28f   : > { %v4802_v8 = vadd.f32 %v1553_v3, %v1441_v25  ;;  %v7283_v3 = vld [vmem:[#allocation47_spill] sm:$0xff] }
 0x290   : > { %1490 = vmatmul.f32.gmra.mxu2 %v7278_v11  ;;  %1603 = vmatmul.f32.gmra.mxu3 %v7279_v50  ;;  %v2043_v25 = vld [vmem:[#allocation5 + $0x260] sm:$0xff] }
 0x291   : > { %7277 = vst [vmem:[#allocation111_spill] sm:$0xff] %v4802_v8  ;;  %2336 = vmatpush.msrb.mxu0 %v2043_v25  ;;  %v1996_v25 = vld [vmem:[#allocation5 + $0xe8] sm:$0xff] }
 0x292   : > { %2554 = vmatpush.msrb.mxu2 %v1996_v25  ;;  %v2073_v25 = vld [vmem:[#allocation5 + $0x350] sm:$0xff] }
 0x293   : > { %v4806_v6 = vpop.f32.mrf.mxu0  ;;  %v4808_v1 = vpop.f32.mrf.mxu1  ;;  %2450 = vmatpush.msrb.mxu1 %v2073_v25  ;;  %v2026_v25 = vld [vmem:[#allocation5 + $0x1d8] sm:$0xff] }
 0x294   : > { %7280 = vst [vmem:[#allocation44_spill] sm:$0xff] %v4806_v6  ;;  %v1443_v61 = vpop.f32.mrf.mxu2  ;;  %v1556_v12 = vpop.f32.mrf.mxu3  ;;  %2668 = vmatpush.msrb.mxu3 %v2026_v25  ;;  %v2071_v25 = vld [vmem:[#allocation5 + $0x340] sm:$0xff] }
 0x295   : > { %7281 = vst [vmem:[#allocation45_spill] sm:$0xff] %v4808_v1  ;;  %v1444_v41 = vadd.f32 %v1443_v61, %v4661_v46  ;;  %2451 = vmatpush.msrb.mxu1 %v2071_v25  ;;  %v2024_v25 = vld [vmem:[#allocation5 + $0x1c8] sm:$0xff] }
 0x296   : > { %1671 = vmatmul.f32.gmra.mxu0 %v7230_v44  ;;  %1784 = vmatmul.f32.gmra.mxu1 %v7231_v45 }
 0x297   : > { %v4813_v35 = vadd.f32 %v1556_v12, %v1444_v41  ;;  %v7286_v12 = vld [vmem:[#allocation50_spill] sm:$0xff]  ;;  %2669 = vmatpush.msrb.mxu3 %v2024_v25  ;;  %v2069_v25 = vld [vmem:[#allocation5 + $0x330] sm:$0xff] }
 0x298   : > { %1493 = vmatmul.f32.gmra.mxu2 %v7283_v3  ;;  %1606 = vmatmul.f32.gmra.mxu3 %v4447_v19  ;;  %v1179_v41 = vadd.f32 %v7286_v12, %v4818_v10 }
 0x299   : > { %7282 = vst [vmem:[#allocation112_spill] sm:$0xff] %v4813_v35  ;;  %2452 = vmatpush.msrb.mxu1 %v2069_v25  ;;  %v2022_v25 = vld [vmem:[#allocation5 + $0x1b8] sm:$0xff] }
 0x29a   : > { %2670 = vmatpush.msrb.mxu3 %v2022_v25  ;;  %v2067_v25 = vld [vmem:[#allocation5 + $0x320] sm:$0xff] }
 0x29b   : > { %v4820_v1 = vpop.f32.mrf.mxu0  ;;  %v4822_v61 = vpop.f32.mrf.mxu1  ;;  %2453 = vmatpush.msrb.mxu1 %v2067_v25  ;;  %v2020_v25 = vld [vmem:[#allocation5 + $0x1a8] sm:$0xff] }
 0x29c   : > { %7284 = vst [vmem:[#allocation47_spill] sm:$0xff] %v4820_v1  ;;  %v1446_v44 = vpop.f32.mrf.mxu2  ;;  %v1559_v6 = vpop.f32.mrf.mxu3  ;;  %2671 = vmatpush.msrb.mxu3 %v2020_v25  ;;  %v2065_v25 = vld [vmem:[#allocation5 + $0x310] sm:$0xff] }
 0x29d   : > { %7285 = vst [vmem:[#allocation113_spill] sm:$0xff] %v4822_v61  ;;  %v1447_v45 = vadd.f32 %v1446_v44, %v4661_v46  ;;  %v7288_v61 = vld [vmem:[#allocation51_spill] sm:$0xff]  ;;  %2454 = vmatpush.msrb.mxu1 %v2065_v25  ;;  %v2018_v25 = vld [vmem:[#allocation5 + $0x198] sm:$0xff] }
 0x29e   : > { %1674 = vmatmul.f32.gmra.mxu0 %v4250_v63  ;;  %1787 = vmatmul.f32.gmra.mxu1 %v4252_v0  ;;  %v4834_v1 = vadd.f32 %v7288_v61, %v1179_v41  ;;  %v2041_v41 = vld [vmem:[#allocation5 + $0x250] sm:$0xff] }
 0x29f   : > { %v4829_v35 = vadd.f32 %v1559_v6, %v1447_v45  ;;  %v7290_v6 = vld [vmem:[#allocation24_spill] sm:$0xff]  ;;  %2337 = vmatpush.msrb.mxu0 %v2041_v41  ;;  %v1994_v41 = vld [vmem:[#allocation5 + $0xd8] sm:$0xff]  ;;  %2672 = vmatpush.msrb.mxu3 %v2018_v25  ;;  %v2063_v25 = vld [vmem:[#allocation5 + $0x300] sm:$0xff] }
 0x2a0   : > { %1496 = vmatmul.f32.gmra.mxu2 %v4458_v33  ;;  %1609 = vmatmul.f32.gmra.mxu3 %v4460_v36  ;;  %7289 = vst [vmem:[#allocation51_spill] sm:$0xff] %v4834_v1  ;;  %v6869_v45 = vmax.f32 %v7290_v6, 0.0  ;;  %v7295_v6 = vld [vmem:[#allocation25_spill] sm:$0xff] }
 0x2a1   : > { %7287 = vst [vmem:[#allocation50_spill] sm:$0xff] %v4829_v35  ;;  %v6871_v35 = vmax.f32 %v4834_v1, 0.0  ;;  %2555 = vmatpush.msrb.mxu2 %v1994_v41  ;;  %v2039_v41 = vld [vmem:[#allocation5 + $0x240] sm:$0xff]  ;;  %2455 = vmatpush.msrb.mxu1 %v2063_v25  ;;  %v2016_v25 = vld [vmem:[#allocation5 + $0x188] sm:$0xff] }
 0x2a2   : > { %2338 = vmatpush.msrb.mxu0 %v2039_v41  ;;  %v1992_v41 = vld [vmem:[#allocation5 + $0xc8] sm:$0xff]  ;;  %2673 = vmatpush.msrb.mxu3 %v2016_v25  ;;  %v2094_v25 = vld [vmem:[#allocation5 + $0x3f8] sm:$0xff] }
 0x2a3   : > { %v4836_v44 = vpop.f32.mrf.mxu0  ;;  %v4838_v12 = vpop.f32.mrf.mxu1  ;;  %2556 = vmatpush.msrb.mxu2 %v1992_v41  ;;  %v2037_v41 = vld [vmem:[#allocation5 + $0x230] sm:$0xff]  ;;  %2892 = vmatpush.msra.mxu1 %v2094_v25  ;;  %v2014_v25 = vld [vmem:[#allocation5 + $0x178] sm:$0xff] }
 0x2a4   : > { %v1449_v63 = vpop.f32.mrf.mxu2  ;;  %v1562_v8 = vpop.f32.mrf.mxu3  ;;  %2339 = vmatpush.msrb.mxu0 %v2037_v41  ;;  %v1990_v41 = vld [vmem:[#allocation5 + $0xb8] sm:$0xff]  ;;  %2674 = vmatpush.msrb.mxu3 %v2014_v25  ;;  %v2060_v25 = vld [vmem:[#allocation5 + $0x2e8] sm:$0xff] }
 0x2a5   : > { %v1450_v0 = vadd.f32 %v1449_v63, %v4661_v46  ;;  %v4854_v63 = vadd.f32 %v7293_v29, %v1182_v21  ;;  %v7298_v29 = vld [vmem:[#allocation57_spill] sm:$0xff]  ;;  %2557 = vmatpush.msrb.mxu2 %v1990_v41  ;;  %v2035_v41 = vld [vmem:[#allocation5 + $0x220] sm:$0xff] }
 0x2a6   : > { %1677 = vmatmul.f32.gmra.mxu0 %v4260_v15  ;;  %1790 = vmatmul.f32.gmra.mxu1 %v4262_v16 }
 0x2a7   : > { %v4847_v61 = vadd.f32 %v1562_v8, %v1450_v0  ;;  %7294 = vst [vmem:[#allocation54_spill] sm:$0xff] %v4854_v63  ;;  %v6876_v1 = vmax.f32 %v4854_v63, 0.0  ;;  %2340 = vmatpush.msrb.mxu0 %v2035_v41  ;;  %v1988_v41 = vld [vmem:[#allocation5 + $0xa8] sm:$0xff] }
 0x2a8   : > { %2117 = vmatmul.f32.vlgmr.msra.gmra.mxu2 %v6869_v45  ;;  %2230 = vmatmul.f32.vlgmr.msra.gmra.mxu3 %v6871_v35  ;;  %v6874_v45 = vmax.f32 %v7295_v6, 0.0  ;;  %v7296_v35 = vld [vmem:[#allocation56_spill] sm:$0xff]  ;;  %v7300_v6 = vld [vmem:[#allocation26_spill] sm:$0xff] }
 0x2a9   : > { %7292 = vst [vmem:[#allocation53_spill] sm:$0xff] %v4847_v61  ;;  %v1185_v61 = vadd.f32 %v7296_v35, %v4818_v10  ;;  %2558 = vmatpush.msrb.mxu2 %v1988_v41  ;;  %v2033_v41 = vld [vmem:[#allocation5 + $0x210] sm:$0xff] }
 0x2aa   : > { %2341 = vmatpush.msrb.mxu0 %v2033_v41  ;;  %v1986_v41 = vld [vmem:[#allocation5 + $0x98] sm:$0xff] }
 0x2ab   : > { %v4856_v24 = vpop.f32.mrf.mxu0  ;;  %v4858_v15 = vpop.f32.mrf.mxu1  ;;  %2559 = vmatpush.msrb.mxu2 %v1986_v41  ;;  %v2031_v41 = vld [vmem:[#allocation5 + $0x200] sm:$0xff] }
 0x2ac   : > { %v1452_v16 = vpop.f32.mrf.mxu2  ;;  %v1565_v8 = vpop.f32.mrf.mxu3  ;;  %2342 = vmatpush.msrb.mxu0 %v2031_v41  ;;  %v1984_v41 = vld [vmem:[#allocation5 + $0x88] sm:$0xff] }
 0x2ad   : > { %v1453_v0 = vadd.f32 %v1452_v16, %v4661_v46  ;;  %v4874_v16 = vadd.f32 %v7298_v29, %v1185_v61  ;;  %v7303_v29 = vld [vmem:[#allocation60_spill] sm:$0xff]  ;;  %2560 = vmatpush.msrb.mxu2 %v1984_v41  ;;  %v2062_v41 = vld [vmem:[#allocation5 + $0x2f8] sm:$0xff] }
 0x2ae   : > { %1680 = vmatmul.f32.gmra.mxu0 %v4276_v42  ;;  %1793 = vmatmul.f32.gmra.mxu1 %v4278_v43 }
 0x2af   : > { %v4867_v21 = vadd.f32 %v1565_v8, %v1453_v0  ;;  %7299 = vst [vmem:[#allocation57_spill] sm:$0xff] %v4874_v16  ;;  %v6881_v63 = vmax.f32 %v4874_v16, 0.0  ;;  %2779 = vmatpush.msra.mxu0 %v2062_v41  ;;  %v1982_v41 = vld [vmem:[#allocation5 + $0x78] sm:$0xff] }
 0x2b0   : > { %2120 = vmatmul.f32.gmra.mxu2 %v6874_v45  ;;  %2233 = vmatmul.f32.gmra.mxu3 %v6876_v1  ;;  %v6879_v45 = vmax.f32 %v7300_v6, 0.0  ;;  %v7301_v1 = vld [vmem:[#allocation59_spill] sm:$0xff] }
 0x2b1   : > { %7297 = vst [vmem:[#allocation56_spill] sm:$0xff] %v4867_v21  ;;  %v1188_v21 = vadd.f32 %v7301_v1, %v4818_v10  ;;  %v7305_v6 = vld [vmem:[#allocation27_spill] sm:$0xff]  ;;  %2561 = vmatpush.msrb.mxu2 %v1982_v41  ;;  %v5130_v41 = vperm.slane %v4658_v59, 3  ;;  %2780 = vmatpush.msra.mxu0 %v2060_v25  ;;  %v1227_v25 = vadd.f32 %v4644_v53, %v4818_v10 }
 0x2b3   : > { %v4876_v35 = vpop.f32.mrf.mxu0  ;;  %v4878_v42 = vpop.f32.mrf.mxu1  ;;  %v1631_v59 = vadd.f32 %v4836_v44, %v5130_v41  ;;  %v1980_v44 = vld [vmem:[#allocation5 + $0x68] sm:$0xff]  ;;  %v5162_v53 = vadd.f32 %v4646_v58, %v1227_v25  ;;  %v7370_v25 = vld [vmem:[#allocation86_spill] sm:$0xff] }
 0x2b4   : > { %v1455_v43 = vpop.f32.mrf.mxu2  ;;  %v1568_v8 = vpop.f32.mrf.mxu3  ;;  %2562 = vmatpush.msrb.mxu2 %v1980_v44  ;;  %v7369_v44 = vld [vmem:[#allocation55_spill] sm:$0xff] }
 0x2b5   : > { %v1456_v0 = vadd.f32 %v1455_v43, %v4661_v46  ;;  %v4894_v43 = vadd.f32 %v7303_v29, %v1188_v21  ;;  %v7308_v29 = vld [vmem:[#allocation63_spill] sm:$0xff]  ;;  %7368 = vst [vmem:[#allocation116_spill] sm:$0xff] %v5162_v53  ;;  %v6948_v58 = vmax.f32 %v5162_v53, 0.0 }
 0x2b6   : > { %1683 = vmatmul.f32.gmra.mxu0 %v4289_v4  ;;  %1796 = vmatmul.f32.gmra.mxu1 %v4291_v7 }
 0x2b7   : > { %v4887_v61 = vadd.f32 %v1568_v8, %v1456_v0  ;;  %7304 = vst [vmem:[#allocation60_spill] sm:$0xff] %v4894_v43  ;;  %v6886_v16 = vmax.f32 %v4894_v43, 0.0 }
 0x2b8   : > { %2123 = vmatmul.f32.gmra.mxu2 %v6879_v45  ;;  %2236 = vmatmul.f32.gmra.mxu3 %v6881_v63  ;;  %v6884_v45 = vmax.f32 %v7305_v6, 0.0  ;;  %v7306_v63 = vld [vmem:[#allocation62_spill] sm:$0xff]  ;;  %v7310_v6 = vld [vmem:[#allocation28_spill] sm:$0xff] }
 0x2b9   : > { %7302 = vst [vmem:[#allocation59_spill] sm:$0xff] %v4887_v61  ;;  %v1191_v61 = vadd.f32 %v7306_v63, %v4818_v10 }
 0x2bb   : > { %v4896_v1 = vpop.f32.mrf.mxu0  ;;  %v4898_v4 = vpop.f32.mrf.mxu1 }
 0x2bc   : > { %v1458_v7 = vpop.f32.mrf.mxu2  ;;  %v1571_v8 = vpop.f32.mrf.mxu3 }
 0x2bd   : > { %v1459_v0 = vadd.f32 %v1458_v7, %v4661_v46  ;;  %v4914_v7 = vadd.f32 %v7308_v29, %v1191_v61  ;;  %v7313_v29 = vld [vmem:[#allocation66_spill] sm:$0xff] }
 0x2be   : > { %1686 = vmatmul.f32.gmra.mxu0 %v4302_v37  ;;  %1799 = vmatmul.f32.gmra.mxu1 %v4304_v40 }
 0x2bf   : > { %v4907_v21 = vadd.f32 %v1571_v8, %v1459_v0  ;;  %7309 = vst [vmem:[#allocation63_spill] sm:$0xff] %v4914_v7  ;;  %v6891_v43 = vmax.f32 %v4914_v7, 0.0 }
 0x2c0   : > { %2126 = vmatmul.f32.gmra.mxu2 %v6884_v45  ;;  %2239 = vmatmul.f32.gmra.mxu3 %v6886_v16  ;;  %v6889_v45 = vmax.f32 %v7310_v6, 0.0  ;;  %v7311_v16 = vld [vmem:[#allocation65_spill] sm:$0xff] }
 0x2c1   : > { %7307 = vst [vmem:[#allocation62_spill] sm:$0xff] %v4907_v21  ;;  %v1194_v21 = vadd.f32 %v7311_v16, %v4818_v10  ;;  %v7315_v6 = vld [vmem:[#allocation29_spill] sm:$0xff] }
 0x2c3   : > { %v4916_v63 = vpop.f32.mrf.mxu0  ;;  %v4918_v37 = vpop.f32.mrf.mxu1 }
 0x2c4   : > { %v1461_v40 = vpop.f32.mrf.mxu2  ;;  %v1574_v8 = vpop.f32.mrf.mxu3 }
 0x2c5   : > { %v1462_v0 = vadd.f32 %v1461_v40, %v4661_v46  ;;  %v4934_v40 = vadd.f32 %v7313_v29, %v1194_v21  ;;  %v7318_v29 = vld [vmem:[#allocation69_spill] sm:$0xff] }
 0x2c6   : > { %1689 = vmatmul.f32.gmra.mxu0 %v4315_v9  ;;  %1802 = vmatmul.f32.gmra.mxu1 %v4317_v14 }
 0x2c7   : > { %v4927_v61 = vadd.f32 %v1574_v8, %v1462_v0  ;;  %7314 = vst [vmem:[#allocation66_spill] sm:$0xff] %v4934_v40  ;;  %v6896_v7 = vmax.f32 %v4934_v40, 0.0 }
 0x2c8   : > { %2129 = vmatmul.f32.gmra.mxu2 %v6889_v45  ;;  %2242 = vmatmul.f32.gmra.mxu3 %v6891_v43  ;;  %v6894_v45 = vmax.f32 %v7315_v6, 0.0  ;;  %v7316_v43 = vld [vmem:[#allocation68_spill] sm:$0xff]  ;;  %v7320_v6 = vld [vmem:[#allocation30_spill] sm:$0xff] }
 0x2c9   : > { %7312 = vst [vmem:[#allocation65_spill] sm:$0xff] %v4927_v61  ;;  %v1197_v61 = vadd.f32 %v7316_v43, %v4818_v10 }
 0x2cb   : > { %v4936_v16 = vpop.f32.mrf.mxu0  ;;  %v4938_v9 = vpop.f32.mrf.mxu1 }
 0x2cc   : > { %v1464_v14 = vpop.f32.mrf.mxu2  ;;  %v1577_v8 = vpop.f32.mrf.mxu3 }
 0x2cd   : > { %v1465_v0 = vadd.f32 %v1464_v14, %v4661_v46  ;;  %v4954_v14 = vadd.f32 %v7318_v29, %v1197_v61  ;;  %v7323_v29 = vld [vmem:[#allocation72_spill] sm:$0xff] }
 0x2ce   : > { %1692 = vmatmul.f32.gmra.mxu0 %v4328_v54  ;;  %1805 = vmatmul.f32.gmra.mxu1 %v4330_v55 }
 0x2cf   : > { %v4947_v21 = vadd.f32 %v1577_v8, %v1465_v0  ;;  %7319 = vst [vmem:[#allocation69_spill] sm:$0xff] %v4954_v14  ;;  %v6901_v40 = vmax.f32 %v4954_v14, 0.0 }
 0x2d0   : > { %2132 = vmatmul.f32.gmra.mxu2 %v6894_v45  ;;  %2245 = vmatmul.f32.gmra.mxu3 %v6896_v7  ;;  %v6899_v45 = vmax.f32 %v7320_v6, 0.0  ;;  %v7321_v7 = vld [vmem:[#allocation71_spill] sm:$0xff] }
 0x2d1   : > { %7317 = vst [vmem:[#allocation68_spill] sm:$0xff] %v4947_v21  ;;  %v1200_v21 = vadd.f32 %v7321_v7, %v4818_v10  ;;  %v7325_v6 = vld [vmem:[#allocation31_spill] sm:$0xff] }
 0x2d3   : > { %v4956_v43 = vpop.f32.mrf.mxu0  ;;  %v4958_v54 = vpop.f32.mrf.mxu1 }
 0x2d4   : > { %v1467_v55 = vpop.f32.mrf.mxu2  ;;  %v1580_v8 = vpop.f32.mrf.mxu3 }
 0x2d5   : > { %v1468_v0 = vadd.f32 %v1467_v55, %v4661_v46  ;;  %v4974_v55 = vadd.f32 %v7323_v29, %v1200_v21  ;;  %v7328_v29 = vld [vmem:[#allocation75_spill] sm:$0xff] }
 0x2d6   : > { %1695 = vmatmul.f32.gmra.mxu0 %v4341_v49  ;;  %1808 = vmatmul.f32.gmra.mxu1 %v4343_v52 }
 0x2d7   : > { %v4967_v61 = vadd.f32 %v1580_v8, %v1468_v0  ;;  %7324 = vst [vmem:[#allocation72_spill] sm:$0xff] %v4974_v55  ;;  %v6906_v14 = vmax.f32 %v4974_v55, 0.0 }
 0x2d8   : > { %2135 = vmatmul.f32.gmra.mxu2 %v6899_v45  ;;  %2248 = vmatmul.f32.gmra.mxu3 %v6901_v40  ;;  %v6904_v45 = vmax.f32 %v7325_v6, 0.0  ;;  %v7326_v40 = vld [vmem:[#allocation74_spill] sm:$0xff] }
 0x2d9   : > { %7322 = vst [vmem:[#allocation71_spill] sm:$0xff] %v4967_v61  ;;  %v1203_v61 = vadd.f32 %v7326_v40, %v4818_v10  ;;  %v7330_v6 = vld [vmem:[#allocation34_spill] sm:$0xff] }
 0x2db   : > { %v4976_v7 = vpop.f32.mrf.mxu0  ;;  %v4978_v49 = vpop.f32.mrf.mxu1 }
 0x2dc   : > { %v1470_v52 = vpop.f32.mrf.mxu2  ;;  %v1583_v8 = vpop.f32.mrf.mxu3 }
 0x2dd   : > { %v1471_v0 = vadd.f32 %v1470_v52, %v4661_v46  ;;  %v4994_v52 = vadd.f32 %v7328_v29, %v1203_v61  ;;  %v7333_v29 = vld [vmem:[#allocation77_spill] sm:$0xff] }
 0x2de   : > { %1698 = vmatmul.f32.gmra.mxu0 %v4354_v31  ;;  %1811 = vmatmul.f32.gmra.mxu1 %v4356_v32 }
 0x2df   : > { %v4987_v21 = vadd.f32 %v1583_v8, %v1471_v0  ;;  %7329 = vst [vmem:[#allocation75_spill] sm:$0xff] %v4994_v52  ;;  %v6911_v55 = vmax.f32 %v4994_v52, 0.0 }
 0x2e0   : > { %2138 = vmatmul.f32.gmra.mxu2 %v6904_v45  ;;  %2251 = vmatmul.f32.gmra.mxu3 %v6906_v14  ;;  %v6909_v45 = vmax.f32 %v7330_v6, 0.0  ;;  %v7331_v14 = vld [vmem:[#allocation11_spill] sm:$0xff]  ;;  %v7335_v6 = vld [vmem:[#allocation37_spill] sm:$0xff] }
 0x2e1   : > { %7327 = vst [vmem:[#allocation74_spill] sm:$0xff] %v4987_v21  ;;  %v1206_v21 = vadd.f32 %v7331_v14, %v4818_v10 }
 0x2e3   : > { %v4996_v40 = vpop.f32.mrf.mxu0  ;;  %v4998_v31 = vpop.f32.mrf.mxu1 }
 0x2e4   : > { %v1473_v32 = vpop.f32.mrf.mxu2  ;;  %v1586_v8 = vpop.f32.mrf.mxu3 }
 0x2e5   : > { %v1474_v0 = vadd.f32 %v1473_v32, %v4661_v46  ;;  %v5014_v32 = vadd.f32 %v7333_v29, %v1206_v21  ;;  %v7338_v29 = vld [vmem:[#allocation13_spill] sm:$0xff] }
 0x2e6   : > { %1701 = vmatmul.f32.gmra.mxu0 %v4367_v17  ;;  %1814 = vmatmul.f32.gmra.mxu1 %v4369_v60 }
 0x2e7   : > { %v5007_v61 = vadd.f32 %v1586_v8, %v1474_v0  ;;  %7334 = vst [vmem:[#allocation77_spill] sm:$0xff] %v5014_v32  ;;  %v6916_v52 = vmax.f32 %v5014_v32, 0.0 }
 0x2e8   : > { %2141 = vmatmul.f32.gmra.mxu2 %v6909_v45  ;;  %2254 = vmatmul.f32.gmra.mxu3 %v6911_v55  ;;  %v6914_v45 = vmax.f32 %v7335_v6, 0.0  ;;  %v7336_v55 = vld [vmem:[#allocation12_spill] sm:$0xff] }
 0x2e9   : > { %7332 = vst [vmem:[#allocation11_spill] sm:$0xff] %v5007_v61  ;;  %v1209_v61 = vadd.f32 %v7336_v55, %v4818_v10  ;;  %v7340_v6 = vld [vmem:[#allocation40_spill] sm:$0xff] }
 0x2eb   : > { %v5016_v14 = vpop.f32.mrf.mxu0  ;;  %v5018_v17 = vpop.f32.mrf.mxu1 }
 0x2ec   : > { %v1476_v60 = vpop.f32.mrf.mxu2  ;;  %v1589_v8 = vpop.f32.mrf.mxu3 }
 0x2ed   : > { %v1477_v0 = vadd.f32 %v1476_v60, %v4661_v46  ;;  %v5034_v60 = vadd.f32 %v7338_v29, %v1209_v61  ;;  %v7343_v29 = vld [vmem:[#allocation15_spill] sm:$0xff] }
 0x2ee   : > { %1704 = vmatmul.f32.gmra.mxu0 %v7258_v38  ;;  %1817 = vmatmul.f32.gmra.mxu1 %v7259_v23 }
 0x2ef   : > { %v5027_v21 = vadd.f32 %v1589_v8, %v1477_v0  ;;  %7339 = vst [vmem:[#allocation13_spill] sm:$0xff] %v5034_v60  ;;  %v6921_v32 = vmax.f32 %v5034_v60, 0.0 }
 0x2f0   : > { %2144 = vmatmul.f32.gmra.mxu2 %v6914_v45  ;;  %2257 = vmatmul.f32.gmra.mxu3 %v6916_v52  ;;  %v6919_v45 = vmax.f32 %v7340_v6, 0.0  ;;  %v7341_v52 = vld [vmem:[#allocation14_spill] sm:$0xff]  ;;  %v7345_v6 = vld [vmem:[#allocation43_spill] sm:$0xff] }
 0x2f1   : > { %7337 = vst [vmem:[#allocation12_spill] sm:$0xff] %v5027_v21  ;;  %v1212_v21 = vadd.f32 %v7341_v52, %v4818_v10 }
 0x2f3   : > { %v5036_v55 = vpop.f32.mrf.mxu0  ;;  %v5038_v38 = vpop.f32.mrf.mxu1 }
 0x2f4   : > { %v1479_v23 = vpop.f32.mrf.mxu2  ;;  %v1592_v8 = vpop.f32.mrf.mxu3 }
 0x2f5   : > { %v1480_v0 = vadd.f32 %v1479_v23, %v4661_v46  ;;  %v5054_v23 = vadd.f32 %v7343_v29, %v1212_v21  ;;  %v7348_v29 = vld [vmem:[#allocation17_spill] sm:$0xff] }
 0x2f6   : > { %1707 = vmatmul.f32.gmra.mxu0 %v7263_v47  ;;  %1820 = vmatmul.f32.gmra.mxu1 %v7264_v34 }
 0x2f7   : > { %v5047_v61 = vadd.f32 %v1592_v8, %v1480_v0  ;;  %7344 = vst [vmem:[#allocation15_spill] sm:$0xff] %v5054_v23  ;;  %v6926_v60 = vmax.f32 %v5054_v23, 0.0 }
 0x2f8   : > { %2147 = vmatmul.f32.gmra.mxu2 %v6919_v45  ;;  %2260 = vmatmul.f32.gmra.mxu3 %v6921_v32  ;;  %v6924_v45 = vmax.f32 %v7345_v6, 0.0  ;;  %v7346_v32 = vld [vmem:[#allocation16_spill] sm:$0xff]  ;;  %v7350_v6 = vld [vmem:[#allocation46_spill] sm:$0xff] }
 0x2f9   : > { %7342 = vst [vmem:[#allocation14_spill] sm:$0xff] %v5047_v61  ;;  %v1215_v61 = vadd.f32 %v7346_v32, %v4818_v10 }
 0x2fb   : > { %v5056_v52 = vpop.f32.mrf.mxu0  ;;  %v5058_v47 = vpop.f32.mrf.mxu1 }
 0x2fc   : > { %v1482_v34 = vpop.f32.mrf.mxu2  ;;  %v1595_v8 = vpop.f32.mrf.mxu3 }
 0x2fd   : > { %v1483_v0 = vadd.f32 %v1482_v34, %v4661_v46  ;;  %v5074_v34 = vadd.f32 %v7348_v29, %v1215_v61  ;;  %v7353_v29 = vld [vmem:[#allocation19_spill] sm:$0xff] }
 0x2fe   : > { %1710 = vmatmul.f32.gmra.mxu0 %v7268_v56  ;;  %1823 = vmatmul.f32.gmra.mxu1 %v7269_v27 }
 0x2ff   : > { %v5067_v21 = vadd.f32 %v1595_v8, %v1483_v0  ;;  %7349 = vst [vmem:[#allocation17_spill] sm:$0xff] %v5074_v34  ;;  %v6931_v23 = vmax.f32 %v5074_v34, 0.0 }
 0x300   : > { %2150 = vmatmul.f32.gmra.mxu2 %v6924_v45  ;;  %2263 = vmatmul.f32.gmra.mxu3 %v6926_v60  ;;  %v6929_v45 = vmax.f32 %v7350_v6, 0.0  ;;  %v7351_v60 = vld [vmem:[#allocation18_spill] sm:$0xff]  ;;  %v7355_v6 = vld [vmem:[#allocation48_spill] sm:$0xff] }
 0x301   : > { %7347 = vst [vmem:[#allocation16_spill] sm:$0xff] %v5067_v21  ;;  %v1218_v21 = vadd.f32 %v7351_v60, %v4818_v10 }
 0x303   : > { %v5076_v32 = vpop.f32.mrf.mxu0  ;;  %v5078_v56 = vpop.f32.mrf.mxu1 }
 0x304   : > { %v1485_v27 = vpop.f32.mrf.mxu2  ;;  %v1598_v8 = vpop.f32.mrf.mxu3 }
 0x305   : > { %v1486_v0 = vadd.f32 %v1485_v27, %v4661_v46  ;;  %v5094_v27 = vadd.f32 %v7353_v29, %v1218_v21  ;;  %v7358_v29 = vld [vmem:[#allocation21_spill] sm:$0xff] }
 0x306   : > { %1713 = vmatmul.f32.gmra.mxu0 %v7273_v22  ;;  %1826 = vmatmul.f32.gmra.mxu1 %v7274_v51 }
 0x307   : > { %v5087_v61 = vadd.f32 %v1598_v8, %v1486_v0  ;;  %7354 = vst [vmem:[#allocation19_spill] sm:$0xff] %v5094_v27  ;;  %v6936_v34 = vmax.f32 %v5094_v27, 0.0 }
 0x308   : > { %2153 = vmatmul.f32.gmra.mxu2 %v6929_v45  ;;  %2266 = vmatmul.f32.gmra.mxu3 %v6931_v23  ;;  %v6934_v45 = vmax.f32 %v7355_v6, 0.0  ;;  %v7356_v23 = vld [vmem:[#allocation20_spill] sm:$0xff]  ;;  %v7360_v6 = vld [vmem:[#allocation49_spill] sm:$0xff] }
 0x309   : > { %7352 = vst [vmem:[#allocation18_spill] sm:$0xff] %v5087_v61  ;;  %v1221_v61 = vadd.f32 %v7356_v23, %v4818_v10 }
 0x30b   : > { %v5096_v60 = vpop.f32.mrf.mxu0  ;;  %v5098_v22 = vpop.f32.mrf.mxu1 }
 0x30c   : > { %v1488_v51 = vpop.f32.mrf.mxu2  ;;  %v1601_v8 = vpop.f32.mrf.mxu3 }
 0x30d   : > { %v1489_v0 = vadd.f32 %v1488_v51, %v4661_v46  ;;  %v5114_v51 = vadd.f32 %v7358_v29, %v1221_v61  ;;  %v2092_v29 = vld [vmem:[#allocation5 + $0x3e8] sm:$0xff] }
 0x30e   : > { %1716 = vmatmul.f32.gmra.mxu0 %v7278_v11  ;;  %1829 = vmatmul.f32.gmra.mxu1 %v7279_v50 }
 0x30f   : > { %v5107_v21 = vadd.f32 %v1601_v8, %v1489_v0  ;;  %7359 = vst [vmem:[#allocation21_spill] sm:$0xff] %v5114_v51  ;;  %v6940_v27 = vmax.f32 %v5114_v51, 0.0  ;;  %2893 = vmatpush.msra.mxu1 %v2092_v29  ;;  %v7365_v51 = vld [vmem:[#allocation52_spill] sm:$0xff]  ;;  %v5155_v29 = vadd.f32 %v4838_v12, %v1631_v59  ;;  %v6945_v12 = vmax.f32 %v4670_v18, 0.0  ;;  %v2010_v18 = vld [vmem:[#allocation5 + $0x158] sm:$0xff] }
 0x310   : > { %2156 = vmatmul.f32.gmra.mxu2 %v6934_v45  ;;  %2269 = vmatmul.f32.gmra.mxu3 %v6936_v34  ;;  %v6938_v45 = vmax.f32 %v7360_v6, 0.0  ;;  %v7361_v34 = vld [vmem:[#allocation22_spill] sm:$0xff]  ;;  %v1634_v59 = vadd.f32 %v4856_v24, %v5130_v41  ;;  %v2095_v24 = vld [vmem:[%s6776_s6] sm:$0x3] }
 0x311   : > { %7357 = vst [vmem:[#allocation20_spill] sm:$0xff] %v5107_v21  ;;  %v1224_v21 = vadd.f32 %v7361_v34, %v4818_v10  ;;  %v7363_v34 = vld [vmem:[#allocation23_spill] sm:$0xff] }
 0x312   : > { %7367 = vst [vmem:[#allocation115_spill] sm:$0xff] %v5155_v29 }
 0x313   : > { %v5116_v23 = vpop.f32.mrf.mxu0  ;;  %v5118_v11 = vpop.f32.mrf.mxu1 }
 0x314   : > { %v1491_v50 = vpop.f32.mrf.mxu2  ;;  %v1604_v8 = vpop.f32.mrf.mxu3 }
 0x315   : > { %v1492_v0 = vadd.f32 %v1491_v50, %v4661_v46  ;;  %v5137_v50 = vadd.f32 %v7363_v34, %v1224_v21  ;;  %v2012_v34 = vld [vmem:[#allocation5 + $0x168] sm:$0xff] }
 0x316   : > { %1719 = vmatmul.f32.gmra.mxu0 %v7283_v3  ;;  %1832 = vmatmul.f32.gmra.mxu1 %v4447_v19 }
 0x317   : > { %v5127_v61 = vadd.f32 %v1604_v8, %v1492_v0  ;;  %7364 = vst [vmem:[#allocation23_spill] sm:$0xff] %v5137_v50  ;;  %v6942_v6 = vmax.f32 %v5137_v50, 0.0  ;;  %2675 = vmatpush.msrb.mxu3 %v2012_v34  ;;  %v6949_v34 = vmax.f32 %v7369_v44, 0.0 }
 0x318   : > { %2159 = vmatmul.f32.gmra.mxu2 %v6938_v45  ;;  %2272 = vmatmul.f32.gmra.mxu3 %v6940_v27  ;;  %v6943_v27 = vmax.f32 %v7365_v51, 0.0  ;;  %v2000_v51 = vld [vmem:[#allocation5 + $0x108] sm:$0xff] }
 0x319   : > { %7362 = vst [vmem:[#allocation22_spill] sm:$0xff] %v5127_v61  ;;  %2676 = vmatpush.msrb.mxu3 %v2010_v18  ;;  %v2076_v61 = vld [vmem:[#allocation5 + $0x368] sm:$0xff] }
 0x31b   : > { %v5139_v3 = vpop.f32.mrf.mxu0  ;;  %v5141_v19 = vpop.f32.mrf.mxu1 }
 0x31c   : > { %v1494_v8 = vpop.f32.mrf.mxu2  ;;  %v1607_v0 = vpop.f32.mrf.mxu3 }
 0x31d   : > { %v1495_v45 = vadd.f32 %v1494_v8, %v4661_v46 }
 0x31e   : > { %1722 = vmatmul.f32.gmra.mxu0 %v4458_v33  ;;  %1835 = vmatmul.f32.gmra.mxu1 %v4460_v36 }
 0x31f   : > { %v5152_v21 = vadd.f32 %v1607_v0, %v1495_v45  ;;  %v6946_v45 = vmax.f32 %v5155_v29, 0.0 }
 0x320   : > { %2162 = vmatmul.f32.gmra.mxu2 %v6943_v27  ;;  %2275 = vmatmul.f32.gmra.mxu3 %v6942_v6  ;;  %v1230_v27 = vadd.f32 %v7370_v25, %v4818_v10  ;;  %v2090_v25 = vld [vmem:[#allocation5 + $0x3d8] sm:$0xff] }
 0x321   : > { %7366 = vst [vmem:[#allocation114_spill] sm:$0xff] %v5152_v21  ;;  %2894 = vmatpush.msra.mxu1 %v2090_v25 }
 0x323   : > { %v5164_v33 = vpop.f32.mrf.mxu0  ;;  %v5166_v36 = vpop.f32.mrf.mxu1 }
 0x324   : > { %v1497_v8 = vpop.f32.mrf.mxu2  ;;  %v1610_v0 = vpop.f32.mrf.mxu3 }
 0x325   : > { %v1498_v6 = vadd.f32 %v1497_v8, %v4661_v46  ;;  %v5187_v46 = vadd.f32 %v4858_v15, %v1634_v59  ;;  %v2058_v8 = vld [vmem:[#allocation5 + $0x2d8] sm:$0xff]  ;;  %v6953_v15 = vmax.f32 %v4681_v30, 0.0  ;;  %v2080_v30 = vld [vmem:[#allocation5 + $0x388] sm:$0xff] }
 0x326   : > { %2343 = vmatmul.f32.vlgmr.msrb.gmra.mxu0 %v6945_v12  ;;  %2456 = vmatmul.f32.vlgmr.msrb.gmra.mxu1 %v6946_v45  ;;  %v5193_v12 = vperm.slane %v2095_v24, 0  ;;  %v7373_v45 = vld [vmem:[#allocation87_spill] sm:$0xff] }
 0x327   : > { %v5184_v50 = vadd.f32 %v1610_v0, %v1498_v6  ;;  %7372 = vst [vmem:[#allocation117_spill] sm:$0xff] %v5187_v46  ;;  %2781 = vmatpush.msra.mxu0 %v2058_v8  ;;  %v5196_v29 = vadd.f32 %v7373_v45, %v1230_v27  ;;  %v6957_v59 = vmax.f32 %v5187_v46, 0.0  ;;  %v7375_v8 = vld [vmem:[#allocation58_spill] sm:$0xff]  ;;  %v1233_v45 = vadd.f32 %v4674_v5, %v4818_v10  ;;  %v7377_v5 = vld [vmem:[#allocation89_spill] sm:$0xff] }
 0x328   : > { %2165 = vmatmul.f32.gmra.mxu2 %v6949_v34  ;;  %2278 = vmatmul.f32.gmra.mxu3 %v6948_v58  ;;  %v1637_v58 = vadd.f32 %v4876_v35, %v5130_v41  ;;  %v6955_v25 = vmax.f32 %v7375_v8, 0.0  ;;  %v2088_v8 = vld [vmem:[#allocation5 + $0x3c8] sm:$0xff] }
 0x329   : > { %7371 = vst [vmem:[#allocation86_spill] sm:$0xff] %v5184_v50  ;;  %v6956_v27 = vmax.f32 %v5196_v29, 0.0  ;;  %2895 = vmatpush.msra.mxu1 %v2088_v8  ;;  %v2078_v50 = vld [vmem:[#allocation5 + $0x378] sm:$0xff] }
 0x32a   : > { %7374 = vst [vmem:[#allocation87_spill] sm:$0xff] %v5196_v29  ;;  %v5218_v35 = vadd.f32 %v4878_v42, %v1637_v58  ;;  %v6960_v42 = vmax.f32 %v4692_v39, 0.0  ;;  %v2002_v39 = vld [vmem:[#allocation5 + $0x118] sm:$0xff] }
 0x32b   : > { %v5198_v6 = vpop.f32.mrf.mxu0  ;;  %v5200_v0 = vpop.f32.mrf.mxu1 }
 0x32c   : > { %v2118_v34 = vpop.f32.mrf.mxu2  ;;  %v2231_v53 = vpop.f32.mrf.mxu3  ;;  %7376 = vst [vmem:[#allocation118_spill] sm:$0xff] %v5218_v35  ;;  %v6964_v58 = vmax.f32 %v5218_v35, 0.0 }
 0x32d   : > { %v2119_v24 = vadd.f32 %v2118_v34, %v5193_v12  ;;  %v1978_v34 = vld [vmem:[#allocation5 + $0x58] sm:$0xff] }
 0x32e   : > { %2346 = vmatmul.f32.gmra.mxu0 %v6953_v15  ;;  %2459 = vmatmul.f32.gmra.mxu1 %v6957_v59  ;;  %v5225_v15 = vadd.f32 %v7377_v5, %v1233_v45  ;;  %v1236_v5 = vadd.f32 %v4685_v62, %v4818_v10  ;;  %v7381_v62 = vld [vmem:[#allocation91_spill] sm:$0xff] }
 0x32f   : > { %v5215_v44 = vadd.f32 %v2231_v53, %v2119_v24  ;;  %2563 = vmatpush.msrb.mxu2 %v1978_v34  ;;  %v1640_v24 = vadd.f32 %v4896_v1, %v5130_v41  ;;  %v7379_v34 = vld [vmem:[#allocation61_spill] sm:$0xff] }
 0x330   : > { %2168 = vmatmul.f32.gmra.mxu2 %v6955_v25  ;;  %2281 = vmatmul.f32.gmra.mxu3 %v6956_v27  ;;  %7378 = vst [vmem:[#allocation89_spill] sm:$0xff] %v5225_v15  ;;  %v6962_v18 = vmax.f32 %v7379_v34, 0.0  ;;  %v6963_v45 = vmax.f32 %v5225_v15, 0.0  ;;  %v2008_v34 = vld [vmem:[#allocation5 + $0x148] sm:$0xff] }
 0x331   : > { %v5247_v1 = vadd.f32 %v4898_v4, %v1640_v24  ;;  %v6967_v4 = vmax.f32 %v4703_v48, 0.0  ;;  %v1643_v24 = vadd.f32 %v4916_v63, %v5130_v41  ;;  %2677 = vmatpush.msrb.mxu3 %v2008_v34  ;;  %v2082_v48 = vld [vmem:[#allocation5 + $0x398] sm:$0xff] }
 0x333   : > { %v5227_v46 = vpop.f32.mrf.mxu0  ;;  %v5229_v53 = vpop.f32.mrf.mxu1  ;;  %7380 = vst [vmem:[#allocation119_spill] sm:$0xff] %v5247_v1  ;;  %v5276_v63 = vadd.f32 %v4918_v37, %v1643_v24  ;;  %v6974_v37 = vmax.f32 %v4714_v57, 0.0  ;;  %v1646_v24 = vadd.f32 %v4936_v16, %v5130_v41  ;;  %v2004_v57 = vld [vmem:[#allocation5 + $0x128] sm:$0xff] }
 0x334   : > { %v2121_v25 = vpop.f32.mrf.mxu2  ;;  %v2234_v27 = vpop.f32.mrf.mxu3 }
 0x335   : > { %v2122_v59 = vadd.f32 %v2121_v25, %v5193_v12  ;;  %v2056_v25 = vld [vmem:[#allocation5 + $0x2c8] sm:$0xff]  ;;  %7384 = vst [vmem:[#allocation120_spill] sm:$0xff] %v5276_v63  ;;  %v5305_v16 = vadd.f32 %v4938_v9, %v1646_v24  ;;  %v6981_v9 = vmax.f32 %v4725_v2, 0.0  ;;  %v1649_v24 = vadd.f32 %v4956_v43, %v5130_v41 }
 0x336   : > { %2349 = vmatmul.f32.gmra.mxu0 %v6960_v42  ;;  %2462 = vmatmul.f32.gmra.mxu1 %v6964_v58  ;;  %v5254_v42 = vadd.f32 %v7381_v62, %v1236_v5  ;;  %v1239_v62 = vadd.f32 %v4696_v28, %v4818_v10  ;;  %v7385_v28 = vld [vmem:[#allocation93_spill] sm:$0xff]  ;;  %v2084_v2 = vld [vmem:[#allocation5 + $0x3a8] sm:$0xff] }
 0x337   : > { %v5244_v29 = vadd.f32 %v2234_v27, %v2122_v59  ;;  %2782 = vmatpush.msra.mxu0 %v2056_v25  ;;  %v6971_v27 = vmax.f32 %v5247_v1, 0.0  ;;  %v7383_v25 = vld [vmem:[#allocation64_spill] sm:$0xff]  ;;  %7388 = vst [vmem:[#allocation121_spill] sm:$0xff] %v5305_v16  ;;  %v5334_v43 = vadd.f32 %v4958_v54, %v1649_v24  ;;  %v6989_v54 = vmax.f32 %v4736_v13, 0.0 }
 0x338   : > { %2171 = vmatmul.f32.gmra.mxu2 %v6962_v18  ;;  %2284 = vmatmul.f32.gmra.mxu3 %v6963_v45  ;;  %7382 = vst [vmem:[#allocation91_spill] sm:$0xff] %v5254_v42  ;;  %v6969_v8 = vmax.f32 %v7383_v25, 0.0  ;;  %v6970_v5 = vmax.f32 %v5254_v42, 0.0  ;;  %v2086_v25 = vld [vmem:[#allocation5 + $0x3b8] sm:$0xff]  ;;  %v1652_v24 = vadd.f32 %v4976_v7, %v5130_v41 }
 0x339   : > { %2896 = vmatpush.msra.mxu1 %v2086_v25  ;;  %7392 = vst [vmem:[#allocation122_spill] sm:$0xff] %v5334_v43 }
 0x33a   : > { %v5363_v7 = vadd.f32 %v4978_v49, %v1652_v24 }
 0x33b   : > { %v5256_v35 = vpop.f32.mrf.mxu0  ;;  %v5258_v59 = vpop.f32.mrf.mxu1  ;;  %2897 = vmatpush.msra.mxu1 %v2084_v2 }
 0x33c   : > { %v2124_v18 = vpop.f32.mrf.mxu2  ;;  %v2237_v45 = vpop.f32.mrf.mxu3  ;;  %v7001_v24 = vmax.f32 %v5363_v7, 0.0 }
 0x33d   : > { %v2125_v58 = vadd.f32 %v2124_v18, %v5193_v12  ;;  %v1976_v18 = vld [vmem:[#allocation5 + $0x48] sm:$0xff]  ;;  %2898 = vmatpush.msra.mxu1 %v2082_v48 }
 0x33e   : > { %2352 = vmatmul.f32.gmra.mxu0 %v6967_v4  ;;  %2465 = vmatmul.f32.gmra.mxu1 %v6971_v27  ;;  %v5283_v4 = vadd.f32 %v7385_v28, %v1239_v62  ;;  %v1242_v28 = vadd.f32 %v4707_v26, %v4818_v10  ;;  %v7389_v26 = vld [vmem:[#allocation95_spill] sm:$0xff] }
 0x33f   : > { %v5273_v15 = vadd.f32 %v2237_v45, %v2125_v58  ;;  %2564 = vmatpush.msrb.mxu2 %v1976_v18  ;;  %v6978_v45 = vmax.f32 %v5276_v63, 0.0  ;;  %v7387_v18 = vld [vmem:[#allocation67_spill] sm:$0xff]  ;;  %2899 = vmatpush.msra.mxu1 %v2080_v30 }
 0x340   : > { %2174 = vmatmul.f32.gmra.mxu2 %v6969_v8  ;;  %2287 = vmatmul.f32.gmra.mxu3 %v6970_v5  ;;  %7386 = vst [vmem:[#allocation93_spill] sm:$0xff] %v5283_v4  ;;  %v6976_v34 = vmax.f32 %v7387_v18, 0.0  ;;  %v6977_v62 = vmax.f32 %v5283_v4, 0.0  ;;  %v2006_v18 = vld [vmem:[#allocation5 + $0x138] sm:$0xff] }
 0x341   : > { %2678 = vmatpush.msrb.mxu3 %v2006_v18  ;;  %2900 = vmatpush.msra.mxu1 %v2078_v50 }
 0x343   : > { %v5285_v1 = vpop.f32.mrf.mxu0  ;;  %v5287_v58 = vpop.f32.mrf.mxu1  ;;  %2679 = vmatpush.msrb.mxu3 %v2004_v57  ;;  %2901 = vmatpush.msra.mxu1 %v2076_v61 }
 0x344   : > { %v2127_v8 = vpop.f32.mrf.mxu2  ;;  %v2240_v5 = vpop.f32.mrf.mxu3 }
 0x345   : > { %v2128_v27 = vadd.f32 %v2127_v8, %v5193_v12  ;;  %v2054_v8 = vld [vmem:[#allocation5 + $0x2b8] sm:$0xff]  ;;  %2680 = vmatpush.msrb.mxu3 %v2002_v39 }
 0x346   : > { %2355 = vmatmul.f32.gmra.mxu0 %v6974_v37  ;;  %2468 = vmatmul.f32.gmra.mxu1 %v6978_v45  ;;  %v5312_v37 = vadd.f32 %v7389_v26, %v1242_v28  ;;  %v1245_v26 = vadd.f32 %v4718_v20, %v4818_v10  ;;  %v7393_v20 = vld [vmem:[#allocation97_spill] sm:$0xff] }
 0x347   : > { %v5302_v42 = vadd.f32 %v2240_v5, %v2128_v27  ;;  %2783 = vmatpush.msra.mxu0 %v2054_v8  ;;  %v6985_v5 = vmax.f32 %v5305_v16, 0.0  ;;  %v7391_v8 = vld [vmem:[#allocation70_spill] sm:$0xff]  ;;  %2681 = vmatpush.msrb.mxu3 %v2000_v51 }
 0x348   : > { %2177 = vmatmul.f32.gmra.mxu2 %v6976_v34  ;;  %2290 = vmatmul.f32.gmra.mxu3 %v6977_v62  ;;  %7390 = vst [vmem:[#allocation95_spill] sm:$0xff] %v5312_v37  ;;  %v6983_v25 = vmax.f32 %v7391_v8, 0.0  ;;  %v6984_v28 = vmax.f32 %v5312_v37, 0.0 }
 0x34b   : > { %v5314_v63 = vpop.f32.mrf.mxu0  ;;  %v5316_v27 = vpop.f32.mrf.mxu1 }
 0x34c   : > { %v2130_v34 = vpop.f32.mrf.mxu2  ;;  %v2243_v62 = vpop.f32.mrf.mxu3 }
 0x34d   : > { %v2131_v45 = vadd.f32 %v2130_v34, %v5193_v12  ;;  %v1974_v34 = vld [vmem:[#allocation5 + $0x38] sm:$0xff] }
 0x34e   : > { %2358 = vmatmul.f32.gmra.mxu0 %v6981_v9  ;;  %2471 = vmatmul.f32.gmra.mxu1 %v6985_v5  ;;  %v5341_v9 = vadd.f32 %v7393_v20, %v1245_v26  ;;  %v7396_v20 = vld [vmem:[#allocation99_spill] sm:$0xff] }
 0x34f   : > { %v5331_v4 = vadd.f32 %v2243_v62, %v2131_v45  ;;  %2565 = vmatpush.msrb.mxu2 %v1974_v34  ;;  %v6992_v62 = vmax.f32 %v5334_v43, 0.0  ;;  %v7395_v34 = vld [vmem:[#allocation73_spill] sm:$0xff]  ;;  %v1248_v37 = vadd.f32 %v7396_v20, %v4818_v10  ;;  %7397 = vst [vmem:[#allocation99_spill] sm:$0xff] %v5363_v7  ;;  %v7398_v20 = vld [vmem:[#allocation100_spill] sm:$0xff] }
 0x350   : > { %2180 = vmatmul.f32.gmra.mxu2 %v6983_v25  ;;  %2293 = vmatmul.f32.gmra.mxu3 %v6984_v28  ;;  %7394 = vst [vmem:[#allocation97_spill] sm:$0xff] %v5341_v9  ;;  %v6991_v18 = vmax.f32 %v7395_v34, 0.0  ;;  %v6993_v26 = vmax.f32 %v5341_v9, 0.0 }
 0x353   : > { %v5343_v16 = vpop.f32.mrf.mxu0  ;;  %v5345_v45 = vpop.f32.mrf.mxu1 }
 0x354   : > { %v2133_v25 = vpop.f32.mrf.mxu2  ;;  %v2246_v28 = vpop.f32.mrf.mxu3 }
 0x355   : > { %v2134_v5 = vadd.f32 %v2133_v25, %v5193_v12  ;;  %v2052_v25 = vld [vmem:[#allocation5 + $0x2a8] sm:$0xff] }
 0x356   : > { %2361 = vmatmul.f32.gmra.mxu0 %v6989_v54  ;;  %2474 = vmatmul.f32.gmra.mxu1 %v6992_v62  ;;  %v5370_v54 = vadd.f32 %v7398_v20, %v1248_v37  ;;  %v7402_v20 = vld [vmem:[#allocation102_spill] sm:$0xff] }
 0x357   : > { %v5360_v8 = vadd.f32 %v2246_v28, %v2134_v5  ;;  %2784 = vmatpush.msra.mxu0 %v2052_v25  ;;  %v7400_v28 = vld [vmem:[#allocation104_spill] sm:$0xff]  ;;  %v1251_v34 = vadd.f32 %v7402_v20, %v4818_v10  ;;  %v7404_v20 = vld [vmem:[#allocation103_spill] sm:$0xff] }
 0x358   : > { %2183 = vmatmul.f32.gmra.mxu2 %v6991_v18  ;;  %2296 = vmatmul.f32.gmra.mxu3 %v6993_v26  ;;  %7399 = vst [vmem:[#allocation100_spill] sm:$0xff] %v5370_v54  ;;  %v6998_v49 = vmax.f32 %v7400_v28, 0.0  ;;  %v1655_v18 = vadd.f32 %v4996_v40, %v5130_v41  ;;  %v7401_v25 = vld [vmem:[#allocation76_spill] sm:$0xff]  ;;  %v7002_v37 = vmax.f32 %v5370_v54, 0.0 }
 0x359   : > { %v7000_v2 = vmax.f32 %v7401_v25, 0.0 }
 0x35a   : > { %v5392_v40 = vadd.f32 %v4998_v31, %v1655_v18 }
 0x35b   : > { %v5372_v43 = vpop.f32.mrf.mxu0  ;;  %v5374_v5 = vpop.f32.mrf.mxu1 }
 0x35c   : > { %v2136_v62 = vpop.f32.mrf.mxu2  ;;  %v2249_v26 = vpop.f32.mrf.mxu3  ;;  %7403 = vst [vmem:[#allocation102_spill] sm:$0xff] %v5392_v40  ;;  %v7010_v18 = vmax.f32 %v5392_v40, 0.0 }
 0x35d   : > { %v2137_v9 = vadd.f32 %v2136_v62, %v5193_v12  ;;  %v1972_v62 = vld [vmem:[#allocation5 + $0x28] sm:$0xff] }
 0x35e   : > { %2364 = vmatmul.f32.gmra.mxu0 %v6998_v49  ;;  %2477 = vmatmul.f32.gmra.mxu1 %v7001_v24  ;;  %v5399_v49 = vadd.f32 %v7404_v20, %v1251_v34  ;;  %v7408_v20 = vld [vmem:[#allocation105_spill] sm:$0xff] }
 0x35f   : > { %v5389_v13 = vadd.f32 %v2249_v26, %v2137_v9  ;;  %2566 = vmatpush.msrb.mxu2 %v1972_v62  ;;  %v7406_v26 = vld [vmem:[#allocation107_spill] sm:$0xff]  ;;  %v7407_v62 = vld [vmem:[#allocation78_spill] sm:$0xff]  ;;  %v1254_v25 = vadd.f32 %v7408_v20, %v4818_v10 }
 0x360   : > { %2186 = vmatmul.f32.gmra.mxu2 %v7000_v2  ;;  %2299 = vmatmul.f32.gmra.mxu3 %v7002_v37  ;;  %7405 = vst [vmem:[#allocation103_spill] sm:$0xff] %v5399_v49  ;;  %v7007_v31 = vmax.f32 %v7406_v26, 0.0  ;;  %v1658_v2 = vadd.f32 %v5016_v14, %v5130_v41  ;;  %v7009_v57 = vmax.f32 %v7407_v62, 0.0  ;;  %v7011_v34 = vmax.f32 %v5399_v49, 0.0  ;;  %v7410_v20 = vld [vmem:[#allocation106_spill] sm:$0xff] }
 0x362   : > { %v5421_v14 = vadd.f32 %v5018_v17, %v1658_v2 }
 0x363   : > { %v5401_v7 = vpop.f32.mrf.mxu0  ;;  %v5403_v9 = vpop.f32.mrf.mxu1 }
 0x364   : > { %v2139_v24 = vpop.f32.mrf.mxu2  ;;  %v2252_v37 = vpop.f32.mrf.mxu3  ;;  %7409 = vst [vmem:[#allocation105_spill] sm:$0xff] %v5421_v14  ;;  %v7019_v2 = vmax.f32 %v5421_v14, 0.0 }
 0x365   : > { %v2140_v54 = vadd.f32 %v2139_v24, %v5193_v12  ;;  %v2050_v24 = vld [vmem:[#allocation5 + $0x298] sm:$0xff] }
 0x366   : > { %2367 = vmatmul.f32.gmra.mxu0 %v7007_v31  ;;  %2480 = vmatmul.f32.gmra.mxu1 %v7010_v18  ;;  %v5428_v31 = vadd.f32 %v7410_v20, %v1254_v25  ;;  %v7414_v20 = vld [vmem:[#allocation32_spill] sm:$0xff] }
 0x367   : > { %v5418_v28 = vadd.f32 %v2252_v37, %v2140_v54  ;;  %2785 = vmatpush.msra.mxu0 %v2050_v24  ;;  %v7412_v37 = vld [vmem:[#allocation108_spill] sm:$0xff]  ;;  %v7413_v24 = vld [vmem:[#allocation79_spill] sm:$0xff]  ;;  %v1257_v62 = vadd.f32 %v7414_v20, %v4818_v10  ;;  %v7416_v20 = vld [vmem:[#allocation33_spill] sm:$0xff] }
 0x368   : > { %2189 = vmatmul.f32.gmra.mxu2 %v7009_v57  ;;  %2302 = vmatmul.f32.gmra.mxu3 %v7011_v34  ;;  %7411 = vst [vmem:[#allocation106_spill] sm:$0xff] %v5428_v31  ;;  %v7016_v17 = vmax.f32 %v7412_v37, 0.0  ;;  %v1661_v57 = vadd.f32 %v5036_v55, %v5130_v41  ;;  %v7018_v48 = vmax.f32 %v7413_v24, 0.0  ;;  %v7020_v25 = vmax.f32 %v5428_v31, 0.0 }
 0x36a   : > { %v5450_v55 = vadd.f32 %v5038_v38, %v1661_v57 }
 0x36b   : > { %v5430_v40 = vpop.f32.mrf.mxu0  ;;  %v5432_v54 = vpop.f32.mrf.mxu1 }
 0x36c   : > { %v2142_v18 = vpop.f32.mrf.mxu2  ;;  %v2255_v34 = vpop.f32.mrf.mxu3  ;;  %7415 = vst [vmem:[#allocation32_spill] sm:$0xff] %v5450_v55  ;;  %v7028_v57 = vmax.f32 %v5450_v55, 0.0 }
 0x36d   : > { %v2143_v49 = vadd.f32 %v2142_v18, %v5193_v12  ;;  %v1970_v18 = vld [vmem:[#allocation5 + $0x18] sm:$0xff] }
 0x36e   : > { %2370 = vmatmul.f32.gmra.mxu0 %v7016_v17  ;;  %2483 = vmatmul.f32.gmra.mxu1 %v7019_v2  ;;  %v5457_v17 = vadd.f32 %v7416_v20, %v1257_v62  ;;  %v7420_v20 = vld [vmem:[#allocation35_spill] sm:$0xff] }
 0x36f   : > { %v5447_v26 = vadd.f32 %v2255_v34, %v2143_v49  ;;  %2567 = vmatpush.msrb.mxu2 %v1970_v18  ;;  %v7418_v34 = vld [vmem:[#allocation109_spill] sm:$0xff]  ;;  %v7419_v18 = vld [vmem:[#allocation80_spill] sm:$0xff]  ;;  %v1260_v24 = vadd.f32 %v7420_v20, %v4818_v10 }
 0x370   : > { %2192 = vmatmul.f32.gmra.mxu2 %v7018_v48  ;;  %2305 = vmatmul.f32.gmra.mxu3 %v7020_v25  ;;  %7417 = vst [vmem:[#allocation33_spill] sm:$0xff] %v5457_v17  ;;  %v7025_v38 = vmax.f32 %v7418_v34, 0.0  ;;  %v1664_v48 = vadd.f32 %v5056_v52, %v5130_v41  ;;  %v7027_v39 = vmax.f32 %v7419_v18, 0.0  ;;  %v7029_v62 = vmax.f32 %v5457_v17, 0.0  ;;  %v7422_v20 = vld [vmem:[#allocation36_spill] sm:$0xff] }
 0x372   : > { %v5479_v52 = vadd.f32 %v5058_v47, %v1664_v48 }
 0x373   : > { %v5459_v14 = vpop.f32.mrf.mxu0  ;;  %v5461_v49 = vpop.f32.mrf.mxu1 }
 0x374   : > { %v2145_v2 = vpop.f32.mrf.mxu2  ;;  %v2258_v25 = vpop.f32.mrf.mxu3  ;;  %7421 = vst [vmem:[#allocation35_spill] sm:$0xff] %v5479_v52  ;;  %v7037_v48 = vmax.f32 %v5479_v52, 0.0 }
 0x375   : > { %v2146_v31 = vadd.f32 %v2145_v2, %v5193_v12  ;;  %v2048_v2 = vld [vmem:[#allocation5 + $0x288] sm:$0xff] }
 0x376   : > { %2373 = vmatmul.f32.gmra.mxu0 %v7025_v38  ;;  %2486 = vmatmul.f32.gmra.mxu1 %v7028_v57  ;;  %v5486_v38 = vadd.f32 %v7422_v20, %v1260_v24  ;;  %v7426_v20 = vld [vmem:[#allocation38_spill] sm:$0xff] }
 0x377   : > { %v5476_v37 = vadd.f32 %v2258_v25, %v2146_v31  ;;  %2786 = vmatpush.msra.mxu0 %v2048_v2  ;;  %v7424_v25 = vld [vmem:[#allocation110_spill] sm:$0xff]  ;;  %v7425_v2 = vld [vmem:[#allocation81_spill] sm:$0xff]  ;;  %v1263_v18 = vadd.f32 %v7426_v20, %v4818_v10  ;;  %v7428_v20 = vld [vmem:[#allocation39_spill] sm:$0xff] }
 0x378   : > { %2195 = vmatmul.f32.gmra.mxu2 %v7027_v39  ;;  %2308 = vmatmul.f32.gmra.mxu3 %v7029_v62  ;;  %7423 = vst [vmem:[#allocation36_spill] sm:$0xff] %v5486_v38  ;;  %v7034_v47 = vmax.f32 %v7424_v25, 0.0  ;;  %v1667_v39 = vadd.f32 %v5076_v32, %v5130_v41  ;;  %v7036_v30 = vmax.f32 %v7425_v2, 0.0  ;;  %v7038_v24 = vmax.f32 %v5486_v38, 0.0 }
 0x37a   : > { %v5508_v32 = vadd.f32 %v5078_v56, %v1667_v39 }
 0x37b   : > { %v5488_v55 = vpop.f32.mrf.mxu0  ;;  %v5490_v31 = vpop.f32.mrf.mxu1 }
 0x37c   : > { %v2148_v57 = vpop.f32.mrf.mxu2  ;;  %v2261_v62 = vpop.f32.mrf.mxu3  ;;  %7427 = vst [vmem:[#allocation38_spill] sm:$0xff] %v5508_v32  ;;  %v7046_v39 = vmax.f32 %v5508_v32, 0.0 }
 0x37d   : > { %v2149_v17 = vadd.f32 %v2148_v57, %v5193_v12  ;;  %v1968_v57 = vld [vmem:[#allocation5 + $0x8] sm:$0xff] }
 0x37e   : > { %2376 = vmatmul.f32.gmra.mxu0 %v7034_v47  ;;  %2489 = vmatmul.f32.gmra.mxu1 %v7037_v48  ;;  %v5515_v47 = vadd.f32 %v7428_v20, %v1263_v18  ;;  %v7432_v20 = vld [vmem:[#allocation41_spill] sm:$0xff] }
 0x37f   : > { %v5505_v34 = vadd.f32 %v2261_v62, %v2149_v17  ;;  %2568 = vmatpush.msrb.mxu2 %v1968_v57  ;;  %v7430_v62 = vld [vmem:[#allocation111_spill] sm:$0xff]  ;;  %v7431_v57 = vld [vmem:[#allocation82_spill] sm:$0xff]  ;;  %v1266_v2 = vadd.f32 %v7432_v20, %v4818_v10 }
 0x380   : > { %2198 = vmatmul.f32.gmra.mxu2 %v7036_v30  ;;  %2311 = vmatmul.f32.gmra.mxu3 %v7038_v24  ;;  %7429 = vst [vmem:[#allocation39_spill] sm:$0xff] %v5515_v47  ;;  %v7043_v56 = vmax.f32 %v7430_v62, 0.0  ;;  %v1670_v30 = vadd.f32 %v5096_v60, %v5130_v41  ;;  %v7045_v51 = vmax.f32 %v7431_v57, 0.0  ;;  %v7047_v18 = vmax.f32 %v5515_v47, 0.0  ;;  %v7434_v20 = vld [vmem:[#allocation42_spill] sm:$0xff] }
 0x382   : > { %v5537_v60 = vadd.f32 %v5098_v22, %v1670_v30 }
 0x383   : > { %v5517_v52 = vpop.f32.mrf.mxu0  ;;  %v5519_v17 = vpop.f32.mrf.mxu1 }
 0x384   : > { %v2151_v48 = vpop.f32.mrf.mxu2  ;;  %v2264_v24 = vpop.f32.mrf.mxu3  ;;  %7433 = vst [vmem:[#allocation41_spill] sm:$0xff] %v5537_v60  ;;  %v7053_v30 = vmax.f32 %v5537_v60, 0.0 }
 0x385   : > { %v2152_v38 = vadd.f32 %v2151_v48, %v5193_v12  ;;  %v2046_v48 = vld [vmem:[#allocation5 + $0x278] sm:$0xff] }
 0x386   : > { %2379 = vmatmul.f32.gmra.mxu0 %v7043_v56  ;;  %2492 = vmatmul.f32.gmra.mxu1 %v7046_v39  ;;  %v5544_v56 = vadd.f32 %v7434_v20, %v1266_v2  ;;  %v7438_v20 = vld [vmem:[#allocation44_spill] sm:$0xff] }
 0x387   : > { %v5534_v25 = vadd.f32 %v2264_v24, %v2152_v38  ;;  %2787 = vmatpush.msra.mxu0 %v2046_v48  ;;  %v7436_v24 = vld [vmem:[#allocation112_spill] sm:$0xff]  ;;  %v7437_v48 = vld [vmem:[#allocation83_spill] sm:$0xff]  ;;  %v1269_v57 = vadd.f32 %v7438_v20, %v4818_v10  ;;  %v5580_v20 = vld [vmem:[%s6777_s7 + $0xf8] sm:$0xff] }
 0x388   : > { %2201 = vmatmul.f32.gmra.mxu2 %v7045_v51  ;;  %2314 = vmatmul.f32.gmra.mxu3 %v7047_v18  ;;  %7435 = vst [vmem:[#allocation42_spill] sm:$0xff] %v5544_v56  ;;  %v7054_v22 = vmax.f32 %v7436_v24, 0.0  ;;  %v1673_v51 = vadd.f32 %v5116_v23, %v5130_v41  ;;  %v7052_v50 = vmax.f32 %v7437_v48, 0.0  ;;  %v7051_v2 = vmax.f32 %v5544_v56, 0.0  ;;  %v7445_v24 = vld [vmem:[#allocation84_spill] sm:$0xff] }
 0x389   : > { %3661 = vmatpush.msra.mxu3 %v5580_v20  ;;  %v7062_v21 = vmax.f32 %v7445_v24, 0.0 }
 0x38a   : > { %v5566_v23 = vadd.f32 %v5118_v11, %v1673_v51  ;;  %v7440_v11 = vld [vmem:[#allocation45_spill] sm:$0xff] }
 0x38b   : > { %v5546_v32 = vpop.f32.mrf.mxu0  ;;  %v5548_v38 = vpop.f32.mrf.mxu1 }
 0x38c   : > { %v2154_v39 = vpop.f32.mrf.mxu2  ;;  %v2267_v18 = vpop.f32.mrf.mxu3  ;;  %7439 = vst [vmem:[#allocation44_spill] sm:$0xff] %v5566_v23 }
 0x38d   : > { %v2155_v47 = vadd.f32 %v2154_v39, %v5193_v12  ;;  %v5575_v39 = vld [vmem:[%s6777_s7 + $0x78] sm:$0xff] }
 0x38e   : > { %2382 = vmatmul.f32.gmra.mxu0 %v7054_v22  ;;  %2495 = vmatmul.f32.gmra.mxu1 %v7053_v30  ;;  %v7063_v30 = vmax.f32 %v5566_v23, 0.0  ;;  %v1676_v22 = vadd.f32 %v5139_v3, %v5130_v41 }
 0x38f   : > { %v5563_v62 = vadd.f32 %v2267_v18, %v2155_v47  ;;  %3645 = vmatpush.msra.mxu2 %v5575_v39  ;;  %v5585_v47 = vadd.f32 %v7440_v11, %v1269_v57  ;;  %v7446_v11 = vld [vmem:[#allocation47_spill] sm:$0xff] }
 0x390   : > { %2204 = vmatmul.f32.gmra.mxu2 %v7052_v50  ;;  %2317 = vmatmul.f32.gmra.mxu3 %v7051_v2  ;;  %v7444_v2 = vld [vmem:[#allocation50_spill] sm:$0xff]  ;;  %v5607_v3 = vadd.f32 %v5141_v19, %v1676_v22 }
 0x391   : > { %7441 = vst [vmem:[#allocation45_spill] sm:$0xff] %v5585_v47  ;;  %v7061_v50 = vmax.f32 %v7444_v2, 0.0  ;;  %v7064_v57 = vmax.f32 %v5585_v47, 0.0 }
 0x392   : > { %7447 = vst [vmem:[#allocation47_spill] sm:$0xff] %v5607_v3  ;;  %v7069_v22 = vmax.f32 %v5607_v3, 0.0 }
 0x393   : > { %v5587_v51 = vpop.f32.mrf.mxu0  ;;  %v5589_v18 = vpop.f32.mrf.mxu1 }
 0x394   : > { %7442 = vst [vmem:[#allocation123_spill] sm:$0xff] %v5587_v51  ;;  %v2157_v56 = vpop.f32.mrf.mxu2  ;;  %v2270_v48 = vpop.f32.mrf.mxu3  ;;  %v1272_v51 = vadd.f32 %v7446_v11, %v4818_v10  ;;  %v7448_v10 = vld [vmem:[#allocation113_spill] sm:$0xff] }
 0x395   : > { %7443 = vst [vmem:[#allocation124_spill] sm:$0xff] %v5589_v18  ;;  %v2158_v60 = vadd.f32 %v2157_v56, %v5193_v12  ;;  %v2044_v56 = vld [vmem:[#allocation5 + $0x268] sm:$0xff] }
 0x396   : > { %2385 = vmatmul.f32.gmra.mxu0 %v7061_v50  ;;  %2498 = vmatmul.f32.gmra.mxu1 %v7063_v30  ;;  %v5614_v11 = vadd.f32 %v7448_v10, %v1272_v51 }
 0x397   : > { %v5604_v18 = vadd.f32 %v2270_v48, %v2158_v60  ;;  %2788 = vmatpush.msra.mxu0 %v2044_v56  ;;  %v7451_v48 = vld [vmem:[#allocation53_spill] sm:$0xff] }
 0x398   : > { %2207 = vmatmul.f32.gmra.mxu2 %v7062_v21  ;;  %2320 = vmatmul.f32.gmra.mxu3 %v7064_v57  ;;  %7449 = vst [vmem:[#allocation113_spill] sm:$0xff] %v5614_v11  ;;  %v7070_v19 = vmax.f32 %v7451_v48, 0.0  ;;  %v1679_v21 = vadd.f32 %v5164_v33, %v5130_v41  ;;  %v7452_v56 = vld [vmem:[#allocation85_spill] sm:$0xff]  ;;  %v7067_v51 = vmax.f32 %v5614_v11, 0.0 }
 0x399   : > { %v7068_v61 = vmax.f32 %v7452_v56, 0.0  ;;  %v5643_v33 = vld [vmem:[%s6777_s7 + $0x70] sm:$0xff] }
 0x39a   : > { %v5634_v24 = vadd.f32 %v5166_v36, %v1679_v21  ;;  %3646 = vmatpush.msra.mxu2 %v5643_v33 }
 0x39b   : > { %v5616_v50 = vpop.f32.mrf.mxu0  ;;  %v5618_v60 = vpop.f32.mrf.mxu1 }
 0x39c   : > { %7450 = vst [vmem:[#allocation125_spill] sm:$0xff] %v5618_v60  ;;  %v2160_v30 = vpop.f32.mrf.mxu2  ;;  %v2273_v57 = vpop.f32.mrf.mxu3  ;;  %v7459_v60 = vld [vmem:[#allocation51_spill] sm:$0xff] }
 0x39d   : > { %v2161_v47 = vadd.f32 %v2160_v30, %v5193_v12  ;;  %7453 = vst [vmem:[#allocation126_spill] sm:$0xff] %v5634_v24  ;;  %v5648_v30 = vld [vmem:[%s6777_s7 + $0xf0] sm:$0xff] }
 0x39e   : > { %2388 = vmatmul.f32.gmra.mxu0 %v7070_v19  ;;  %2501 = vmatmul.f32.gmra.mxu1 %v7069_v22 }
 0x39f   : > { %v5631_v10 = vadd.f32 %v2273_v57, %v2161_v47  ;;  %3662 = vmatpush.msra.mxu3 %v5648_v30  ;;  %v7454_v47 = vld [vmem:[#allocation56_spill] sm:$0xff] }
 0x3a0   : > { %2210 = vmatmul.f32.gmra.mxu2 %v7068_v61  ;;  %2323 = vmatmul.f32.gmra.mxu3 %v7067_v51  ;;  %v7077_v57 = vmax.f32 %v7454_v47, 0.0  ;;  %v7078_v51 = vmax.f32 %v5634_v24, 0.0  ;;  %v1682_v61 = vadd.f32 %v5198_v6, %v5130_v41  ;;  %v7457_v6 = vld [vmem:[#allocation24_spill] sm:$0xff]  ;;  %v7471_v24 = vld [vmem:[#allocation57_spill] sm:$0xff] }
 0x3a1   : > { %v7458_v2 = vmax.f32 %v7457_v6, 0.0 }
 0x3a2   : > { %v5667_v23 = vadd.f32 %v5200_v0, %v1682_v61  ;;  %v1685_v0 = vadd.f32 %v5227_v46, %v5130_v41  ;;  %v7463_v46 = vld [vmem:[#allocation25_spill] sm:$0xff] }
 0x3a3   : > { %v2344_v21 = vpop.f32.mrf.mxu0  ;;  %v2457_v36 = vpop.f32.mrf.mxu1 }
 0x3a4   : > { %v2163_v22 = vpop.f32.mrf.mxu2  ;;  %v2276_v19 = vpop.f32.mrf.mxu3  ;;  %v2345_v11 = vadd.f32 %v2344_v21, %v5215_v44  ;;  %7456 = vst [vmem:[#allocation127_spill] sm:$0xff] %v5667_v23  ;;  %v7460_v44 = vmax.f32 %v7459_v60, 0.0 }
 0x3a5   : > { %v2164_v56 = vadd.f32 %v2163_v22, %v5193_v12  ;;  %v2042_v22 = vld [vmem:[#allocation5 + $0x258] sm:$0xff] }
 0x3a6   : > { %v5658_v3 = vadd.f32 %v2457_v36, %v2345_v11  ;;  %2391 = vmatmul.f32.gmra.mxu0 %v7077_v57  ;;  %2504 = vmatmul.f32.gmra.mxu1 %v7078_v51  ;;  %v2074_v11 = vld [vmem:[#allocation5 + $0x358] sm:$0xff]  ;;  %v7461_v57 = vld [vmem:[#allocation59_spill] sm:$0xff] }
 0x3a7   : > { %v5664_v48 = vadd.f32 %v2276_v19, %v2164_v56  ;;  %2789 = vmatpush.msra.mxu0 %v2042_v22  ;;  %2902 = vmatpush.msra.mxu1 %v2074_v11  ;;  %v7079_v19 = vmax.f32 %v5667_v23, 0.0  ;;  %v5688_v22 = vadd.f32 %v5229_v53, %v1685_v0  ;;  %v7464_v11 = vmax.f32 %v7463_v46, 0.0  ;;  %v7465_v51 = vld [vmem:[#allocation54_spill] sm:$0xff] }
 0x3a8   : > { %7455 = vst [vmem:[#allocation56_spill] sm:$0xff] %v5658_v3  ;;  %2569 = vmatmul.f32.vlgmr.msrb.gmra.mxu2 %v7458_v2  ;;  %2682 = vmatmul.f32.vlgmr.msrb.gmra.mxu3 %v7460_v44  ;;  %v7080_v3 = vmax.f32 %v7461_v57, 0.0 }
 0x3a9   : > { %7462 = vst [vmem:[#allocation24_spill] sm:$0xff] %v5688_v22 }
 0x3ab   : > { %v2347_v21 = vpop.f32.mrf.mxu0  ;;  %v2460_v36 = vpop.f32.mrf.mxu1 }
 0x3ac   : > { %v2166_v56 = vpop.f32.mrf.mxu2  ;;  %v2279_v61 = vpop.f32.mrf.mxu3  ;;  %v2348_v2 = vadd.f32 %v2347_v21, %v5244_v29  ;;  %v7466_v29 = vmax.f32 %v7465_v51, 0.0  ;;  %v5697_v21 = vld [vmem:[%s6777_s7 + $0x68] sm:$0xff]  ;;  %v7086_v51 = vmax.f32 %v5688_v22, 0.0 }
 0x3ad   : > { %v2167_v60 = vadd.f32 %v2166_v56, %v5193_v12  ;;  %3647 = vmatpush.msra.mxu2 %v5697_v21  ;;  %v7467_v56 = vld [vmem:[#allocation62_spill] sm:$0xff] }
 0x3ae   : > { %v5679_v6 = vadd.f32 %v2460_v36, %v2348_v2  ;;  %2394 = vmatmul.f32.gmra.mxu0 %v7080_v3  ;;  %2507 = vmatmul.f32.gmra.mxu1 %v7079_v19  ;;  %v5702_v36 = vld [vmem:[%s6777_s7 + $0xe8] sm:$0xff]  ;;  %v1688_v2 = vadd.f32 %v5256_v35, %v5130_v41  ;;  %v7469_v35 = vld [vmem:[#allocation26_spill] sm:$0xff] }
 0x3af   : > { %v5685_v44 = vadd.f32 %v2279_v61, %v2167_v60  ;;  %3663 = vmatpush.msra.mxu3 %v5702_v36  ;;  %v7084_v61 = vmax.f32 %v7467_v56, 0.0  ;;  %v7470_v57 = vmax.f32 %v7469_v35, 0.0  ;;  %v7483_v56 = vld [vmem:[#allocation63_spill] sm:$0xff] }
 0x3b0   : > { %2572 = vmatmul.f32.gmra.mxu2 %v7464_v11  ;;  %2685 = vmatmul.f32.gmra.mxu3 %v7466_v29  ;;  %v5721_v23 = vadd.f32 %v5258_v59, %v1688_v2  ;;  %v1691_v59 = vadd.f32 %v5285_v1, %v5130_v41  ;;  %v7475_v1 = vld [vmem:[#allocation27_spill] sm:$0xff] }
 0x3b2   : > { %7468 = vst [vmem:[#allocation51_spill] sm:$0xff] %v5721_v23 }
 0x3b3   : > { %v2350_v53 = vpop.f32.mrf.mxu0  ;;  %v2463_v0 = vpop.f32.mrf.mxu1 }
 0x3b4   : > { %v2169_v60 = vpop.f32.mrf.mxu2  ;;  %v2282_v46 = vpop.f32.mrf.mxu3  ;;  %v2351_v11 = vadd.f32 %v2350_v53, %v5273_v15  ;;  %v7472_v15 = vmax.f32 %v7471_v24, 0.0  ;;  %v2040_v53 = vld [vmem:[#allocation5 + $0x248] sm:$0xff] }
 0x3b5   : > { %v2170_v29 = vadd.f32 %v2169_v60, %v5193_v12  ;;  %2790 = vmatpush.msra.mxu0 %v2040_v53  ;;  %v5742_v53 = vadd.f32 %v5287_v58, %v1691_v59 }
 0x3b6   : > { %v5712_v19 = vadd.f32 %v2463_v0, %v2351_v11  ;;  %2397 = vmatmul.f32.gmra.mxu0 %v7084_v61  ;;  %2510 = vmatmul.f32.gmra.mxu1 %v7086_v51  ;;  %v2072_v0 = vld [vmem:[#allocation5 + $0x348] sm:$0xff]  ;;  %v7473_v61 = vld [vmem:[#allocation65_spill] sm:$0xff] }
 0x3b7   : > { %v5718_v3 = vadd.f32 %v2282_v46, %v2170_v29  ;;  %2903 = vmatpush.msra.mxu1 %v2072_v0  ;;  %v7088_v22 = vmax.f32 %v7473_v61, 0.0  ;;  %v7087_v46 = vmax.f32 %v5721_v23, 0.0  ;;  %7474 = vst [vmem:[#allocation25_spill] sm:$0xff] %v5742_v53  ;;  %v7476_v0 = vmax.f32 %v7475_v1, 0.0  ;;  %v7477_v51 = vld [vmem:[#allocation60_spill] sm:$0xff] }
 0x3b8   : > { %2575 = vmatmul.f32.gmra.mxu2 %v7470_v57  ;;  %2688 = vmatmul.f32.gmra.mxu3 %v7472_v15 }
 0x3bb   : > { %v2353_v60 = vpop.f32.mrf.mxu0  ;;  %v2466_v11 = vpop.f32.mrf.mxu1 }
 0x3bc   : > { %v2172_v2 = vpop.f32.mrf.mxu2  ;;  %v2285_v29 = vpop.f32.mrf.mxu3  ;;  %v2354_v57 = vadd.f32 %v2353_v60, %v5302_v42  ;;  %v7478_v42 = vmax.f32 %v7477_v51, 0.0  ;;  %v5751_v60 = vld [vmem:[%s6777_s7 + $0x60] sm:$0xff]  ;;  %v7094_v51 = vmax.f32 %v5742_v53, 0.0 }
 0x3bd   : > { %v2173_v24 = vadd.f32 %v2172_v2, %v5193_v12  ;;  %3648 = vmatpush.msra.mxu2 %v5751_v60  ;;  %v7479_v2 = vld [vmem:[#allocation68_spill] sm:$0xff] }
 0x3be   : > { %v5733_v35 = vadd.f32 %v2466_v11, %v2354_v57  ;;  %2400 = vmatmul.f32.gmra.mxu0 %v7088_v22  ;;  %2513 = vmatmul.f32.gmra.mxu1 %v7087_v46  ;;  %v5756_v11 = vld [vmem:[%s6777_s7 + $0xe0] sm:$0xff]  ;;  %v1694_v57 = vadd.f32 %v5314_v63, %v5130_v41  ;;  %v7481_v63 = vld [vmem:[#allocation28_spill] sm:$0xff] }
 0x3bf   : > { %v5739_v15 = vadd.f32 %v2285_v29, %v2173_v24  ;;  %3664 = vmatpush.msra.mxu3 %v5756_v11  ;;  %v7092_v29 = vmax.f32 %v7479_v2, 0.0  ;;  %v7482_v61 = vmax.f32 %v7481_v63, 0.0  ;;  %v7495_v2 = vld [vmem:[#allocation69_spill] sm:$0xff] }
 0x3c0   : > { %2578 = vmatmul.f32.gmra.mxu2 %v7476_v0  ;;  %2691 = vmatmul.f32.gmra.mxu3 %v7478_v42  ;;  %v5775_v23 = vadd.f32 %v5316_v27, %v1694_v57  ;;  %v1697_v27 = vadd.f32 %v5343_v16, %v5130_v41  ;;  %v7487_v16 = vld [vmem:[#allocation29_spill] sm:$0xff] }
 0x3c2   : > { %7480 = vst [vmem:[#allocation54_spill] sm:$0xff] %v5775_v23 }
 0x3c3   : > { %v2356_v58 = vpop.f32.mrf.mxu0  ;;  %v2469_v59 = vpop.f32.mrf.mxu1 }
 0x3c4   : > { %v2175_v24 = vpop.f32.mrf.mxu2  ;;  %v2288_v1 = vpop.f32.mrf.mxu3  ;;  %v2357_v0 = vadd.f32 %v2356_v58, %v5331_v4  ;;  %v7484_v4 = vmax.f32 %v7483_v56, 0.0  ;;  %v2038_v58 = vld [vmem:[#allocation5 + $0x238] sm:$0xff] }
 0x3c5   : > { %v2176_v42 = vadd.f32 %v2175_v24, %v5193_v12  ;;  %2791 = vmatpush.msra.mxu0 %v2038_v58  ;;  %v5796_v58 = vadd.f32 %v5345_v45, %v1697_v27 }
 0x3c6   : > { %v5766_v46 = vadd.f32 %v2469_v59, %v2357_v0  ;;  %2403 = vmatmul.f32.gmra.mxu0 %v7092_v29  ;;  %2516 = vmatmul.f32.gmra.mxu1 %v7094_v51  ;;  %v2070_v59 = vld [vmem:[#allocation5 + $0x338] sm:$0xff]  ;;  %v7485_v29 = vld [vmem:[#allocation71_spill] sm:$0xff] }
 0x3c7   : > { %v5772_v22 = vadd.f32 %v2288_v1, %v2176_v42  ;;  %2904 = vmatpush.msra.mxu1 %v2070_v59  ;;  %v7096_v53 = vmax.f32 %v7485_v29, 0.0  ;;  %v7095_v1 = vmax.f32 %v5775_v23, 0.0  ;;  %7486 = vst [vmem:[#allocation26_spill] sm:$0xff] %v5796_v58  ;;  %v7488_v59 = vmax.f32 %v7487_v16, 0.0  ;;  %v7489_v51 = vld [vmem:[#allocation66_spill] sm:$0xff] }
 0x3c8   : > { %2581 = vmatmul.f32.gmra.mxu2 %v7482_v61  ;;  %2694 = vmatmul.f32.gmra.mxu3 %v7484_v4 }
 0x3cb   : > { %v2359_v24 = vpop.f32.mrf.mxu0  ;;  %v2472_v0 = vpop.f32.mrf.mxu1 }
 0x3cc   : > { %v2178_v57 = vpop.f32.mrf.mxu2  ;;  %v2291_v42 = vpop.f32.mrf.mxu3  ;;  %v2360_v61 = vadd.f32 %v2359_v24, %v5360_v8  ;;  %v7490_v8 = vmax.f32 %v7489_v51, 0.0  ;;  %v5805_v24 = vld [vmem:[%s6777_s7 + $0x58] sm:$0xff]  ;;  %v7102_v51 = vmax.f32 %v5796_v58, 0.0 }
 0x3cd   : > { %v2179_v56 = vadd.f32 %v2178_v57, %v5193_v12  ;;  %3649 = vmatpush.msra.mxu2 %v5805_v24  ;;  %v7491_v57 = vld [vmem:[#allocation74_spill] sm:$0xff] }
 0x3ce   : > { %v5787_v63 = vadd.f32 %v2472_v0, %v2360_v61  ;;  %2406 = vmatmul.f32.gmra.mxu0 %v7096_v53  ;;  %2519 = vmatmul.f32.gmra.mxu1 %v7095_v1  ;;  %v5810_v0 = vld [vmem:[%s6777_s7 + $0xd8] sm:$0xff]  ;;  %v1700_v61 = vadd.f32 %v5372_v43, %v5130_v41 }
 0x3cf   : > { %v5793_v4 = vadd.f32 %v2291_v42, %v2179_v56  ;;  %3665 = vmatpush.msra.mxu3 %v5810_v0  ;;  %v7100_v42 = vmax.f32 %v7491_v57, 0.0  ;;  %v7493_v43 = vld [vmem:[#allocation30_spill] sm:$0xff]  ;;  %v7507_v57 = vld [vmem:[#allocation75_spill] sm:$0xff] }
 0x3d0   : > { %2584 = vmatmul.f32.gmra.mxu2 %v7488_v59  ;;  %2697 = vmatmul.f32.gmra.mxu3 %v7490_v8  ;;  %v5829_v23 = vadd.f32 %v5374_v5, %v1700_v61  ;;  %v7494_v29 = vmax.f32 %v7493_v43, 0.0  ;;  %v1703_v5 = vadd.f32 %v5401_v7, %v5130_v41  ;;  %v7499_v7 = vld [vmem:[#allocation31_spill] sm:$0xff] }
 0x3d2   : > { %7492 = vst [vmem:[#allocation57_spill] sm:$0xff] %v5829_v23 }
 0x3d3   : > { %v2362_v45 = vpop.f32.mrf.mxu0  ;;  %v2475_v27 = vpop.f32.mrf.mxu1 }
 0x3d4   : > { %v2181_v56 = vpop.f32.mrf.mxu2  ;;  %v2294_v16 = vpop.f32.mrf.mxu3  ;;  %v2363_v59 = vadd.f32 %v2362_v45, %v5389_v13  ;;  %v7496_v13 = vmax.f32 %v7495_v2, 0.0  ;;  %v2036_v45 = vld [vmem:[#allocation5 + $0x228] sm:$0xff] }
 0x3d5   : > { %v2182_v8 = vadd.f32 %v2181_v56, %v5193_v12  ;;  %2792 = vmatpush.msra.mxu0 %v2036_v45  ;;  %v5850_v45 = vadd.f32 %v5403_v9, %v1703_v5 }
 0x3d6   : > { %v5820_v1 = vadd.f32 %v2475_v27, %v2363_v59  ;;  %2409 = vmatmul.f32.gmra.mxu0 %v7100_v42  ;;  %2522 = vmatmul.f32.gmra.mxu1 %v7102_v51  ;;  %v2068_v27 = vld [vmem:[#allocation5 + $0x328] sm:$0xff]  ;;  %v7497_v42 = vld [vmem:[#allocation11_spill] sm:$0xff] }
 0x3d7   : > { %v5826_v53 = vadd.f32 %v2294_v16, %v2182_v8  ;;  %2905 = vmatpush.msra.mxu1 %v2068_v27  ;;  %v7104_v58 = vmax.f32 %v7497_v42, 0.0  ;;  %v7103_v16 = vmax.f32 %v5829_v23, 0.0  ;;  %7498 = vst [vmem:[#allocation27_spill] sm:$0xff] %v5850_v45  ;;  %v7500_v27 = vmax.f32 %v7499_v7, 0.0  ;;  %v7501_v51 = vld [vmem:[#allocation72_spill] sm:$0xff] }
 0x3d8   : > { %2587 = vmatmul.f32.gmra.mxu2 %v7494_v29  ;;  %2700 = vmatmul.f32.gmra.mxu3 %v7496_v13 }
 0x3db   : > { %v2365_v56 = vpop.f32.mrf.mxu0  ;;  %v2478_v59 = vpop.f32.mrf.mxu1 }
 0x3dc   : > { %v2184_v61 = vpop.f32.mrf.mxu2  ;;  %v2297_v8 = vpop.f32.mrf.mxu3  ;;  %v2366_v29 = vadd.f32 %v2365_v56, %v5418_v28  ;;  %v7502_v28 = vmax.f32 %v7501_v51, 0.0  ;;  %v5859_v56 = vld [vmem:[%s6777_s7 + $0x50] sm:$0xff]  ;;  %v7110_v51 = vmax.f32 %v5850_v45, 0.0 }
 0x3dd   : > { %v2185_v2 = vadd.f32 %v2184_v61, %v5193_v12  ;;  %3650 = vmatpush.msra.mxu2 %v5859_v56  ;;  %v7503_v61 = vld [vmem:[#allocation12_spill] sm:$0xff] }
 0x3de   : > { %v5841_v43 = vadd.f32 %v2478_v59, %v2366_v29  ;;  %2412 = vmatmul.f32.gmra.mxu0 %v7104_v58  ;;  %2525 = vmatmul.f32.gmra.mxu1 %v7103_v16  ;;  %v5864_v59 = vld [vmem:[%s6777_s7 + $0xd0] sm:$0xff]  ;;  %v1706_v29 = vadd.f32 %v5430_v40, %v5130_v41  ;;  %v7505_v40 = vld [vmem:[#allocation34_spill] sm:$0xff] }
 0x3df   : > { %v5847_v13 = vadd.f32 %v2297_v8, %v2185_v2  ;;  %3666 = vmatpush.msra.mxu3 %v5864_v59  ;;  %v7108_v8 = vmax.f32 %v7503_v61, 0.0  ;;  %v7506_v42 = vmax.f32 %v7505_v40, 0.0  ;;  %v7517_v61 = vld [vmem:[#allocation13_spill] sm:$0xff] }
 0x3e0   : > { %2590 = vmatmul.f32.gmra.mxu2 %v7500_v27  ;;  %2703 = vmatmul.f32.gmra.mxu3 %v7502_v28  ;;  %v5883_v23 = vadd.f32 %v5432_v54, %v1706_v29  ;;  %v1709_v54 = vadd.f32 %v5459_v14, %v5130_v41  ;;  %v7510_v14 = vld [vmem:[#allocation37_spill] sm:$0xff] }
 0x3e2   : > { %7504 = vst [vmem:[#allocation60_spill] sm:$0xff] %v5883_v23 }
 0x3e3   : > { %v2368_v9 = vpop.f32.mrf.mxu0  ;;  %v2481_v5 = vpop.f32.mrf.mxu1 }
 0x3e4   : > { %v2187_v2 = vpop.f32.mrf.mxu2  ;;  %v2300_v7 = vpop.f32.mrf.mxu3  ;;  %v2369_v27 = vadd.f32 %v2368_v9, %v5447_v26  ;;  %v7508_v26 = vmax.f32 %v7507_v57, 0.0  ;;  %v2034_v9 = vld [vmem:[#allocation5 + $0x218] sm:$0xff] }
 0x3e5   : > { %v2188_v28 = vadd.f32 %v2187_v2, %v5193_v12  ;;  %2793 = vmatpush.msra.mxu0 %v2034_v9  ;;  %v5904_v9 = vadd.f32 %v5461_v49, %v1709_v54 }
 0x3e6   : > { %v5874_v16 = vadd.f32 %v2481_v5, %v2369_v27  ;;  %2415 = vmatmul.f32.gmra.mxu0 %v7108_v8  ;;  %2528 = vmatmul.f32.gmra.mxu1 %v7110_v51  ;;  %v2066_v5 = vld [vmem:[#allocation5 + $0x318] sm:$0xff]  ;;  %v7512_v51 = vld [vmem:[#allocation77_spill] sm:$0xff] }
 0x3e7   : > { %v5880_v58 = vadd.f32 %v2300_v7, %v2188_v28  ;;  %2906 = vmatpush.msra.mxu1 %v2066_v5  ;;  %v7509_v8 = vld [vmem:[#allocation14_spill] sm:$0xff]  ;;  %v7111_v7 = vmax.f32 %v5883_v23, 0.0  ;;  %v7511_v5 = vmax.f32 %v7510_v14, 0.0 }
 0x3e8   : > { %2593 = vmatmul.f32.gmra.mxu2 %v7506_v42  ;;  %2706 = vmatmul.f32.gmra.mxu3 %v7508_v26  ;;  %v7112_v45 = vmax.f32 %v7509_v8, 0.0 }
 0x3eb   : > { %v2371_v2 = vpop.f32.mrf.mxu0  ;;  %v2484_v27 = vpop.f32.mrf.mxu1 }
 0x3ec   : > { %v2190_v29 = vpop.f32.mrf.mxu2  ;;  %v2303_v28 = vpop.f32.mrf.mxu3  ;;  %v2372_v42 = vadd.f32 %v2371_v2, %v5476_v37  ;;  %v7513_v37 = vmax.f32 %v7512_v51, 0.0  ;;  %v5913_v2 = vld [vmem:[%s6777_s7 + $0x48] sm:$0xff]  ;;  %v7126_v51 = vmax.f32 %v5904_v9, 0.0 }
 0x3ed   : > { %v2191_v57 = vadd.f32 %v2190_v29, %v5193_v12  ;;  %3651 = vmatpush.msra.mxu2 %v5913_v2  ;;  %v7514_v29 = vld [vmem:[#allocation16_spill] sm:$0xff] }
 0x3ee   : > { %v5895_v40 = vadd.f32 %v2484_v27, %v2372_v42  ;;  %2418 = vmatmul.f32.gmra.mxu0 %v7112_v45  ;;  %2531 = vmatmul.f32.gmra.mxu1 %v7111_v7  ;;  %v5918_v27 = vld [vmem:[%s6777_s7 + $0xc8] sm:$0xff]  ;;  %v1712_v42 = vadd.f32 %v5488_v55, %v5130_v41 }
 0x3ef   : > { %v5901_v26 = vadd.f32 %v2303_v28, %v2191_v57  ;;  %3667 = vmatpush.msra.mxu3 %v5918_v27  ;;  %v7127_v28 = vmax.f32 %v7514_v29, 0.0  ;;  %v7515_v55 = vld [vmem:[#allocation40_spill] sm:$0xff] }
 0x3f0   : > { %2596 = vmatmul.f32.gmra.mxu2 %v7511_v5  ;;  %2709 = vmatmul.f32.gmra.mxu3 %v7513_v37  ;;  %v5937_v23 = vadd.f32 %v5490_v31, %v1712_v42  ;;  %v7516_v8 = vmax.f32 %v7515_v55, 0.0 }
 0x3f2   : > { %v7124_v31 = vmax.f32 %v5937_v23, 0.0 }
 0x3f3   : > { %v2374_v49 = vpop.f32.mrf.mxu0  ;;  %v2487_v54 = vpop.f32.mrf.mxu1 }
 0x3f4   : > { %v2193_v57 = vpop.f32.mrf.mxu2  ;;  %v2306_v14 = vpop.f32.mrf.mxu3  ;;  %v2375_v5 = vadd.f32 %v2374_v49, %v5505_v34  ;;  %v7518_v34 = vmax.f32 %v7517_v61, 0.0  ;;  %v2032_v49 = vld [vmem:[#allocation5 + $0x208] sm:$0xff] }
 0x3f5   : > { %v2194_v37 = vadd.f32 %v2193_v57, %v5193_v12  ;;  %2794 = vmatpush.msra.mxu0 %v2032_v49 }
 0x3f6   : > { %v5928_v7 = vadd.f32 %v2487_v54, %v2375_v5  ;;  %2421 = vmatmul.f32.gmra.mxu0 %v7127_v28  ;;  %2534 = vmatmul.f32.gmra.mxu1 %v7126_v51  ;;  %v2064_v54 = vld [vmem:[#allocation5 + $0x308] sm:$0xff]  ;;  %v7519_v5 = vld [vmem:[#allocation18_spill] sm:$0xff] }
 0x3f7   : > { %v5934_v45 = vadd.f32 %v2306_v14, %v2194_v37  ;;  %2907 = vmatpush.msra.mxu1 %v2064_v54  ;;  %3105 = vmatpush.msrb.mxu0 %v5575_v39  ;;  %v7125_v37 = vmax.f32 %v7519_v5, 0.0  ;;  %v3077_v54 = vld [vmem:[%s6777_s7 + $0x40] sm:$0xff] }
 0x3f8   : > { %2599 = vmatmul.f32.gmra.mxu2 %v7516_v8  ;;  %2712 = vmatmul.f32.gmra.mxu3 %v7518_v34  ;;  %v1715_v8 = vadd.f32 %v5517_v52, %v5130_v41 }
 0x3f9   : > { %3218 = vmatpush.msrb.mxu1 %v5580_v20  ;;  %3106 = vmatpush.msrb.mxu0 %v5643_v33 }
 0x3fa   : > { %v5964_v52 = vadd.f32 %v5519_v17, %v1715_v8  ;;  %3652 = vmatpush.msra.mxu2 %v3077_v54 }
 0x3fb   : > { %v2377_v57 = vpop.f32.mrf.mxu0  ;;  %v2490_v14 = vpop.f32.mrf.mxu1  ;;  %3219 = vmatpush.msrb.mxu1 %v5648_v30  ;;  %3107 = vmatpush.msrb.mxu0 %v5697_v21  ;;  %v7522_v30 = vld [vmem:[#allocation15_spill] sm:$0xff] }
 0x3fc   : > { %v2196_v42 = vpop.f32.mrf.mxu2  ;;  %v2309_v61 = vpop.f32.mrf.mxu3  ;;  %v2378_v55 = vadd.f32 %v2377_v57, %v5534_v25  ;;  %v7520_v25 = vld [vmem:[#allocation43_spill] sm:$0xff]  ;;  %v7523_v49 = vmax.f32 %v7522_v30, 0.0  ;;  %v7122_v8 = vmax.f32 %v5964_v52, 0.0 }
 0x3fd   : > { %v2197_v39 = vadd.f32 %v2196_v42, %v5193_v12  ;;  %3220 = vmatpush.msrb.mxu1 %v5702_v36  ;;  %v7521_v33 = vmax.f32 %v7520_v25, 0.0  ;;  %v3093_v57 = vld [vmem:[%s6777_s7 + $0xc0] sm:$0xff]  ;;  %3108 = vmatpush.msrb.mxu0 %v5751_v60  ;;  %v7524_v36 = vld [vmem:[#allocation20_spill] sm:$0xff]  ;;  %v1718_v42 = vadd.f32 %v5546_v32, %v5130_v41 }
 0x3fe   : > { %v5953_v20 = vadd.f32 %v2490_v14, %v2378_v55  ;;  %2424 = vmatmul.f32.gmra.mxu0 %v7125_v37  ;;  %2537 = vmatmul.f32.gmra.mxu1 %v7124_v31  ;;  %v7123_v14 = vmax.f32 %v7524_v36, 0.0 }
 0x3ff   : > { %v5959_v34 = vadd.f32 %v2309_v61, %v2197_v39  ;;  %3668 = vmatpush.msra.mxu3 %v3093_v57  ;;  %3221 = vmatpush.msrb.mxu1 %v5756_v11  ;;  %v5997_v32 = vadd.f32 %v5548_v38, %v1718_v42  ;;  %v7530_v38 = vld [vmem:[#allocation123_spill] sm:$0xff] }
 0x400   : > { %2602 = vmatmul.f32.gmra.mxu2 %v7521_v33  ;;  %2715 = vmatmul.f32.gmra.mxu3 %v7523_v49 }
 0x401   : > { %3109 = vmatpush.msrb.mxu0 %v5805_v24  ;;  %3222 = vmatpush.msrb.mxu1 %v5810_v0  ;;  %v7527_v0 = vld [vmem:[#allocation17_spill] sm:$0xff] }
 0x402   : > { %v7528_v33 = vmax.f32 %v7527_v0, 0.0  ;;  %v3076_v0 = vld [vmem:[%s6777_s7 + $0x38] sm:$0xff] }
 0x403   : > { %v2380_v17 = vpop.f32.mrf.mxu0  ;;  %v2493_v21 = vpop.f32.mrf.mxu1  ;;  %3110 = vmatpush.msrb.mxu0 %v5859_v56  ;;  %3223 = vmatpush.msrb.mxu1 %v5864_v59  ;;  %v7529_v56 = vld [vmem:[#allocation22_spill] sm:$0xff]  ;;  %v7117_v59 = vmax.f32 %v5997_v32, 0.0 }
 0x404   : > { %v2199_v61 = vpop.f32.mrf.mxu2  ;;  %v2312_v55 = vpop.f32.mrf.mxu3  ;;  %v2381_v39 = vadd.f32 %v2380_v17, %v5563_v62  ;;  %v7525_v62 = vld [vmem:[#allocation46_spill] sm:$0xff]  ;;  %v7118_v17 = vmax.f32 %v7529_v56, 0.0  ;;  %3653 = vmatpush.msra.mxu2 %v3076_v0 }
 0x405   : > { %v2200_v60 = vadd.f32 %v2199_v61, %v5193_v12  ;;  %v7526_v24 = vmax.f32 %v7525_v62, 0.0  ;;  %3111 = vmatpush.msrb.mxu0 %v5913_v2  ;;  %3224 = vmatpush.msrb.mxu1 %v5918_v27 }
 0x406   : > { %v5986_v11 = vadd.f32 %v2493_v21, %v2381_v39  ;;  %2427 = vmatmul.f32.gmra.mxu0 %v7123_v14  ;;  %2540 = vmatmul.f32.gmra.mxu1 %v7122_v8  ;;  %v1721_v21 = vadd.f32 %v7530_v38, %v5130_v41  ;;  %v7536_v38 = vld [vmem:[#allocation114_spill] sm:$0xff]  ;;  %v7555_v8 = vld [vmem:[#allocation116_spill] sm:$0xff] }
 0x407   : > { %v5992_v25 = vadd.f32 %v2312_v55, %v2200_v60  ;;  %3112 = vmatpush.msrb.mxu0 %v3077_v54  ;;  %3225 = vmatpush.msrb.mxu1 %v3093_v57  ;;  %v7531_v54 = vld [vmem:[#allocation124_spill] sm:$0xff]  ;;  %v7556_v14 = vmax.f32 %v7555_v8, 0.0 }
 0x408   : > { %2605 = vmatmul.f32.gmra.mxu2 %v7526_v24  ;;  %2718 = vmatmul.f32.gmra.mxu3 %v7528_v33  ;;  %v6020_v57 = vadd.f32 %v7531_v54, %v1721_v21  ;;  %v7532_v60 = vld [vmem:[#allocation48_spill] sm:$0xff]  ;;  %v7534_v24 = vld [vmem:[#allocation19_spill] sm:$0xff]  ;;  %v3092_v33 = vld [vmem:[%s6777_s7 + $0xb8] sm:$0xff]  ;;  %v7116_v21 = vmax.f32 %v7536_v38, 0.0 }
 0x409   : > { %v7533_v62 = vmax.f32 %v7532_v60, 0.0  ;;  %3669 = vmatpush.msra.mxu3 %v3092_v33  ;;  %3113 = vmatpush.msrb.mxu0 %v3076_v0 }
 0x40a   : > { %3226 = vmatpush.msrb.mxu1 %v3092_v33  ;;  %v7541_v33 = vld [vmem:[#allocation21_spill] sm:$0xff] }
 0x40b   : > { %v2383_v30 = vpop.f32.mrf.mxu0  ;;  %v2496_v49 = vpop.f32.mrf.mxu1 }
 0x40c   : > { %v2202_v42 = vpop.f32.mrf.mxu2  ;;  %v2315_v61 = vpop.f32.mrf.mxu3  ;;  %v2384_v55 = vadd.f32 %v2383_v30, %v5604_v18  ;;  %v7535_v18 = vmax.f32 %v7534_v24, 0.0 }
 0x40d   : > { %v2203_v39 = vadd.f32 %v2202_v42, %v5193_v12  ;;  %v7121_v42 = vmax.f32 %v6020_v57, 0.0 }
 0x40e   : > { %v6011_v2 = vadd.f32 %v2496_v49, %v2384_v55  ;;  %2430 = vmatmul.f32.gmra.mxu0 %v7118_v17  ;;  %2543 = vmatmul.f32.gmra.mxu1 %v7117_v59 }
 0x40f   : > { %v6017_v27 = vadd.f32 %v2315_v61, %v2203_v39  ;;  %v1724_v61 = vadd.f32 %v5616_v50, %v5130_v41  ;;  %v7539_v41 = vld [vmem:[#allocation49_spill] sm:$0xff] }
 0x410   : > { %2608 = vmatmul.f32.gmra.mxu2 %v7533_v62  ;;  %2721 = vmatmul.f32.gmra.mxu3 %v7535_v18  ;;  %v7537_v18 = vld [vmem:[#allocation125_spill] sm:$0xff]  ;;  %v7540_v50 = vmax.f32 %v7539_v41, 0.0  ;;  %v7544_v41 = vld [vmem:[#allocation52_spill] sm:$0xff] }
 0x411   : > { %v6047_v0 = vadd.f32 %v7537_v18, %v1724_v61 }
 0x413   : > { %v2386_v30 = vpop.f32.mrf.mxu0  ;;  %v2499_v49 = vpop.f32.mrf.mxu1  ;;  %7538 = vst [vmem:[#allocation28_spill] sm:$0xff] %v6047_v0 }
 0x414   : > { %v2205_v55 = vpop.f32.mrf.mxu2  ;;  %v2318_v39 = vpop.f32.mrf.mxu3  ;;  %v2387_v54 = vadd.f32 %v2386_v30, %v5631_v10  ;;  %v7542_v10 = vmax.f32 %v7541_v33, 0.0  ;;  %v7546_v33 = vld [vmem:[#allocation23_spill] sm:$0xff] }
 0x415   : > { %v2206_v60 = vadd.f32 %v2205_v55, %v5193_v12  ;;  %v7543_v55 = vld [vmem:[#allocation86_spill] sm:$0xff] }
 0x416   : > { %v6038_v62 = vadd.f32 %v2499_v49, %v2387_v54  ;;  %2433 = vmatmul.f32.gmra.mxu0 %v7116_v21  ;;  %2546 = vmatmul.f32.gmra.mxu1 %v7121_v42  ;;  %v7120_v54 = vmax.f32 %v7543_v55, 0.0  ;;  %v7119_v21 = vmax.f32 %v6047_v0, 0.0 }
 0x417   : > { %v6044_v24 = vadd.f32 %v2318_v39, %v2206_v60 }
 0x418   : > { %2611 = vmatmul.f32.gmra.mxu2 %v7540_v50  ;;  %2724 = vmatmul.f32.gmra.mxu3 %v7542_v10  ;;  %v7545_v50 = vmax.f32 %v7544_v41, 0.0  ;;  %v7547_v10 = vmax.f32 %v7546_v33, 0.0  ;;  %v7549_v33 = vld [vmem:[#allocation88_spill] sm:$0xff] }
 0x41b   : > { %v2389_v30 = vpop.f32.mrf.mxu0  ;;  %v2502_v49 = vpop.f32.mrf.mxu1 }
 0x41c   : > { %v2208_v59 = vpop.f32.mrf.mxu2  ;;  %v2321_v17 = vpop.f32.mrf.mxu3  ;;  %v2390_v39 = vadd.f32 %v2389_v30, %v5664_v48  ;;  %v3075_v48 = vld [vmem:[%s6777_s7 + $0x30] sm:$0xff] }
 0x41d   : > { %v2209_v60 = vadd.f32 %v2208_v59, %v5193_v12  ;;  %v3091_v59 = vld [vmem:[%s6777_s7 + $0xb0] sm:$0xff]  ;;  %3654 = vmatpush.msra.mxu2 %v3075_v48  ;;  %3114 = vmatpush.msrb.mxu0 %v3075_v48  ;;  %v7553_v48 = vld [vmem:[#allocation55_spill] sm:$0xff] }
 0x41e   : > { %v6057_v61 = vadd.f32 %v2502_v49, %v2390_v39  ;;  %2436 = vmatmul.f32.gmra.mxu0 %v7120_v54  ;;  %2549 = vmatmul.f32.gmra.mxu1 %v7119_v21  ;;  %v7551_v21 = vld [vmem:[#allocation115_spill] sm:$0xff] }
 0x41f   : > { %v6063_v18 = vadd.f32 %v2321_v17, %v2209_v60  ;;  %3670 = vmatpush.msra.mxu3 %v3091_v59  ;;  %3227 = vmatpush.msrb.mxu1 %v3091_v59  ;;  %v7552_v54 = vmax.f32 %v7551_v21, 0.0  ;;  %v7554_v59 = vmax.f32 %v7553_v48, 0.0  ;;  %v7562_v48 = vld [vmem:[#allocation58_spill] sm:$0xff] }
 0x420   : > { %2614 = vmatmul.f32.gmra.mxu2 %v7545_v50  ;;  %2727 = vmatmul.f32.gmra.mxu3 %v7547_v10  ;;  %v7550_v10 = vmax.f32 %v7549_v33, 0.0 }
 0x423   : > { %v2392_v17 = vpop.f32.mrf.mxu0  ;;  %v2505_v30 = vpop.f32.mrf.mxu1 }
 0x424   : > { %v2211_v49 = vpop.f32.mrf.mxu2  ;;  %v2324_v39 = vpop.f32.mrf.mxu3  ;;  %v2393_v60 = vadd.f32 %v2392_v17, %v5685_v44 }
 0x425   : > { %v2212_v41 = vadd.f32 %v2211_v49, %v5193_v12  ;;  %v3745_v12 = vld [vmem:[%s6776_s6] sm:$0x3] }
 0x426   : > { %v6077_v50 = vadd.f32 %v2505_v30, %v2393_v60  ;;  %2795 = vmatmul.f32.vlgmr.msra.gmra.mxu0 %v7550_v10  ;;  %2908 = vmatmul.f32.vlgmr.msra.gmra.mxu1 %v7552_v54  ;;  %v6092_v44 = vperm.slane %v3745_v12, 1  ;;  %v7564_v12 = vld [vmem:[#allocation87_spill] sm:$0xff] }
 0x427   : > { %v6083_v42 = vadd.f32 %v2324_v39, %v2212_v41  ;;  %v7558_v41 = vld [vmem:[#allocation90_spill] sm:$0xff]  ;;  %v7565_v31 = vmax.f32 %v7564_v12, 0.0  ;;  %v7571_v12 = vld [vmem:[#allocation61_spill] sm:$0xff] }
 0x428   : > { %7548 = vst [vmem:[#allocation63_spill] sm:$0xff] %v6077_v50  ;;  %2617 = vmatmul.f32.gmra.mxu2 %v7554_v59  ;;  %2730 = vmatmul.f32.gmra.mxu3 %v7556_v14  ;;  %v7559_v33 = vmax.f32 %v7558_v41, 0.0  ;;  %v7560_v14 = vld [vmem:[#allocation117_spill] sm:$0xff]  ;;  %v7563_v59 = vmax.f32 %v7562_v48, 0.0 }
 0x429   : > { %v7561_v8 = vmax.f32 %v7560_v14, 0.0 }
 0x42b   : > { %v2395_v17 = vpop.f32.mrf.mxu0  ;;  %v2508_v30 = vpop.f32.mrf.mxu1 }
 0x42c   : > { %v2396_v49 = vadd.f32 %v2395_v17, %v5718_v3  ;;  %v2570_v21 = vpop.f32.mrf.mxu2  ;;  %v2683_v54 = vpop.f32.mrf.mxu3  ;;  %v3074_v3 = vld [vmem:[%s6777_s7 + $0x28] sm:$0xff] }
 0x42d   : > { %v2571_v39 = vadd.f32 %v2570_v21, %v6092_v44  ;;  %v3090_v17 = vld [vmem:[%s6777_s7 + $0xa8] sm:$0xff]  ;;  %3655 = vmatpush.msra.mxu2 %v3074_v3  ;;  %3115 = vmatpush.msrb.mxu0 %v3074_v3  ;;  %v7572_v3 = vmax.f32 %v7571_v12, 0.0 }
 0x42e   : > { %v6096_v60 = vadd.f32 %v2508_v30, %v2396_v49  ;;  %2798 = vmatmul.f32.gmra.mxu0 %v7559_v33  ;;  %2911 = vmatmul.f32.gmra.mxu1 %v7561_v8  ;;  %v7567_v33 = vld [vmem:[#allocation92_spill] sm:$0xff]  ;;  %v7569_v8 = vld [vmem:[#allocation118_spill] sm:$0xff] }
 0x42f   : > { %v6102_v10 = vadd.f32 %v2683_v54, %v2571_v39  ;;  %3671 = vmatpush.msra.mxu3 %v3090_v17  ;;  %3228 = vmatpush.msrb.mxu1 %v3090_v17  ;;  %v7568_v14 = vmax.f32 %v7567_v33, 0.0  ;;  %v7570_v48 = vmax.f32 %v7569_v8, 0.0  ;;  %v7573_v17 = vld [vmem:[#allocation89_spill] sm:$0xff]  ;;  %v7576_v8 = vld [vmem:[#allocation94_spill] sm:$0xff] }
 0x430   : > { %7557 = vst [vmem:[#allocation29_spill] sm:$0xff] %v6096_v60  ;;  %2620 = vmatmul.f32.gmra.mxu2 %v7563_v59  ;;  %2733 = vmatmul.f32.gmra.mxu3 %v7565_v31  ;;  %v7574_v37 = vmax.f32 %v7573_v17, 0.0  ;;  %v7582_v17 = vld [vmem:[#allocation91_spill] sm:$0xff] }
 0x431   : > { %v7583_v51 = vmax.f32 %v7582_v17, 0.0  ;;  %v7589_v17 = vld [vmem:[#allocation67_spill] sm:$0xff] }
 0x433   : > { %v2398_v30 = vpop.f32.mrf.mxu0  ;;  %v2511_v49 = vpop.f32.mrf.mxu1 }
 0x434   : > { %v2399_v21 = vadd.f32 %v2398_v30, %v5739_v15  ;;  %v2573_v54 = vpop.f32.mrf.mxu2  ;;  %v2686_v39 = vpop.f32.mrf.mxu3 }
 0x435   : > { %v2574_v31 = vadd.f32 %v2573_v54, %v6092_v44 }
 0x436   : > { %v6116_v41 = vadd.f32 %v2511_v49, %v2399_v21  ;;  %2801 = vmatmul.f32.gmra.mxu0 %v7568_v14  ;;  %2914 = vmatmul.f32.gmra.mxu1 %v7570_v48  ;;  %v7577_v48 = vmax.f32 %v7576_v8, 0.0 }
 0x437   : > { %v6122_v59 = vadd.f32 %v2686_v39, %v2574_v31  ;;  %v7578_v39 = vld [vmem:[#allocation119_spill] sm:$0xff] }
 0x438   : > { %7566 = vst [vmem:[#allocation66_spill] sm:$0xff] %v6116_v41  ;;  %2623 = vmatmul.f32.gmra.mxu2 %v7572_v3  ;;  %2736 = vmatmul.f32.gmra.mxu3 %v7574_v37  ;;  %v7579_v31 = vmax.f32 %v7578_v39, 0.0  ;;  %v7580_v3 = vld [vmem:[#allocation64_spill] sm:$0xff] }
 0x439   : > { %v7581_v37 = vmax.f32 %v7580_v3, 0.0 }
 0x43b   : > { %v2401_v15 = vpop.f32.mrf.mxu0  ;;  %v2514_v30 = vpop.f32.mrf.mxu1 }
 0x43c   : > { %v2402_v54 = vadd.f32 %v2401_v15, %v5772_v22  ;;  %v2576_v49 = vpop.f32.mrf.mxu2  ;;  %v2689_v21 = vpop.f32.mrf.mxu3  ;;  %v3073_v22 = vld [vmem:[%s6777_s7 + $0x20] sm:$0xff] }
 0x43d   : > { %v2577_v33 = vadd.f32 %v2576_v49, %v6092_v44  ;;  %v3089_v15 = vld [vmem:[%s6777_s7 + $0xa0] sm:$0xff]  ;;  %3656 = vmatpush.msra.mxu2 %v3073_v22  ;;  %3116 = vmatpush.msrb.mxu0 %v3073_v22  ;;  %v7590_v22 = vmax.f32 %v7589_v17, 0.0 }
 0x43e   : > { %v6130_v14 = vadd.f32 %v2514_v30, %v2402_v54  ;;  %2804 = vmatmul.f32.gmra.mxu0 %v7577_v48  ;;  %2917 = vmatmul.f32.gmra.mxu1 %v7579_v31  ;;  %v7585_v48 = vld [vmem:[#allocation96_spill] sm:$0xff] }
 0x43f   : > { %v6136_v12 = vadd.f32 %v2689_v21, %v2577_v33  ;;  %3672 = vmatpush.msra.mxu3 %v3089_v15  ;;  %3229 = vmatpush.msrb.mxu1 %v3089_v15  ;;  %v7586_v39 = vmax.f32 %v7585_v48, 0.0  ;;  %v7587_v31 = vld [vmem:[#allocation120_spill] sm:$0xff]  ;;  %v7591_v15 = vld [vmem:[#allocation93_spill] sm:$0xff] }
 0x440   : > { %7575 = vst [vmem:[#allocation30_spill] sm:$0xff] %v6130_v14  ;;  %2626 = vmatmul.f32.gmra.mxu2 %v7581_v37  ;;  %2739 = vmatmul.f32.gmra.mxu3 %v7583_v51  ;;  %v7588_v3 = vmax.f32 %v7587_v31, 0.0  ;;  %v7592_v28 = vmax.f32 %v7591_v15, 0.0  ;;  %v7594_v31 = vld [vmem:[#allocation98_spill] sm:$0xff]  ;;  %v7600_v15 = vld [vmem:[#allocation95_spill] sm:$0xff] }
 0x443   : > { %v2404_v30 = vpop.f32.mrf.mxu0  ;;  %v2517_v54 = vpop.f32.mrf.mxu1 }
 0x444   : > { %v2405_v49 = vadd.f32 %v2404_v30, %v5793_v4  ;;  %v2579_v21 = vpop.f32.mrf.mxu2  ;;  %v2692_v33 = vpop.f32.mrf.mxu3 }
 0x445   : > { %v2580_v51 = vadd.f32 %v2579_v21, %v6092_v44 }
 0x446   : > { %v6150_v8 = vadd.f32 %v2517_v54, %v2405_v49  ;;  %2807 = vmatmul.f32.gmra.mxu0 %v7586_v39  ;;  %2920 = vmatmul.f32.gmra.mxu1 %v7588_v3  ;;  %v7595_v3 = vmax.f32 %v7594_v31, 0.0 }
 0x447   : > { %v6156_v37 = vadd.f32 %v2692_v33, %v2580_v51  ;;  %v7596_v33 = vld [vmem:[#allocation121_spill] sm:$0xff] }
 0x448   : > { %7584 = vst [vmem:[#allocation69_spill] sm:$0xff] %v6150_v8  ;;  %2629 = vmatmul.f32.gmra.mxu2 %v7590_v22  ;;  %2742 = vmatmul.f32.gmra.mxu3 %v7592_v28  ;;  %v7597_v51 = vmax.f32 %v7596_v33, 0.0  ;;  %v7598_v22 = vld [vmem:[#allocation70_spill] sm:$0xff]  ;;  %v7601_v8 = vmax.f32 %v7600_v15, 0.0  ;;  %v7607_v15 = vld [vmem:[#allocation73_spill] sm:$0xff] }
 0x449   : > { %v7599_v28 = vmax.f32 %v7598_v22, 0.0 }
 0x44b   : > { %v2407_v4 = vpop.f32.mrf.mxu0  ;;  %v2520_v30 = vpop.f32.mrf.mxu1 }
 0x44c   : > { %v2408_v21 = vadd.f32 %v2407_v4, %v5826_v53  ;;  %v2582_v54 = vpop.f32.mrf.mxu2  ;;  %v2695_v49 = vpop.f32.mrf.mxu3  ;;  %v3072_v53 = vld [vmem:[%s6777_s7 + $0x18] sm:$0xff] }
 0x44d   : > { %v2583_v48 = vadd.f32 %v2582_v54, %v6092_v44  ;;  %v3088_v4 = vld [vmem:[%s6777_s7 + $0x98] sm:$0xff]  ;;  %3657 = vmatpush.msra.mxu2 %v3072_v53  ;;  %3117 = vmatpush.msrb.mxu0 %v3072_v53  ;;  %v7608_v53 = vmax.f32 %v7607_v15, 0.0 }
 0x44e   : > { %v6164_v39 = vadd.f32 %v2520_v30, %v2408_v21  ;;  %2810 = vmatmul.f32.gmra.mxu0 %v7595_v3  ;;  %2923 = vmatmul.f32.gmra.mxu1 %v7597_v51  ;;  %v7603_v3 = vld [vmem:[#allocation101_spill] sm:$0xff]  ;;  %v7605_v51 = vld [vmem:[#allocation122_spill] sm:$0xff] }
 0x44f   : > { %v6170_v17 = vadd.f32 %v2695_v49, %v2583_v48  ;;  %3673 = vmatpush.msra.mxu3 %v3088_v4  ;;  %3230 = vmatpush.msrb.mxu1 %v3088_v4  ;;  %v7604_v33 = vmax.f32 %v7603_v3, 0.0  ;;  %v7606_v22 = vmax.f32 %v7605_v51, 0.0  ;;  %v7609_v4 = vld [vmem:[#allocation97_spill] sm:$0xff]  ;;  %v7612_v51 = vld [vmem:[#allocation104_spill] sm:$0xff] }
 0x450   : > { %7593 = vst [vmem:[#allocation31_spill] sm:$0xff] %v6164_v39  ;;  %2632 = vmatmul.f32.gmra.mxu2 %v7599_v28  ;;  %2745 = vmatmul.f32.gmra.mxu3 %v7601_v8  ;;  %v7610_v39 = vmax.f32 %v7609_v4, 0.0  ;;  %v7618_v4 = vld [vmem:[#allocation100_spill] sm:$0xff] }
 0x453   : > { %v2410_v30 = vpop.f32.mrf.mxu0  ;;  %v2523_v21 = vpop.f32.mrf.mxu1 }
 0x454   : > { %v2411_v54 = vadd.f32 %v2410_v30, %v5847_v13  ;;  %v2585_v49 = vpop.f32.mrf.mxu2  ;;  %v2698_v48 = vpop.f32.mrf.mxu3 }
 0x455   : > { %v2586_v8 = vadd.f32 %v2585_v49, %v6092_v44 }
 0x456   : > { %v6184_v31 = vadd.f32 %v2523_v21, %v2411_v54  ;;  %2813 = vmatmul.f32.gmra.mxu0 %v7604_v33  ;;  %2926 = vmatmul.f32.gmra.mxu1 %v7606_v22  ;;  %v7613_v22 = vmax.f32 %v7612_v51, 0.0 }
 0x457   : > { %v6190_v28 = vadd.f32 %v2698_v48, %v2586_v8  ;;  %v7614_v48 = vld [vmem:[#allocation99_spill] sm:$0xff] }
 0x458   : > { %7602 = vst [vmem:[#allocation72_spill] sm:$0xff] %v6184_v31  ;;  %2635 = vmatmul.f32.gmra.mxu2 %v7608_v53  ;;  %2748 = vmatmul.f32.gmra.mxu3 %v7610_v39  ;;  %v7615_v8 = vmax.f32 %v7614_v48, 0.0  ;;  %v7616_v53 = vld [vmem:[#allocation76_spill] sm:$0xff]  ;;  %v7619_v31 = vmax.f32 %v7618_v4, 0.0  ;;  %v7625_v4 = vld [vmem:[#allocation78_spill] sm:$0xff] }
 0x459   : > { %v7617_v39 = vmax.f32 %v7616_v53, 0.0 }
 0x45b   : > { %v2413_v13 = vpop.f32.mrf.mxu0  ;;  %v2526_v30 = vpop.f32.mrf.mxu1 }
 0x45c   : > { %v2414_v49 = vadd.f32 %v2413_v13, %v5880_v58  ;;  %v2588_v21 = vpop.f32.mrf.mxu2  ;;  %v2701_v54 = vpop.f32.mrf.mxu3  ;;  %v3071_v58 = vld [vmem:[%s6777_s7 + $0x10] sm:$0xff] }
 0x45d   : > { %v2589_v3 = vadd.f32 %v2588_v21, %v6092_v44  ;;  %v3087_v13 = vld [vmem:[%s6777_s7 + $0x90] sm:$0xff]  ;;  %3658 = vmatpush.msra.mxu2 %v3071_v58  ;;  %3118 = vmatpush.msrb.mxu0 %v3071_v58  ;;  %v7626_v58 = vmax.f32 %v7625_v4, 0.0 }
 0x45e   : > { %v6198_v33 = vadd.f32 %v2526_v30, %v2414_v49  ;;  %2816 = vmatmul.f32.gmra.mxu0 %v7613_v22  ;;  %2929 = vmatmul.f32.gmra.mxu1 %v7615_v8  ;;  %v7621_v22 = vld [vmem:[#allocation107_spill] sm:$0xff]  ;;  %v7623_v8 = vld [vmem:[#allocation102_spill] sm:$0xff] }
 0x45f   : > { %v6204_v15 = vadd.f32 %v2701_v54, %v2589_v3  ;;  %3674 = vmatpush.msra.mxu3 %v3087_v13  ;;  %3231 = vmatpush.msrb.mxu1 %v3087_v13  ;;  %v7622_v48 = vmax.f32 %v7621_v22, 0.0  ;;  %v7624_v53 = vmax.f32 %v7623_v8, 0.0  ;;  %v7627_v13 = vld [vmem:[#allocation103_spill] sm:$0xff] }
 0x460   : > { %7611 = vst [vmem:[#allocation34_spill] sm:$0xff] %v6198_v33  ;;  %2638 = vmatmul.f32.gmra.mxu2 %v7617_v39  ;;  %2751 = vmatmul.f32.gmra.mxu3 %v7619_v31  ;;  %v7628_v33 = vmax.f32 %v7627_v13, 0.0  ;;  %v3086_v13 = vld [vmem:[%s6777_s7 + $0x88] sm:$0xff] }
 0x461   : > { %3675 = vmatpush.msra.mxu3 %v3086_v13  ;;  %3232 = vmatpush.msrb.mxu1 %v3086_v13 }
 0x463   : > { %v2416_v30 = vpop.f32.mrf.mxu0  ;;  %v2529_v49 = vpop.f32.mrf.mxu1 }
 0x464   : > { %v2417_v21 = vadd.f32 %v2416_v30, %v5901_v26  ;;  %v2591_v54 = vpop.f32.mrf.mxu2  ;;  %v2704_v3 = vpop.f32.mrf.mxu3 }
 0x465   : > { %v2592_v31 = vadd.f32 %v2591_v54, %v6092_v44 }
 0x466   : > { %v6218_v51 = vadd.f32 %v2529_v49, %v2417_v21  ;;  %2819 = vmatmul.f32.gmra.mxu0 %v7622_v48  ;;  %2932 = vmatmul.f32.gmra.mxu1 %v7624_v53  ;;  %v7630_v48 = vld [vmem:[#allocation108_spill] sm:$0xff]  ;;  %v7634_v53 = vld [vmem:[#allocation79_spill] sm:$0xff] }
 0x467   : > { %v6224_v39 = vadd.f32 %v2704_v3, %v2592_v31  ;;  %v7631_v8 = vmax.f32 %v7630_v48, 0.0  ;;  %v7632_v3 = vld [vmem:[#allocation105_spill] sm:$0xff]  ;;  %v7635_v4 = vmax.f32 %v7634_v53, 0.0 }
 0x468   : > { %7620 = vst [vmem:[#allocation75_spill] sm:$0xff] %v6218_v51  ;;  %2641 = vmatmul.f32.gmra.mxu2 %v7626_v58  ;;  %2754 = vmatmul.f32.gmra.mxu3 %v7628_v33  ;;  %v7633_v31 = vmax.f32 %v7632_v3, 0.0  ;;  %v7636_v33 = vld [vmem:[#allocation106_spill] sm:$0xff] }
 0x469   : > { %v7637_v58 = vmax.f32 %v7636_v33, 0.0 }
 0x46b   : > { %v2419_v26 = vpop.f32.mrf.mxu0  ;;  %v2532_v30 = vpop.f32.mrf.mxu1 }
 0x46c   : > { %v2420_v54 = vadd.f32 %v2419_v26, %v5934_v45  ;;  %v6231_v49 = vpop.f32.mrf.mxu2  ;;  %v6233_v21 = vpop.f32.mrf.mxu3  ;;  %v3070_v45 = vld [vmem:[%s6777_s7 + $0x8] sm:$0xff] }
 0x46d   : > { %3659 = vmatpush.msra.mxu2 %v3070_v45  ;;  %3119 = vmatpush.msrb.mxu0 %v3070_v45  ;;  %v7645_v45 = vld [vmem:[#allocation33_spill] sm:$0xff] }
 0x46e   : > { %v6235_v22 = vadd.f32 %v2532_v30, %v2420_v54  ;;  %2822 = vmatmul.f32.gmra.mxu0 %v7631_v8  ;;  %2935 = vmatmul.f32.gmra.mxu1 %v7633_v31  ;;  %v7639_v31 = vld [vmem:[#allocation109_spill] sm:$0xff]  ;;  %v7646_v13 = vmax.f32 %v7645_v45, 0.0  ;;  %v7654_v45 = vld [vmem:[#allocation36_spill] sm:$0xff] }
 0x46f   : > { %v7640_v53 = vmax.f32 %v7639_v31, 0.0  ;;  %v7648_v31 = vld [vmem:[#allocation110_spill] sm:$0xff] }
 0x470   : > { %7629 = vst [vmem:[#allocation37_spill] sm:$0xff] %v6235_v22  ;;  %2644 = vmatmul.f32.gmra.mxu2 %v7635_v4  ;;  %2757 = vmatmul.f32.gmra.mxu3 %v7637_v58  ;;  %v7641_v4 = vld [vmem:[#allocation32_spill] sm:$0xff] }
 0x471   : > { %v7642_v33 = vmax.f32 %v7641_v4, 0.0  ;;  %v7643_v58 = vld [vmem:[#allocation80_spill] sm:$0xff]  ;;  %v7650_v4 = vld [vmem:[#allocation35_spill] sm:$0xff] }
 0x472   : > { %v7644_v22 = vmax.f32 %v7643_v58, 0.0 }
 0x473   : > { %v2422_v26 = vpop.f32.mrf.mxu0  ;;  %v2535_v30 = vpop.f32.mrf.mxu1 }
 0x474   : > { %v2423_v54 = vadd.f32 %v2422_v26, %v5959_v34  ;;  %v6252_v48 = vpop.f32.mrf.mxu2  ;;  %v6254_v8 = vpop.f32.mrf.mxu3 }
 0x476   : > { %v6256_v3 = vadd.f32 %v2535_v30, %v2423_v54  ;;  %2825 = vmatmul.f32.gmra.mxu0 %v7640_v53  ;;  %2938 = vmatmul.f32.gmra.mxu1 %v7642_v33  ;;  %v7649_v53 = vmax.f32 %v7648_v31, 0.0  ;;  %v7651_v33 = vmax.f32 %v7650_v4, 0.0 }
 0x478   : > { %7638 = vst [vmem:[#allocation77_spill] sm:$0xff] %v6256_v3  ;;  %2647 = vmatmul.f32.gmra.mxu2 %v7644_v22  ;;  %2760 = vmatmul.f32.gmra.mxu3 %v7646_v13  ;;  %v7652_v22 = vld [vmem:[#allocation81_spill] sm:$0xff]  ;;  %v7655_v13 = vmax.f32 %v7654_v45, 0.0  ;;  %v7659_v45 = vld [vmem:[#allocation38_spill] sm:$0xff] }
 0x479   : > { %v7653_v58 = vmax.f32 %v7652_v22, 0.0  ;;  %v7657_v22 = vld [vmem:[#allocation111_spill] sm:$0xff] }
 0x47b   : > { %v2425_v51 = vpop.f32.mrf.mxu0  ;;  %v2538_v34 = vpop.f32.mrf.mxu1 }
 0x47c   : > { %v2426_v26 = vadd.f32 %v2425_v51, %v5992_v25  ;;  %v6267_v14 = vpop.f32.mrf.mxu2  ;;  %v6269_v30 = vpop.f32.mrf.mxu3  ;;  %v3069_v25 = vld [vmem:[%s6777_s7] sm:$0xff] }
 0x47d   : > { %v3085_v51 = vld [vmem:[%s6777_s7 + $0x80] sm:$0xff]  ;;  %3660 = vmatpush.msra.mxu2 %v3069_v25  ;;  %3120 = vmatpush.msrb.mxu0 %v3069_v25 }
 0x47e   : > { %v6271_v54 = vadd.f32 %v2538_v34, %v2426_v26  ;;  %2828 = vmatmul.f32.gmra.mxu0 %v7649_v53  ;;  %2941 = vmatmul.f32.gmra.mxu1 %v7651_v33  ;;  %v7663_v25 = vld [vmem:[#allocation39_spill] sm:$0xff] }
 0x47f   : > { %3676 = vmatpush.msra.mxu3 %v3085_v51  ;;  %3233 = vmatpush.msrb.mxu1 %v3085_v51  ;;  %v7664_v51 = vmax.f32 %v7663_v25, 0.0  ;;  %v7672_v25 = vld [vmem:[#allocation42_spill] sm:$0xff] }
 0x480   : > { %7647 = vst [vmem:[#allocation16_spill] sm:$0xff] %v6271_v54  ;;  %2650 = vmatmul.f32.gmra.mxu2 %v7653_v58  ;;  %2763 = vmatmul.f32.gmra.mxu3 %v7655_v13  ;;  %v7658_v58 = vmax.f32 %v7657_v22, 0.0  ;;  %v7660_v13 = vmax.f32 %v7659_v45, 0.0  ;;  %v7661_v54 = vld [vmem:[#allocation82_spill] sm:$0xff]  ;;  %v7666_v22 = vld [vmem:[#allocation112_spill] sm:$0xff]  ;;  %v7668_v45 = vld [vmem:[#allocation41_spill] sm:$0xff] }
 0x481   : > { %v7662_v3 = vmax.f32 %v7661_v54, 0.0 }
 0x483   : > { %v2428_v34 = vpop.f32.mrf.mxu0  ;;  %v2541_v26 = vpop.f32.mrf.mxu1 }
 0x484   : > { %v2429_v31 = vadd.f32 %v2428_v34, %v6017_v27  ;;  %v6288_v53 = vpop.f32.mrf.mxu2  ;;  %v6290_v4 = vpop.f32.mrf.mxu3 }
 0x486   : > { %v6292_v33 = vadd.f32 %v2541_v26, %v2429_v31  ;;  %2831 = vmatmul.f32.gmra.mxu0 %v7658_v58  ;;  %2944 = vmatmul.f32.gmra.mxu1 %v7660_v13  ;;  %v7667_v58 = vmax.f32 %v7666_v22, 0.0  ;;  %v7669_v13 = vmax.f32 %v7668_v45, 0.0  ;;  %v7675_v22 = vld [vmem:[#allocation50_spill] sm:$0xff]  ;;  %v7677_v45 = vld [vmem:[#allocation44_spill] sm:$0xff] }
 0x488   : > { %7656 = vst [vmem:[#allocation40_spill] sm:$0xff] %v6292_v33  ;;  %2653 = vmatmul.f32.gmra.mxu2 %v7662_v3  ;;  %2766 = vmatmul.f32.gmra.mxu3 %v7664_v51  ;;  %v7670_v3 = vld [vmem:[#allocation83_spill] sm:$0xff]  ;;  %v7673_v51 = vmax.f32 %v7672_v25, 0.0  ;;  %v7681_v25 = vld [vmem:[#allocation45_spill] sm:$0xff] }
 0x489   : > { %v7671_v54 = vmax.f32 %v7670_v3, 0.0  ;;  %v7679_v3 = vld [vmem:[#allocation84_spill] sm:$0xff] }
 0x48b   : > { %v2431_v41 = vpop.f32.mrf.mxu0  ;;  %v2544_v27 = vpop.f32.mrf.mxu1 }
 0x48c   : > { %v2432_v34 = vadd.f32 %v2431_v41, %v6044_v24  ;;  %v6303_v60 = vpop.f32.mrf.mxu2  ;;  %v6305_v26 = vpop.f32.mrf.mxu3 }
 0x48e   : > { %v6307_v31 = vadd.f32 %v2544_v27, %v2432_v34  ;;  %2834 = vmatmul.f32.gmra.mxu0 %v7667_v58  ;;  %2947 = vmatmul.f32.gmra.mxu1 %v7669_v13  ;;  %v7676_v58 = vmax.f32 %v7675_v22, 0.0  ;;  %v7678_v13 = vmax.f32 %v7677_v45, 0.0  ;;  %v7684_v22 = vld [vmem:[#allocation53_spill] sm:$0xff]  ;;  %v7686_v45 = vld [vmem:[#allocation47_spill] sm:$0xff] }
 0x490   : > { %7665 = vst [vmem:[#allocation13_spill] sm:$0xff] %v6307_v31  ;;  %2656 = vmatmul.f32.gmra.mxu2 %v7671_v54  ;;  %2769 = vmatmul.f32.gmra.mxu3 %v7673_v51  ;;  %v7680_v54 = vmax.f32 %v7679_v3, 0.0  ;;  %v7682_v51 = vmax.f32 %v7681_v25, 0.0  ;;  %v7688_v3 = vld [vmem:[#allocation85_spill] sm:$0xff] }
 0x491   : > { %v7690_v25 = vld [vmem:[#allocation113_spill] sm:$0xff] }
 0x493   : > { %v2434_v33 = vpop.f32.mrf.mxu0  ;;  %v2547_v24 = vpop.f32.mrf.mxu1 }
 0x494   : > { %v2435_v41 = vadd.f32 %v2434_v33, %v6063_v18  ;;  %v6318_v0 = vpop.f32.mrf.mxu2  ;;  %v6320_v27 = vpop.f32.mrf.mxu3 }
 0x496   : > { %v6322_v34 = vadd.f32 %v2547_v24, %v2435_v41  ;;  %2837 = vmatmul.f32.gmra.mxu0 %v7676_v58  ;;  %2950 = vmatmul.f32.gmra.mxu1 %v7678_v13  ;;  %v7685_v58 = vmax.f32 %v7684_v22, 0.0  ;;  %v7687_v13 = vmax.f32 %v7686_v45, 0.0  ;;  %v7694_v45 = vld [vmem:[#allocation126_spill] sm:$0xff] }
 0x498   : > { %7674 = vst [vmem:[#allocation18_spill] sm:$0xff] %v6322_v34  ;;  %2659 = vmatmul.f32.gmra.mxu2 %v7680_v54  ;;  %2772 = vmatmul.f32.gmra.mxu3 %v7682_v51  ;;  %v7689_v54 = vmax.f32 %v7688_v3, 0.0  ;;  %v7691_v51 = vmax.f32 %v7690_v25, 0.0 }
 0x49b   : > { %v2437_v31 = vpop.f32.mrf.mxu0  ;;  %v2550_v18 = vpop.f32.mrf.mxu1 }
 0x49c   : > { %v2438_v33 = vadd.f32 %v2437_v31, %v6083_v42  ;;  %v6333_v55 = vpop.f32.mrf.mxu2  ;;  %v6335_v24 = vpop.f32.mrf.mxu3 }
 0x49e   : > { %v6337_v41 = vadd.f32 %v2550_v18, %v2438_v33  ;;  %2840 = vmatmul.f32.gmra.mxu0 %v7685_v58  ;;  %2953 = vmatmul.f32.gmra.mxu1 %v7687_v13  ;;  %v3007_v33 = vmax.f32 %v5679_v6, 0.0  ;;  %v7693_v58 = vmax.f32 %v7454_v47, 0.0  ;;  %v7695_v13 = vmax.f32 %v7694_v45, 0.0  ;;  %v7698_v47 = vld [vmem:[#allocation127_spill] sm:$0xff] }
 0x4a0   : > { %7683 = vst [vmem:[#allocation43_spill] sm:$0xff] %v6337_v41  ;;  %2662 = vmatmul.f32.gmra.mxu2 %v7689_v54  ;;  %2775 = vmatmul.f32.gmra.mxu3 %v7691_v51 }
 0x4a3   : > { %v2796_v34 = vpop.f32.mrf.mxu0  ;;  %v2909_v42 = vpop.f32.mrf.mxu1 }
 0x4a4   : > { %v6347_v31 = vpop.f32.mrf.mxu2  ;;  %v6349_v50 = vpop.f32.mrf.mxu3  ;;  %v2797_v18 = vadd.f32 %v2796_v34, %v6102_v10  ;;  %v3009_v10 = vmax.f32 %v5712_v19, 0.0  ;;  %v7696_v34 = vld [vmem:[#allocation59_spill] sm:$0xff]  ;;  %v3011_v19 = vmax.f32 %v5733_v35, 0.0  ;;  %v3013_v35 = vmax.f32 %v5766_v46, 0.0 }
 0x4a5   : > { %v3015_v46 = vmax.f32 %v5787_v63, 0.0  ;;  %v3017_v63 = vmax.f32 %v5820_v1, 0.0  ;;  %v3019_v1 = vmax.f32 %v5841_v43, 0.0  ;;  %v3021_v43 = vmax.f32 %v5874_v16, 0.0 }
 0x4a6   : > { %v6353_v22 = vadd.f32 %v2909_v42, %v2797_v18  ;;  %2843 = vmatmul.f32.gmra.mxu0 %v7693_v58  ;;  %2956 = vmatmul.f32.gmra.mxu1 %v7695_v13  ;;  %v7697_v42 = vmax.f32 %v7696_v34, 0.0  ;;  %v7699_v18 = vmax.f32 %v7698_v47, 0.0  ;;  %v7702_v34 = vld [vmem:[#allocation24_spill] sm:$0xff] }
 0x4a8   : > { %7692 = vst [vmem:[#allocation15_spill] sm:$0xff] %v6353_v22  ;;  %3124 = vmatmul.f32.vlgmr.msra.gmra.mxu2 %v3007_v33 }
 0x4ab   : > { %v2799_v3 = vpop.f32.mrf.mxu0  ;;  %v2912_v54 = vpop.f32.mrf.mxu1 }
 0x4ac   : > { %v6359_v25 = vpop.f32.mrf.mxu2  ;;  %v6361_v51 = vpop.f32.mrf.mxu3  ;;  %v2800_v41 = vadd.f32 %v2799_v3, %v6122_v59  ;;  %v7700_v3 = vld [vmem:[#allocation62_spill] sm:$0xff] }
 0x4ae   : > { %v2913_v6 = vadd.f32 %v2912_v54, %v2800_v41  ;;  %2846 = vmatmul.f32.gmra.mxu0 %v7697_v42  ;;  %2959 = vmatmul.f32.gmra.mxu1 %v7699_v18  ;;  %v7701_v54 = vmax.f32 %v7700_v3, 0.0  ;;  %v7703_v42 = vmax.f32 %v7702_v34, 0.0  ;;  %v7706_v3 = vld [vmem:[#allocation51_spill] sm:$0xff] }
 0x4b0   : > { %v3008_v58 = vmax.f32 %v2913_v6, 0.0  ;;  %3127 = vmatmul.f32.gmra.mxu2 %v3009_v10 }
 0x4b2   : > { %3237 = vmatmul.f32.vlgmr.msra.gmra.mxu3 %v3008_v58 }
 0x4b3   : > { %v2802_v33 = vpop.f32.mrf.mxu0  ;;  %v2915_v45 = vpop.f32.mrf.mxu1 }
 0x4b4   : > { %v6369_v13 = vpop.f32.mrf.mxu2  ;;  %v6371_v22 = vpop.f32.mrf.mxu3  ;;  %v2803_v59 = vadd.f32 %v2802_v33, %v6136_v12 }
 0x4b6   : > { %v2916_v41 = vadd.f32 %v2915_v45, %v2803_v59  ;;  %2849 = vmatmul.f32.gmra.mxu0 %v7701_v54  ;;  %2962 = vmatmul.f32.gmra.mxu1 %v7703_v42  ;;  %v7704_v45 = vld [vmem:[#allocation65_spill] sm:$0xff]  ;;  %v7707_v54 = vmax.f32 %v7706_v3, 0.0 }
 0x4b7   : > { %v7705_v59 = vmax.f32 %v7704_v45, 0.0  ;;  %v7710_v45 = vld [vmem:[#allocation25_spill] sm:$0xff] }
 0x4b8   : > { %v3010_v6 = vmax.f32 %v2916_v41, 0.0  ;;  %3130 = vmatmul.f32.gmra.mxu2 %v3011_v19 }
 0x4ba   : > { %3240 = vmatmul.f32.gmra.mxu3 %v3010_v6 }
 0x4bb   : > { %v2805_v10 = vpop.f32.mrf.mxu0  ;;  %v2918_v47 = vpop.f32.mrf.mxu1 }
 0x4bc   : > { %v6379_v18 = vpop.f32.mrf.mxu2  ;;  %v6381_v58 = vpop.f32.mrf.mxu3  ;;  %v2806_v12 = vadd.f32 %v2805_v10, %v6156_v37 }
 0x4be   : > { %v2919_v33 = vadd.f32 %v2918_v47, %v2806_v12  ;;  %2852 = vmatmul.f32.gmra.mxu0 %v7705_v59  ;;  %2965 = vmatmul.f32.gmra.mxu1 %v7707_v54  ;;  %v7708_v47 = vld [vmem:[#allocation68_spill] sm:$0xff]  ;;  %v7711_v59 = vmax.f32 %v7710_v45, 0.0 }
 0x4bf   : > { %v7709_v12 = vmax.f32 %v7708_v47, 0.0  ;;  %v7714_v47 = vld [vmem:[#allocation54_spill] sm:$0xff] }
 0x4c0   : > { %v3012_v41 = vmax.f32 %v2919_v33, 0.0  ;;  %3133 = vmatmul.f32.gmra.mxu2 %v3013_v35 }
 0x4c2   : > { %3243 = vmatmul.f32.gmra.mxu3 %v3012_v41 }
 0x4c3   : > { %v2808_v19 = vpop.f32.mrf.mxu0  ;;  %v2921_v34 = vpop.f32.mrf.mxu1 }
 0x4c4   : > { %v6389_v42 = vpop.f32.mrf.mxu2  ;;  %v6391_v6 = vpop.f32.mrf.mxu3  ;;  %v2809_v37 = vadd.f32 %v2808_v19, %v6170_v17 }
 0x4c6   : > { %v2922_v10 = vadd.f32 %v2921_v34, %v2809_v37  ;;  %2855 = vmatmul.f32.gmra.mxu0 %v7709_v12  ;;  %2968 = vmatmul.f32.gmra.mxu1 %v7711_v59  ;;  %v7712_v34 = vld [vmem:[#allocation71_spill] sm:$0xff]  ;;  %v7715_v12 = vmax.f32 %v7714_v47, 0.0 }
 0x4c7   : > { %v7713_v37 = vmax.f32 %v7712_v34, 0.0  ;;  %v7718_v34 = vld [vmem:[#allocation26_spill] sm:$0xff] }
 0x4c8   : > { %v3014_v33 = vmax.f32 %v2922_v10, 0.0  ;;  %3136 = vmatmul.f32.gmra.mxu2 %v3015_v46 }
 0x4ca   : > { %3246 = vmatmul.f32.gmra.mxu3 %v3014_v33 }
 0x4cb   : > { %v2811_v35 = vpop.f32.mrf.mxu0  ;;  %v2924_v3 = vpop.f32.mrf.mxu1 }
 0x4cc   : > { %v6399_v54 = vpop.f32.mrf.mxu2  ;;  %v6401_v41 = vpop.f32.mrf.mxu3  ;;  %v2812_v17 = vadd.f32 %v2811_v35, %v6190_v28 }
 0x4ce   : > { %v2925_v19 = vadd.f32 %v2924_v3, %v2812_v17  ;;  %2858 = vmatmul.f32.gmra.mxu0 %v7713_v37  ;;  %2971 = vmatmul.f32.gmra.mxu1 %v7715_v12  ;;  %v7716_v3 = vld [vmem:[#allocation74_spill] sm:$0xff]  ;;  %v7719_v37 = vmax.f32 %v7718_v34, 0.0 }
 0x4cf   : > { %v7717_v17 = vmax.f32 %v7716_v3, 0.0 }
 0x4d0   : > { %v3016_v10 = vmax.f32 %v2925_v19, 0.0  ;;  %3139 = vmatmul.f32.gmra.mxu2 %v3017_v63 }
 0x4d2   : > { %3249 = vmatmul.f32.gmra.mxu3 %v3016_v10 }
 0x4d3   : > { %v2814_v46 = vpop.f32.mrf.mxu0  ;;  %v2927_v45 = vpop.f32.mrf.mxu1 }
 0x4d4   : > { %v6409_v59 = vpop.f32.mrf.mxu2  ;;  %v6411_v33 = vpop.f32.mrf.mxu3  ;;  %v2815_v28 = vadd.f32 %v2814_v46, %v6204_v15  ;;  %v2595_v46 = vadd.f32 %v6231_v49, %v6092_v44  ;;  %v3023_v49 = vmax.f32 %v5895_v40, 0.0 }
 0x4d6   : > { %v2928_v35 = vadd.f32 %v2927_v45, %v2815_v28  ;;  %2861 = vmatmul.f32.gmra.mxu0 %v7717_v17  ;;  %2974 = vmatmul.f32.gmra.mxu1 %v7719_v37  ;;  %v7720_v28 = vld [vmem:[#allocation11_spill] sm:$0xff]  ;;  %v2708_v34 = vadd.f32 %v6233_v21, %v2595_v46 }
 0x4d7   : > { %v7721_v3 = vmax.f32 %v7720_v28, 0.0  ;;  %v7724_v28 = vld [vmem:[#allocation12_spill] sm:$0xff] }
 0x4d8   : > { %v3018_v19 = vmax.f32 %v2928_v35, 0.0  ;;  %3142 = vmatmul.f32.gmra.mxu2 %v3019_v1  ;;  %v7722_v35 = vld [vmem:[#allocation57_spill] sm:$0xff] }
 0x4d9   : > { %v7723_v1 = vmax.f32 %v7722_v35, 0.0 }
 0x4da   : > { %3252 = vmatmul.f32.gmra.mxu3 %v3018_v19 }
 0x4db   : > { %v2817_v63 = vpop.f32.mrf.mxu0  ;;  %v2930_v47 = vpop.f32.mrf.mxu1 }
 0x4dc   : > { %v6419_v12 = vpop.f32.mrf.mxu2  ;;  %v6421_v10 = vpop.f32.mrf.mxu3  ;;  %v2818_v15 = vadd.f32 %v2817_v63, %v6224_v39 }
 0x4de   : > { %v2931_v45 = vadd.f32 %v2930_v47, %v2818_v15  ;;  %2864 = vmatmul.f32.gmra.mxu0 %v7721_v3  ;;  %2977 = vmatmul.f32.gmra.mxu1 %v7723_v1  ;;  %v2598_v47 = vadd.f32 %v6252_v48, %v6092_v44  ;;  %v7725_v3 = vmax.f32 %v7724_v28, 0.0  ;;  %v3025_v48 = vmax.f32 %v5928_v7, 0.0 }
 0x4e0   : > { %v3020_v17 = vmax.f32 %v2931_v45, 0.0  ;;  %3145 = vmatmul.f32.gmra.mxu2 %v3021_v43  ;;  %v7726_v43 = vld [vmem:[#allocation27_spill] sm:$0xff]  ;;  %v2711_v46 = vadd.f32 %v6254_v8, %v2598_v47 }
 0x4e1   : > { %v7727_v45 = vmax.f32 %v7726_v43, 0.0 }
 0x4e2   : > { %3255 = vmatmul.f32.gmra.mxu3 %v3020_v17 }
 0x4e3   : > { %v2820_v37 = vpop.f32.mrf.mxu0  ;;  %v2933_v19 = vpop.f32.mrf.mxu1 }
 0x4e4   : > { %v6432_v39 = vpop.f32.mrf.mxu2  ;;  %v6434_v16 = vpop.f32.mrf.mxu3  ;;  %v2821_v63 = vadd.f32 %v2820_v37, %v2708_v34  ;;  %v2601_v37 = vadd.f32 %v6267_v14, %v6092_v44  ;;  %v3027_v14 = vmax.f32 %v5953_v20, 0.0 }
 0x4e6   : > { %v2934_v15 = vadd.f32 %v2933_v19, %v2821_v63  ;;  %2867 = vmatmul.f32.gmra.mxu0 %v7725_v3  ;;  %2980 = vmatmul.f32.gmra.mxu1 %v7727_v45  ;;  %v7728_v63 = vld [vmem:[#allocation14_spill] sm:$0xff]  ;;  %v2714_v47 = vadd.f32 %v6269_v30, %v2601_v37 }
 0x4e7   : > { %v7729_v28 = vmax.f32 %v7728_v63, 0.0 }
 0x4e8   : > { %v3022_v21 = vmax.f32 %v2934_v15, 0.0  ;;  %3148 = vmatmul.f32.gmra.mxu2 %v3023_v49  ;;  %v7730_v49 = vld [vmem:[#allocation60_spill] sm:$0xff] }
 0x4e9   : > { %v7731_v15 = vmax.f32 %v7730_v49, 0.0 }
 0x4ea   : > { %3258 = vmatmul.f32.gmra.mxu3 %v3022_v21 }
 0x4eb   : > { %v2823_v35 = vpop.f32.mrf.mxu0  ;;  %v2936_v1 = vpop.f32.mrf.mxu1 }
 0x4ec   : > { %v6444_v17 = vpop.f32.mrf.mxu2  ;;  %v6446_v40 = vpop.f32.mrf.mxu3  ;;  %v2824_v34 = vadd.f32 %v2823_v35, %v2711_v46  ;;  %v2604_v46 = vadd.f32 %v6288_v53, %v6092_v44  ;;  %v3029_v53 = vmax.f32 %v5986_v11, 0.0 }
 0x4ee   : > { %v2937_v19 = vadd.f32 %v2936_v1, %v2824_v34  ;;  %2870 = vmatmul.f32.gmra.mxu0 %v7729_v28  ;;  %2983 = vmatmul.f32.gmra.mxu1 %v7731_v15  ;;  %v7732_v1 = vmax.f32 %v7514_v29, 0.0  ;;  %v7733_v34 = vmax.f32 %v5904_v9, 0.0  ;;  %v2607_v29 = vadd.f32 %v6303_v60, %v6092_v44 }
 0x4ef   : > { %v7734_v9 = vmax.f32 %v7519_v5, 0.0  ;;  %v7735_v15 = vmax.f32 %v5937_v23, 0.0  ;;  %v3031_v60 = vmax.f32 %v6011_v2, 0.0  ;;  %v2610_v5 = vadd.f32 %v6318_v0, %v6092_v44 }
 0x4f0   : > { %v3024_v8 = vmax.f32 %v2937_v19, 0.0  ;;  %3151 = vmatmul.f32.gmra.mxu2 %v3025_v48  ;;  %v2717_v48 = vadd.f32 %v6290_v4, %v2604_v46  ;;  %v7736_v23 = vmax.f32 %v7524_v36, 0.0  ;;  %v7737_v46 = vmax.f32 %v5964_v52, 0.0 }
 0x4f1   : > { %v2613_v0 = vadd.f32 %v6333_v55, %v6092_v44  ;;  %v7738_v52 = vmax.f32 %v7529_v56, 0.0  ;;  %v3035_v55 = vmax.f32 %v6057_v61, 0.0 }
 0x4f2   : > { %3261 = vmatmul.f32.gmra.mxu3 %v3024_v8  ;;  %v2720_v8 = vadd.f32 %v6305_v26, %v2607_v29 }
 0x4f3   : > { %v2826_v3 = vpop.f32.mrf.mxu0  ;;  %v2939_v43 = vpop.f32.mrf.mxu1 }
 0x4f4   : > { %v6456_v45 = vpop.f32.mrf.mxu2  ;;  %v6458_v7 = vpop.f32.mrf.mxu3  ;;  %v2827_v21 = vadd.f32 %v2826_v3, %v2714_v47 }
 0x4f6   : > { %v2940_v35 = vadd.f32 %v2939_v43, %v2827_v21  ;;  %2873 = vmatmul.f32.gmra.mxu0 %v7732_v1  ;;  %2986 = vmatmul.f32.gmra.mxu1 %v7733_v34 }
 0x4f8   : > { %v3026_v30 = vmax.f32 %v2940_v35, 0.0  ;;  %3154 = vmatmul.f32.gmra.mxu2 %v3027_v14  ;;  %v2723_v35 = vadd.f32 %v6320_v27, %v2610_v5 }
 0x4fa   : > { %3264 = vmatmul.f32.gmra.mxu3 %v3026_v30 }
 0x4fb   : > { %v2829_v37 = vpop.f32.mrf.mxu0  ;;  %v2942_v19 = vpop.f32.mrf.mxu1 }
 0x4fc   : > { %v6468_v63 = vpop.f32.mrf.mxu2  ;;  %v6470_v20 = vpop.f32.mrf.mxu3  ;;  %v2830_v28 = vadd.f32 %v2829_v37, %v2717_v48  ;;  %v3033_v48 = vmax.f32 %v6038_v62, 0.0 }
 0x4fe   : > { %v2943_v49 = vadd.f32 %v2942_v19, %v2830_v28  ;;  %2876 = vmatmul.f32.gmra.mxu0 %v7734_v9  ;;  %2989 = vmatmul.f32.gmra.mxu1 %v7735_v15  ;;  %v7739_v19 = vmax.f32 %v5997_v32, 0.0  ;;  %v2726_v28 = vadd.f32 %v6335_v24, %v2613_v0  ;;  %v2616_v9 = vadd.f32 %v6347_v31, %v6092_v44  ;;  %v7742_v31 = vld [vmem:[#allocation63_spill] sm:$0xff] }
 0x4ff   : > { %v7740_v15 = vmax.f32 %v7536_v38, 0.0  ;;  %v7741_v32 = vmax.f32 %v6020_v57, 0.0  ;;  %v2619_v38 = vadd.f32 %v6359_v25, %v6092_v44  ;;  %v7743_v57 = vld [vmem:[#allocation86_spill] sm:$0xff]  ;;  %v7748_v0 = vld [vmem:[#allocation15_spill] sm:$0xff] }
 0x500   : > { %v3028_v4 = vmax.f32 %v2943_v49, 0.0  ;;  %3157 = vmatmul.f32.gmra.mxu2 %v3029_v53  ;;  %v3006_v25 = vmax.f32 %v7748_v0, 0.0 }
 0x502   : > { %3267 = vmatmul.f32.gmra.mxu3 %v3028_v4 }
 0x503   : > { %v2832_v47 = vpop.f32.mrf.mxu0  ;;  %v2945_v3 = vpop.f32.mrf.mxu1 }
 0x504   : > { %v6480_v43 = vpop.f32.mrf.mxu2  ;;  %v6482_v11 = vpop.f32.mrf.mxu3  ;;  %v2833_v21 = vadd.f32 %v2832_v47, %v2720_v8  ;;  %v2729_v8 = vadd.f32 %v6349_v50, %v2616_v9  ;;  %v2732_v50 = vadd.f32 %v6361_v51, %v2619_v38 }
 0x506   : > { %v2946_v14 = vadd.f32 %v2945_v3, %v2833_v21  ;;  %2879 = vmatmul.f32.gmra.mxu0 %v7736_v23  ;;  %2992 = vmatmul.f32.gmra.mxu1 %v7737_v46  ;;  %v7745_v23 = vld [vmem:[#allocation28_spill] sm:$0xff] }
 0x507   : > { %v7746_v46 = vmax.f32 %v7745_v23, 0.0 }
 0x508   : > { %v3030_v26 = vmax.f32 %v2946_v14, 0.0  ;;  %3160 = vmatmul.f32.gmra.mxu2 %v3031_v60  ;;  %v3037_v60 = vmax.f32 %v7742_v31, 0.0  ;;  %v7744_v14 = vmax.f32 %v7743_v57, 0.0 }
 0x50a   : > { %3270 = vmatmul.f32.gmra.mxu3 %v3030_v26 }
 0x50b   : > { %v2835_v1 = vpop.f32.mrf.mxu0  ;;  %v2948_v34 = vpop.f32.mrf.mxu1 }
 0x50c   : > { %v6492_v30 = vpop.f32.mrf.mxu2  ;;  %v2836_v2 = vadd.f32 %v2835_v1, %v2723_v35  ;;  %v6497_v36 = vpop.f32.mrf.mxu3 }
 0x50e   : > { %v2949_v37 = vadd.f32 %v2948_v34, %v2836_v2  ;;  %2882 = vmatmul.f32.gmra.mxu0 %v7738_v52  ;;  %2995 = vmatmul.f32.gmra.mxu1 %v7739_v19  ;;  %v7747_v2 = vld [vmem:[#allocation56_spill] sm:$0xff]  ;;  %v7749_v19 = vld [vmem:[#allocation29_spill] sm:$0xff] }
 0x510   : > { %v3032_v27 = vmax.f32 %v2949_v37, 0.0  ;;  %3163 = vmatmul.f32.gmra.mxu2 %v3033_v48  ;;  %v3005_v48 = vmax.f32 %v7747_v2, 0.0 }
 0x512   : > { %3273 = vmatmul.f32.gmra.mxu3 %v3032_v27  ;;  %v3039_v27 = vmax.f32 %v7749_v19, 0.0 }
 0x513   : > { %v2838_v53 = vpop.f32.mrf.mxu0  ;;  %v2951_v29 = vpop.f32.mrf.mxu1 }
 0x514   : > { %v6504_v62 = vpop.f32.mrf.mxu2  ;;  %v2839_v49 = vadd.f32 %v2838_v53, %v2726_v28  ;;  %v6513_v4 = vpop.f32.mrf.mxu3  ;;  %v2622_v28 = vadd.f32 %v6369_v13, %v6092_v44  ;;  %v2625_v13 = vadd.f32 %v6379_v18, %v6092_v44 }
 0x516   : > { %v2952_v56 = vadd.f32 %v2951_v29, %v2839_v49  ;;  %2885 = vmatmul.f32.gmra.mxu0 %v7740_v15  ;;  %2998 = vmatmul.f32.gmra.mxu1 %v7741_v32  ;;  %v2735_v29 = vadd.f32 %v6371_v22, %v2622_v28  ;;  %v7750_v32 = vld [vmem:[#allocation66_spill] sm:$0xff]  ;;  %v6544_v22 = vld [vmem:[%s6778_s8] ss:$0 sm:$0xff] }
 0x518   : > { %v3034_v24 = vmax.f32 %v2952_v56, 0.0  ;;  %3166 = vmatmul.f32.gmra.mxu2 %v3035_v55 }
 0x51a   : > { %3276 = vmatmul.f32.gmra.mxu3 %v3034_v24  ;;  %v3041_v24 = vmax.f32 %v7750_v32, 0.0 }
 0x51b   : > { %v2841_v47 = vpop.f32.mrf.mxu0  ;;  %v2954_v3 = vpop.f32.mrf.mxu1 }
 0x51c   : > { %v6516_v61 = vpop.f32.mrf.mxu2  ;;  %v2842_v21 = vadd.f32 %v2841_v47, %v2729_v8  ;;  %v6526_v35 = vpop.f32.mrf.mxu3  ;;  %v3331_v47 = vlaneseq }
 0x51e   : > { %v2955_v5 = vadd.f32 %v2954_v3, %v2842_v21  ;;  %2888 = vmatmul.f32.gmra.mxu0 %v7744_v14  ;;  %3001 = vmatmul.f32.gmra.mxu1 %v7746_v46  ;;  %v2738_v21 = vadd.f32 %v6381_v58, %v2625_v13  ;;  %v3332_v31 = vand.u32 127, %v3331_v47  ;;  %v7751_v14 = vld [vmem:[#allocation30_spill] sm:$0xff]  ;;  %v2628_v46 = vadd.f32 %v6389_v42, %v6092_v44 }
 0x51f   : > { %v3043_v23 = vmax.f32 %v7751_v14, 0.0 }
 0x520   : > { %v3036_v26 = vmax.f32 %v2955_v5, 0.0  ;;  %3169 = vmatmul.f32.gmra.mxu2 %v3037_v60  ;;  %vm3333_vm1 = vcmp.ge.s32.totalorder %v3332_v31, 4  ;;  %vm3334_vm2 = vcmp.lt.s32.totalorder %v3332_v31, 8 }
 0x521   : > { %vm6554_vm3 = vmand %vm3333_vm1, %vm3334_vm2 }
 0x522   : > { %3279 = vmatmul.f32.gmra.mxu3 %v3036_v26 }
 0x523   : > { %v2844_v1 = vpop.f32.mrf.mxu0  ;;  %v2957_v34 = vpop.f32.mrf.mxu1 }
 0x524   : > { %v6530_v37 = vpop.f32.mrf.mxu2  ;;  %v2845_v52 = vadd.f32 %v2844_v1, %v2732_v50  ;;  %v6536_v15 = vpop.f32.mrf.mxu3 }
 0x526   : > { %v2958_v53 = vadd.f32 %v2957_v34, %v2845_v52  ;;  %3121 = vmatmul.f32.vlgmr.msrb.gmra.mxu0 %v3005_v48  ;;  %3234 = vmatmul.f32.vlgmr.msrb.gmra.mxu1 %v3006_v25  ;;  %v2741_v48 = vadd.f32 %v6391_v6, %v2628_v46  ;;  %v2631_v6 = vadd.f32 %v6399_v54, %v6092_v44 }
 0x528   : > { %v3038_v51 = vmax.f32 %v2958_v53, 0.0  ;;  %3172 = vmatmul.f32.gmra.mxu2 %v3039_v27  ;;  %v2744_v32 = vadd.f32 %v6401_v41, %v2631_v6 }
 0x52a   : > { %3282 = vmatmul.f32.gmra.mxu3 %v3038_v51  ;;  %v7754_v51 = vld [vmem:[#allocation69_spill] sm:$0xff] }
 0x52b   : > { %v2847_v49 = vpop.f32.mrf.mxu0  ;;  %v2960_v55 = vpop.f32.mrf.mxu1 }
 0x52c   : > { %v2848_v9 = vadd.f32 %v2847_v49, %v2735_v29  ;;  %v3125_v56 = vpop.f32.mrf.mxu2  ;;  %v3045_v29 = vmax.f32 %v7754_v51, 0.0 }
 0x52d   : > { %v3126_v5 = vadd.f32 %v6544_v22, %v3125_v56 }
 0x52e   : > { %v2961_v8 = vadd.f32 %v2960_v55, %v2848_v9 }
 0x530   : > { %v3040_v3 = vmax.f32 %v2961_v8, 0.0  ;;  %3175 = vmatmul.f32.gmra.mxu2 %v3041_v24 }
 0x532   : > { %3285 = vmatmul.f32.gmra.mxu3 %v3040_v3 }
 0x533   : > { %v2850_v60 = vpop.f32.mrf.mxu0  ;;  %v2963_v38 = vpop.f32.mrf.mxu1 }
 0x534   : > { %v2851_v57 = vadd.f32 %v2850_v60, %v2738_v21  ;;  %v3128_v18 = vpop.f32.mrf.mxu2  ;;  %v7755_v60 = vld [vmem:[#allocation31_spill] sm:$0xff] }
 0x535   : > { %v3238_v26 = vpop.f32.mrf.mxu3  ;;  %v3129_v52 = vadd.f32 %v6544_v22, %v3128_v18 }
 0x536   : > { %v2964_v50 = vadd.f32 %v2963_v38, %v2851_v57  ;;  %v3239_v1 = vadd.f32 %v3238_v26, %v3126_v5  ;;  %v3047_v38 = vmax.f32 %v7755_v60, 0.0  ;;  %v2634_v5 = vadd.f32 %v6409_v59, %v6092_v44 }
 0x538   : > { %v3042_v58 = vmax.f32 %v2964_v50, 0.0  ;;  %v3337_v34 = vmax.f32 %v3239_v1, -20.0  ;;  %3178 = vmatmul.f32.gmra.mxu2 %v3043_v23  ;;  %v2747_v23 = vadd.f32 %v6411_v33, %v2634_v5 }
 0x53a   : > { %v3369_v0 = vmin.f32 %v3337_v34, 2.0  ;;  %3288 = vmatmul.f32.gmra.mxu3 %v3042_v58 }
 0x53b   : > { %v2853_v25 = vpop.f32.mrf.mxu0  ;;  %v2966_v42 = vpop.f32.mrf.mxu1 }
 0x53c   : > { %v3401_v19 = vsel %vm6554_vm3, %v3369_v0, %v3239_v1  ;;  %v2854_v27 = vadd.f32 %v2853_v25, %v2741_v48  ;;  %v3131_v28 = vpop.f32.mrf.mxu2  ;;  %v7756_v0 = vld [vmem:[#allocation72_spill] sm:$0xff] }
 0x53d   : > { %3433 = vst [vmem:[%s6562_s24 + $0x8] sm:$0xff] %v3401_v19  ;;  %v3241_v53 = vpop.f32.mrf.mxu3  ;;  %v3132_v47 = vadd.f32 %v6544_v22, %v3131_v28  ;;  %v3049_v25 = vmax.f32 %v7756_v0, 0.0 }
 0x53e   : > { %v2967_v49 = vadd.f32 %v2966_v42, %v2854_v27  ;;  %v3242_v55 = vadd.f32 %v3241_v53, %v3129_v52  ;;  %v2637_v42 = vadd.f32 %v6419_v12, %v6092_v44 }
 0x540   : > { %v3044_v9 = vmax.f32 %v2967_v49, 0.0  ;;  %v3338_v56 = vmax.f32 %v3242_v55, -20.0  ;;  %3181 = vmatmul.f32.gmra.mxu2 %v3045_v29  ;;  %v2750_v28 = vadd.f32 %v6421_v10, %v2637_v42  ;;  %v7759_v42 = vld [vmem:[#allocation37_spill] sm:$0xff] }
 0x542   : > { %v3370_v24 = vmin.f32 %v3338_v56, 2.0  ;;  %3291 = vmatmul.f32.gmra.mxu3 %v3044_v9  ;;  %v7757_v56 = vld [vmem:[#allocation34_spill] sm:$0xff] }
 0x543   : > { %v2856_v13 = vpop.f32.mrf.mxu0  ;;  %v2969_v8 = vpop.f32.mrf.mxu1 }
 0x544   : > { %v3402_v3 = vsel %vm6554_vm3, %v3370_v24, %v3242_v55  ;;  %v2857_v21 = vadd.f32 %v2856_v13, %v2744_v32  ;;  %v3134_v31 = vpop.f32.mrf.mxu2  ;;  %v3051_v32 = vmax.f32 %v7757_v56, 0.0  ;;  %v2640_v24 = vadd.f32 %v6432_v39, %v6092_v44  ;;  %v7760_v56 = vld [vmem:[#allocation77_spill] sm:$0xff] }
 0x545   : > { %3434 = vst [vmem:[%s6562_s24 + $0x10] sm:$0xff] %v3402_v3  ;;  %v3244_v54 = vpop.f32.mrf.mxu3  ;;  %v3135_v1 = vadd.f32 %v6544_v22, %v3134_v31 }
 0x546   : > { %v2970_v41 = vadd.f32 %v2969_v8, %v2857_v21  ;;  %v3245_v57 = vadd.f32 %v3244_v54, %v3132_v47  ;;  %v2753_v3 = vadd.f32 %v6434_v16, %v2640_v24  ;;  %v2649_v24 = vadd.f32 %v6468_v63, %v6092_v44 }
 0x548   : > { %v3046_v18 = vmax.f32 %v2970_v41, 0.0  ;;  %v3339_v14 = vmax.f32 %v3245_v57, -20.0  ;;  %3184 = vmatmul.f32.gmra.mxu2 %v3047_v38 }
 0x54a   : > { %v3371_v46 = vmin.f32 %v3339_v14, 2.0  ;;  %3294 = vmatmul.f32.gmra.mxu3 %v3046_v18  ;;  %v2643_v14 = vadd.f32 %v6444_v17, %v6092_v44 }
 0x54b   : > { %v2859_v26 = vpop.f32.mrf.mxu0  ;;  %v2972_v50 = vpop.f32.mrf.mxu1 }
 0x54c   : > { %v3403_v58 = vsel %vm6554_vm3, %v3371_v46, %v3245_v57  ;;  %v2860_v34 = vadd.f32 %v2859_v26, %v2747_v23  ;;  %v3137_v48 = vpop.f32.mrf.mxu2  ;;  %v7758_v57 = vld [vmem:[#allocation75_spill] sm:$0xff] }
 0x54d   : > { %3435 = vst [vmem:[%s6562_s24 + $0x18] sm:$0xff] %v3403_v58  ;;  %v3247_v59 = vpop.f32.mrf.mxu3  ;;  %v3138_v6 = vadd.f32 %v6544_v22, %v3137_v48  ;;  %v3053_v18 = vmax.f32 %v7758_v57, 0.0  ;;  %v2652_v57 = vadd.f32 %v6480_v43, %v6092_v44 }
 0x54e   : > { %v2973_v33 = vadd.f32 %v2972_v50, %v2860_v34  ;;  %v3248_v52 = vadd.f32 %v3247_v59, %v3135_v1  ;;  %v2756_v50 = vadd.f32 %v6446_v40, %v2643_v14 }
 0x550   : > { %v3048_v19 = vmax.f32 %v2973_v33, 0.0  ;;  %v3340_v27 = vmax.f32 %v3248_v52, -20.0  ;;  %3187 = vmatmul.f32.gmra.mxu2 %v3049_v25  ;;  %v3055_v33 = vmax.f32 %v7759_v42, 0.0 }
 0x552   : > { %v3372_v53 = vmin.f32 %v3340_v27, 2.0  ;;  %3297 = vmatmul.f32.gmra.mxu3 %v3048_v19 }
 0x553   : > { %v2862_v51 = vpop.f32.mrf.mxu0  ;;  %v2975_v29 = vpop.f32.mrf.mxu1 }
 0x554   : > { %v3404_v49 = vsel %vm6554_vm3, %v3372_v53, %v3248_v52  ;;  %v2863_v55 = vadd.f32 %v2862_v51, %v2750_v28  ;;  %v3140_v9 = vpop.f32.mrf.mxu2  ;;  %v2646_v52 = vadd.f32 %v6456_v45, %v6092_v44 }
 0x555   : > { %3436 = vst [vmem:[%s6562_s24 + $0x20] sm:$0xff] %v3404_v49  ;;  %v3250_v12 = vpop.f32.mrf.mxu3  ;;  %v3141_v60 = vadd.f32 %v6544_v22, %v3140_v9 }
 0x556   : > { %v2976_v10 = vadd.f32 %v2975_v29, %v2863_v55  ;;  %v3251_v13 = vadd.f32 %v3250_v12, %v3138_v6  ;;  %v2759_v53 = vadd.f32 %v6458_v7, %v2646_v52 }
 0x558   : > { %v3050_v8 = vmax.f32 %v2976_v10, 0.0  ;;  %v3341_v47 = vmax.f32 %v3251_v13, -20.0  ;;  %3190 = vmatmul.f32.gmra.mxu2 %v3051_v32  ;;  %v3057_v32 = vmax.f32 %v7760_v56, 0.0 }
 0x55a   : > { %v3373_v21 = vmin.f32 %v3341_v47, 2.0  ;;  %3300 = vmatmul.f32.gmra.mxu3 %v3050_v8  ;;  %v2762_v47 = vadd.f32 %v6470_v20, %v2649_v24 }
 0x55b   : > { %v2865_v31 = vpop.f32.mrf.mxu0  ;;  %v2978_v54 = vpop.f32.mrf.mxu1 }
 0x55c   : > { %v3405_v38 = vsel %vm6554_vm3, %v3373_v21, %v3251_v13  ;;  %v2866_v5 = vadd.f32 %v2865_v31, %v2753_v3  ;;  %v3143_v41 = vpop.f32.mrf.mxu2 }
 0x55d   : > { %3437 = vst [vmem:[%s6562_s24 + $0x28] sm:$0xff] %v3405_v38  ;;  %v3253_v39 = vpop.f32.mrf.mxu3  ;;  %v3144_v48 = vadd.f32 %v6544_v22, %v3143_v41  ;;  %v7761_v41 = vld [vmem:[#allocation16_spill] sm:$0xff] }
 0x55e   : > { %v2979_v16 = vadd.f32 %v2978_v54, %v2866_v5  ;;  %v3254_v23 = vadd.f32 %v3253_v39, %v3141_v60  ;;  %v3059_v39 = vmax.f32 %v7761_v41, 0.0 }
 0x560   : > { %v3052_v46 = vmax.f32 %v2979_v16, 0.0  ;;  %v3342_v26 = vmax.f32 %v3254_v23, -20.0  ;;  %3193 = vmatmul.f32.gmra.mxu2 %v3053_v18 }
 0x562   : > { %v3374_v1 = vmin.f32 %v3342_v26, 2.0  ;;  %3303 = vmatmul.f32.gmra.mxu3 %v3052_v46 }
 0x563   : > { %v2868_v58 = vpop.f32.mrf.mxu0  ;;  %v2981_v34 = vpop.f32.mrf.mxu1 }
 0x564   : > { %v3406_v59 = vsel %vm6554_vm3, %v3374_v1, %v3254_v23  ;;  %v2869_v0 = vadd.f32 %v2868_v58, %v2756_v50  ;;  %v3146_v25 = vpop.f32.mrf.mxu2  ;;  %v2765_v23 = vadd.f32 %v6482_v11, %v2652_v57 }
 0x565   : > { %3438 = vst [vmem:[%s6562_s24 + $0x30] sm:$0xff] %v3406_v59  ;;  %v3256_v17 = vpop.f32.mrf.mxu3  ;;  %v3147_v49 = vadd.f32 %v6544_v22, %v3146_v25  ;;  %v7762_v59 = vld [vmem:[#allocation40_spill] sm:$0xff]  ;;  %v2655_v25 = vadd.f32 %v6492_v30, %v6092_v44 }
 0x566   : > { %v2982_v40 = vadd.f32 %v2981_v34, %v2869_v0  ;;  %v3257_v19 = vadd.f32 %v3256_v17, %v3144_v48  ;;  %v3061_v0 = vmax.f32 %v7762_v59, 0.0 }
 0x567   : > { %v2768_v52 = vadd.f32 %v6497_v36, %v2655_v25 }
 0x568   : > { %v3054_v27 = vmax.f32 %v2982_v40, 0.0  ;;  %v3343_v28 = vmax.f32 %v3257_v19, -20.0  ;;  %3196 = vmatmul.f32.gmra.mxu2 %v3055_v33 }
 0x56a   : > { %v3375_v51 = vmin.f32 %v3343_v28, 2.0  ;;  %3306 = vmatmul.f32.gmra.mxu3 %v3054_v27 }
 0x56b   : > { %v2871_v29 = vpop.f32.mrf.mxu0  ;;  %v2984_v6 = vpop.f32.mrf.mxu1 }
 0x56c   : > { %v3407_v55 = vsel %vm6554_vm3, %v3375_v51, %v3257_v19  ;;  %v2872_v9 = vadd.f32 %v2871_v29, %v2759_v53  ;;  %v3149_v12 = vpop.f32.mrf.mxu2 }
 0x56d   : > { %3439 = vst [vmem:[%s6562_s24 + $0x38] sm:$0xff] %v3407_v55  ;;  %v3259_v45 = vpop.f32.mrf.mxu3  ;;  %v3150_v54 = vadd.f32 %v6544_v22, %v3149_v12  ;;  %v2658_v55 = vadd.f32 %v6504_v62, %v6092_v44 }
 0x56e   : > { %v2985_v7 = vadd.f32 %v2984_v6, %v2872_v9  ;;  %v3260_v10 = vadd.f32 %v3259_v45, %v3147_v49  ;;  %v7763_v6 = vld [vmem:[#allocation13_spill] sm:$0xff] }
 0x56f   : > { %v3063_v49 = vmax.f32 %v7763_v6, 0.0  ;;  %v2771_v56 = vadd.f32 %v6513_v4, %v2658_v55 }
 0x570   : > { %v3056_v13 = vmax.f32 %v2985_v7, 0.0  ;;  %v3344_v8 = vmax.f32 %v3260_v10, -20.0  ;;  %3199 = vmatmul.f32.gmra.mxu2 %v3057_v32 }
 0x572   : > { %v3376_v3 = vmin.f32 %v3344_v8, 2.0  ;;  %3309 = vmatmul.f32.gmra.mxu3 %v3056_v13 }
 0x573   : > { %v2874_v21 = vpop.f32.mrf.mxu0  ;;  %v2987_v31 = vpop.f32.mrf.mxu1 }
 0x574   : > { %v3408_v60 = vsel %vm6554_vm3, %v3376_v3, %v3260_v10  ;;  %v2875_v38 = vadd.f32 %v2874_v21, %v2762_v47  ;;  %v3152_v5 = vpop.f32.mrf.mxu2  ;;  %v7764_v3 = vld [vmem:[#allocation18_spill] sm:$0xff] }
 0x575   : > { %3440 = vst [vmem:[%s6562_s24 + $0x40] sm:$0xff] %v3408_v60  ;;  %v3262_v63 = vpop.f32.mrf.mxu3  ;;  %v3153_v1 = vadd.f32 %v6544_v22, %v3152_v5  ;;  %v3065_v21 = vmax.f32 %v7764_v3, 0.0 }
 0x576   : > { %v2988_v20 = vadd.f32 %v2987_v31, %v2875_v38  ;;  %v3263_v18 = vadd.f32 %v3262_v63, %v3150_v54  ;;  %v2661_v31 = vadd.f32 %v6516_v61, %v6092_v44 }
 0x578   : > { %v3058_v14 = vmax.f32 %v2988_v20, 0.0  ;;  %v3345_v16 = vmax.f32 %v3263_v18, -20.0  ;;  %3202 = vmatmul.f32.gmra.mxu2 %v3059_v39  ;;  %v2774_v5 = vadd.f32 %v6526_v35, %v2661_v31 }
 0x57a   : > { %v3377_v46 = vmin.f32 %v3345_v16, 2.0  ;;  %3312 = vmatmul.f32.gmra.mxu3 %v3058_v14  ;;  %v7765_v16 = vld [vmem:[#allocation43_spill] sm:$0xff] }
 0x57b   : > { %v2877_v26 = vpop.f32.mrf.mxu0  ;;  %v2990_v50 = vpop.f32.mrf.mxu1 }
 0x57c   : > { %v3409_v58 = vsel %vm6554_vm3, %v3377_v46, %v3263_v18  ;;  %v2878_v34 = vadd.f32 %v2877_v26, %v2765_v23  ;;  %v3155_v48 = vpop.f32.mrf.mxu2  ;;  %v3067_v23 = vmax.f32 %v7765_v16, 0.0  ;;  %v2664_v46 = vadd.f32 %v6530_v37, %v6092_v44 }
 0x57d   : > { %3441 = vst [vmem:[%s6562_s24 + $0x48] sm:$0xff] %v3409_v58  ;;  %v3265_v43 = vpop.f32.mrf.mxu3  ;;  %v3156_v28 = vadd.f32 %v6544_v22, %v3155_v48 }
 0x57e   : > { %v2991_v11 = vadd.f32 %v2990_v50, %v2878_v34  ;;  %v3266_v17 = vadd.f32 %v3265_v43, %v3153_v1  ;;  %v2777_v58 = vadd.f32 %v6536_v15, %v2664_v46 }
 0x580   : > { %v3060_v42 = vmax.f32 %v2991_v11, 0.0  ;;  %v3346_v33 = vmax.f32 %v3266_v17, -20.0  ;;  %3205 = vmatmul.f32.gmra.mxu2 %v3061_v0 }
 0x582   : > { %v3378_v40 = vmin.f32 %v3346_v33, 2.0  ;;  %3315 = vmatmul.f32.gmra.mxu3 %v3060_v42 }
 0x583   : > { %v2880_v19 = vpop.f32.mrf.mxu0  ;;  %v2993_v27 = vpop.f32.mrf.mxu1 }
 0x584   : > { %v3410_v53 = vsel %vm6554_vm3, %v3378_v40, %v3266_v17  ;;  %v2881_v51 = vadd.f32 %v2880_v19, %v2768_v52  ;;  %v3158_v29 = vpop.f32.mrf.mxu2 }
 0x585   : > { %3442 = vst [vmem:[%s6562_s24 + $0x50] sm:$0xff] %v3410_v53  ;;  %v3268_v30 = vpop.f32.mrf.mxu3  ;;  %v3159_v10 = vadd.f32 %v6544_v22, %v3158_v29 }
 0x586   : > { %v2994_v36 = vadd.f32 %v2993_v27, %v2881_v51  ;;  %v3269_v9 = vadd.f32 %v3268_v30, %v3156_v28 }
 0x588   : > { %v3062_v12 = vmax.f32 %v2994_v36, 0.0  ;;  %v3347_v45 = vmax.f32 %v3269_v9, -20.0  ;;  %3208 = vmatmul.f32.gmra.mxu2 %v3063_v49 }
 0x58a   : > { %v3379_v32 = vmin.f32 %v3347_v45, 2.0  ;;  %3318 = vmatmul.f32.gmra.mxu3 %v3062_v12 }
 0x58b   : > { %v2883_v24 = vpop.f32.mrf.mxu0  ;;  %v2996_v7 = vpop.f32.mrf.mxu1 }
 0x58c   : > { %v3411_v13 = vsel %vm6554_vm3, %v3379_v32, %v3269_v9  ;;  %v2884_v8 = vadd.f32 %v2883_v24, %v2771_v56  ;;  %v3161_v47 = vpop.f32.mrf.mxu2 }
 0x58d   : > { %3443 = vst [vmem:[%s6562_s24 + $0x58] sm:$0xff] %v3411_v13  ;;  %v3271_v62 = vpop.f32.mrf.mxu3  ;;  %v3162_v57 = vadd.f32 %v6544_v22, %v3161_v47 }
 0x58e   : > { %v2997_v4 = vadd.f32 %v2996_v7, %v2884_v8  ;;  %v3272_v54 = vadd.f32 %v3271_v62, %v3159_v10 }
 0x590   : > { %v3064_v60 = vmax.f32 %v2997_v4, 0.0  ;;  %v3348_v38 = vmax.f32 %v3272_v54, -20.0  ;;  %3211 = vmatmul.f32.gmra.mxu2 %v3065_v21 }
 0x592   : > { %v3380_v63 = vmin.f32 %v3348_v38, 2.0  ;;  %3321 = vmatmul.f32.gmra.mxu3 %v3064_v60 }
 0x593   : > { %v2886_v41 = vpop.f32.mrf.mxu0  ;;  %v2999_v39 = vpop.f32.mrf.mxu1 }
 0x594   : > { %v3412_v20 = vsel %vm6554_vm3, %v3380_v63, %v3272_v54  ;;  %v2887_v18 = vadd.f32 %v2886_v41, %v2774_v5  ;;  %v3164_v14 = vpop.f32.mrf.mxu2 }
 0x595   : > { %3444 = vst [vmem:[%s6562_s24 + $0x60] sm:$0xff] %v3412_v20  ;;  %v3274_v61 = vpop.f32.mrf.mxu3  ;;  %v3165_v59 = vadd.f32 %v6544_v22, %v3164_v14 }
 0x596   : > { %v3000_v35 = vadd.f32 %v2999_v39, %v2887_v18  ;;  %v3275_v26 = vadd.f32 %v3274_v61, %v3162_v57 }
 0x598   : > { %v3066_v50 = vmax.f32 %v3000_v35, 0.0  ;;  %v3349_v1 = vmax.f32 %v3275_v26, -20.0  ;;  %3214 = vmatmul.f32.gmra.mxu2 %v3067_v23 }
 0x59a   : > { %v3381_v34 = vmin.f32 %v3349_v1, 2.0  ;;  %3324 = vmatmul.f32.gmra.mxu3 %v3066_v50 }
 0x59b   : > { %v2889_v48 = vpop.f32.mrf.mxu0  ;;  %v3002_v43 = vpop.f32.mrf.mxu1 }
 0x59c   : > { %v3413_v0 = vsel %vm6554_vm3, %v3381_v34, %v3275_v26  ;;  %v2890_v25 = vadd.f32 %v2889_v48, %v2777_v58  ;;  %v3167_v11 = vpop.f32.mrf.mxu2 }
 0x59d   : > { %3445 = vst [vmem:[%s6562_s24 + $0x68] sm:$0xff] %v3413_v0  ;;  %v3277_v44 = vpop.f32.mrf.mxu3  ;;  %v3168_v40 = vadd.f32 %v6544_v22, %v3167_v11 }
 0x59e   : > { %v3003_v37 = vadd.f32 %v3002_v43, %v2890_v25  ;;  %v3278_v17 = vadd.f32 %v3277_v44, %v3165_v59 }
 0x5a0   : > { %v3068_v42 = vmax.f32 %v3003_v37, 0.0  ;;  %v3350_v33 = vmax.f32 %v3278_v17, -20.0 }
 0x5a2   : > { %v3382_v52 = vmin.f32 %v3350_v33, 2.0  ;;  %3327 = vmatmul.f32.gmra.mxu3 %v3068_v42 }
 0x5a3   : > { %v3122_v15 = vpop.f32.mrf.mxu0  ;;  %v3235_v53 = vpop.f32.mrf.mxu1 }
 0x5a4   : > { %v3414_v19 = vsel %vm6554_vm3, %v3382_v52, %v3278_v17  ;;  %v3123_v27 = vadd.f32 %v6544_v22, %v3122_v15  ;;  %v3170_v28 = vpop.f32.mrf.mxu2 }
 0x5a5   : > { %3446 = vst [vmem:[%s6562_s24 + $0x70] sm:$0xff] %v3414_v19  ;;  %v3280_v51 = vpop.f32.mrf.mxu3  ;;  %v3171_v9 = vadd.f32 %v6544_v22, %v3170_v28 }
 0x5a6   : > { %v3236_v29 = vadd.f32 %v3235_v53, %v3123_v27  ;;  %v3281_v30 = vadd.f32 %v3280_v51, %v3168_v40 }
 0x5a8   : > { %v3336_v6 = vmax.f32 %v3236_v29, -20.0  ;;  %v3351_v49 = vmax.f32 %v3281_v30, -20.0 }
 0x5aa   : > { %v3368_v55 = vmin.f32 %v3336_v6, 2.0  ;;  %v3383_v36 = vmin.f32 %v3351_v49, 2.0 }
 0x5ac   : > { %v3400_v12 = vsel %vm6554_vm3, %v3368_v55, %v3236_v29  ;;  %v3415_v45 = vsel %vm6554_vm3, %v3383_v36, %v3281_v30  ;;  %v3173_v56 = vpop.f32.mrf.mxu2 }
 0x5ad   : > { %3432 = vst [vmem:[%s6562_s24] sm:$0xff] %v3400_v12  ;;  %v3283_v32 = vpop.f32.mrf.mxu3  ;;  %v3174_v13 = vadd.f32 %v6544_v22, %v3173_v56 }
 0x5ae   : > { %3447 = vst [vmem:[%s6562_s24 + $0x78] sm:$0xff] %v3415_v45  ;;  %v3284_v24 = vadd.f32 %v3283_v32, %v3171_v9 }
 0x5b0   : > { %v3352_v7 = vmax.f32 %v3284_v24, -20.0 }
 0x5b2   : > { %v3384_v10 = vmin.f32 %v3352_v7, 2.0 }
 0x5b4   : > { %v3416_v8 = vsel %vm6554_vm3, %v3384_v10, %v3284_v24  ;;  %v3176_v47 = vpop.f32.mrf.mxu2 }
 0x5b5   : > { %3448 = vst [vmem:[%s6562_s24 + $0x80] sm:$0xff] %v3416_v8  ;;  %v3286_v62 = vpop.f32.mrf.mxu3  ;;  %v3177_v4 = vadd.f32 %v6544_v22, %v3176_v47 }
 0x5b6   : > { %v3287_v3 = vadd.f32 %v3286_v62, %v3174_v13 }
 0x5b8   : > { %v3353_v21 = vmax.f32 %v3287_v3, -20.0 }
 0x5ba   : > { %v3385_v31 = vmin.f32 %v3353_v21, 2.0 }
 0x5bc   : > { %v3417_v54 = vsel %vm6554_vm3, %v3385_v31, %v3287_v3  ;;  %v3179_v60 = vpop.f32.mrf.mxu2 }
 0x5bd   : > { %3449 = vst [vmem:[%s6562_s24 + $0x88] sm:$0xff] %v3417_v54  ;;  %v3289_v38 = vpop.f32.mrf.mxu3  ;;  %v3180_v39 = vadd.f32 %v6544_v22, %v3179_v60 }
 0x5be   : > { %v3290_v5 = vadd.f32 %v3289_v38, %v3177_v4 }
 0x5c0   : > { %v3354_v63 = vmax.f32 %v3290_v5, -20.0 }
 0x5c2   : > { %v3386_v41 = vmin.f32 %v3354_v63, 2.0 }
 0x5c4   : > { %v3418_v57 = vsel %vm6554_vm3, %v3386_v41, %v3290_v5  ;;  %v3182_v20 = vpop.f32.mrf.mxu2 }
 0x5c5   : > { %3450 = vst [vmem:[%s6562_s24 + $0x90] sm:$0xff] %v3418_v57  ;;  %v3292_v18 = vpop.f32.mrf.mxu3  ;;  %v3183_v23 = vadd.f32 %v6544_v22, %v3182_v20 }
 0x5c6   : > { %v3293_v14 = vadd.f32 %v3292_v18, %v3180_v39 }
 0x5c8   : > { %v3355_v61 = vmax.f32 %v3293_v14, -20.0 }
 0x5ca   : > { %v3387_v16 = vmin.f32 %v3355_v61, 2.0 }
 0x5cc   : > { %v3419_v46 = vsel %vm6554_vm3, %v3387_v16, %v3293_v14  ;;  %v3185_v35 = vpop.f32.mrf.mxu2 }
 0x5cd   : > { %3451 = vst [vmem:[%s6562_s24 + $0x98] sm:$0xff] %v3419_v46  ;;  %v3295_v26 = vpop.f32.mrf.mxu3  ;;  %v3186_v34 = vadd.f32 %v6544_v22, %v3185_v35 }
 0x5ce   : > { %v3296_v50 = vadd.f32 %v3295_v26, %v3183_v23 }
 0x5d0   : > { %v3356_v1 = vmax.f32 %v3296_v50, -20.0 }
 0x5d2   : > { %v3388_v58 = vmin.f32 %v3356_v1, 2.0 }
 0x5d4   : > { %v3420_v48 = vsel %vm6554_vm3, %v3388_v58, %v3296_v50  ;;  %v3188_v43 = vpop.f32.mrf.mxu2 }
 0x5d5   : > { %3452 = vst [vmem:[%s6562_s24 + $0xa0] sm:$0xff] %v3420_v48  ;;  %v3298_v59 = vpop.f32.mrf.mxu3  ;;  %v3189_v44 = vadd.f32 %v6544_v22, %v3188_v43 }
 0x5d6   : > { %v3299_v0 = vadd.f32 %v3298_v59, %v3186_v34 }
 0x5d8   : > { %v3357_v25 = vmax.f32 %v3299_v0, -20.0 }
 0x5da   : > { %v3389_v11 = vmin.f32 %v3357_v25, 2.0 }
 0x5dc   : > { %v3421_v37 = vsel %vm6554_vm3, %v3389_v11, %v3299_v0  ;;  %v3191_v17 = vpop.f32.mrf.mxu2 }
 0x5dd   : > { %3453 = vst [vmem:[%s6562_s24 + $0xa8] sm:$0xff] %v3421_v37  ;;  %v3301_v42 = vpop.f32.mrf.mxu3  ;;  %v3192_v40 = vadd.f32 %v6544_v22, %v3191_v17 }
 0x5de   : > { %v3302_v33 = vadd.f32 %v3301_v42, %v3189_v44 }
 0x5e0   : > { %v3358_v52 = vmax.f32 %v3302_v33, -20.0 }
 0x5e2   : > { %v3390_v15 = vmin.f32 %v3358_v52, 2.0 }
 0x5e4   : > { %v3422_v19 = vsel %vm6554_vm3, %v3390_v15, %v3302_v33  ;;  %v3194_v27 = vpop.f32.mrf.mxu2 }
 0x5e5   : > { %3454 = vst [vmem:[%s6562_s24 + $0xb0] sm:$0xff] %v3422_v19  ;;  %v3304_v28 = vpop.f32.mrf.mxu3  ;;  %v3195_v30 = vadd.f32 %v6544_v22, %v3194_v27 }
 0x5e6   : > { %v3305_v53 = vadd.f32 %v3304_v28, %v3192_v40 }
 0x5e8   : > { %v3359_v51 = vmax.f32 %v3305_v53, -20.0 }
 0x5ea   : > { %v3391_v29 = vmin.f32 %v3359_v51, 2.0 }
 0x5ec   : > { %v3423_v6 = vsel %vm6554_vm3, %v3391_v29, %v3305_v53  ;;  %v3197_v49 = vpop.f32.mrf.mxu2 }
 0x5ed   : > { %3455 = vst [vmem:[%s6562_s24 + $0xb8] sm:$0xff] %v3423_v6  ;;  %v3307_v55 = vpop.f32.mrf.mxu3  ;;  %v3198_v45 = vadd.f32 %v6544_v22, %v3197_v49 }
 0x5ee   : > { %v3308_v36 = vadd.f32 %v3307_v55, %v3195_v30 }
 0x5f0   : > { %v3360_v9 = vmax.f32 %v3308_v36, -20.0 }
 0x5f2   : > { %v3392_v12 = vmin.f32 %v3360_v9, 2.0 }
 0x5f4   : > { %v3424_v56 = vsel %vm6554_vm3, %v3392_v12, %v3308_v36  ;;  %v3200_v32 = vpop.f32.mrf.mxu2 }
 0x5f5   : > { %3456 = vst [vmem:[%s6562_s24 + $0xc0] sm:$0xff] %v3424_v56  ;;  %v3310_v24 = vpop.f32.mrf.mxu3  ;;  %v3201_v8 = vadd.f32 %v6544_v22, %v3200_v32 }
 0x5f6   : > { %v3311_v7 = vadd.f32 %v3310_v24, %v3198_v45 }
 0x5f8   : > { %v3361_v10 = vmax.f32 %v3311_v7, -20.0 }
 0x5fa   : > { %v3393_v13 = vmin.f32 %v3361_v10, 2.0 }
 0x5fc   : > { %v3425_v47 = vsel %vm6554_vm3, %v3393_v13, %v3311_v7  ;;  %v3203_v62 = vpop.f32.mrf.mxu2 }
 0x5fd   : > { %3457 = vst [vmem:[%s6562_s24 + $0xc8] sm:$0xff] %v3425_v47  ;;  %v3313_v3 = vpop.f32.mrf.mxu3  ;;  %v3204_v54 = vadd.f32 %v6544_v22, %v3203_v62 }
 0x5fe   : > { %v3314_v21 = vadd.f32 %v3313_v3, %v3201_v8 }
 0x600   : > { %v3362_v31 = vmax.f32 %v3314_v21, -20.0 }
 0x602   : > { %v3394_v4 = vmin.f32 %v3362_v31, 2.0 }
 0x604   : > { %v3426_v60 = vsel %vm6554_vm3, %v3394_v4, %v3314_v21  ;;  %v3206_v38 = vpop.f32.mrf.mxu2 }
 0x605   : > { %3458 = vst [vmem:[%s6562_s24 + $0xd0] sm:$0xff] %v3426_v60  ;;  %v3316_v5 = vpop.f32.mrf.mxu3  ;;  %v3207_v57 = vadd.f32 %v6544_v22, %v3206_v38 }
 0x606   : > { %v3317_v63 = vadd.f32 %v3316_v5, %v3204_v54 }
 0x608   : > { %v3363_v41 = vmax.f32 %v3317_v63, -20.0 }
 0x60a   : > { %v3395_v39 = vmin.f32 %v3363_v41, 2.0 }
 0x60c   : > { %v3427_v20 = vsel %vm6554_vm3, %v3395_v39, %v3317_v63  ;;  %v3209_v18 = vpop.f32.mrf.mxu2 }
 0x60d   : > { %3459 = vst [vmem:[%s6562_s24 + $0xd8] sm:$0xff] %v3427_v20  ;;  %v3319_v14 = vpop.f32.mrf.mxu3  ;;  %v3210_v46 = vadd.f32 %v6544_v22, %v3209_v18 }
 0x60e   : > { %v3320_v61 = vadd.f32 %v3319_v14, %v3207_v57 }
 0x610   : > { %v3364_v16 = vmax.f32 %v3320_v61, -20.0 }
 0x612   : > { %v3396_v23 = vmin.f32 %v3364_v16, 2.0 }
 0x614   : > { %v3428_v35 = vsel %vm6554_vm3, %v3396_v23, %v3320_v61  ;;  %v3212_v1 = vpop.f32.mrf.mxu2 }
 0x615   : > { %3460 = vst [vmem:[%s6562_s24 + $0xe0] sm:$0xff] %v3428_v35  ;;  %v3322_v26 = vpop.f32.mrf.mxu3  ;;  %v3213_v48 = vadd.f32 %v6544_v22, %v3212_v1 }
 0x616   : > { %v3323_v50 = vadd.f32 %v3322_v26, %v3210_v46 }
 0x618   : > { %v3365_v58 = vmax.f32 %v3323_v50, -20.0 }
 0x61a   : > { %v3397_v34 = vmin.f32 %v3365_v58, 2.0 }
 0x61c   : > { %v3429_v43 = vsel %vm6554_vm3, %v3397_v34, %v3323_v50  ;;  %v3215_v11 = vpop.f32.mrf.mxu2 }
 0x61d   : > { %3461 = vst [vmem:[%s6562_s24 + $0xe8] sm:$0xff] %v3429_v43  ;;  %v3325_v59 = vpop.f32.mrf.mxu3  ;;  %v3216_v37 = vadd.f32 %v6544_v22, %v3215_v11 }
 0x61e   : > { %v3326_v0 = vadd.f32 %v3325_v59, %v3213_v48 }
 0x620   : > { %v3366_v25 = vmax.f32 %v3326_v0, -20.0 }
 0x622   : > { %v3398_v44 = vmin.f32 %v3366_v25, 2.0 }
 0x624   : > { %v3430_v17 = vsel %vm6554_vm3, %v3398_v44, %v3326_v0 }
 0x625   : > { %3462 = vst [vmem:[%s6562_s24 + $0xf0] sm:$0xff] %v3430_v17  ;;  %v3328_v42 = vpop.f32.mrf.mxu3 }
 0x626   : > { %v3329_v33 = vadd.f32 %v3328_v42, %v3216_v37 }
 0x628   : > { %v3367_v52 = vmax.f32 %v3329_v33, -20.0 }
 0x62a   : > { %v3399_v15 = vmin.f32 %v3367_v52, 2.0 }
 0x62c   : > { %v3431_v22 = vsel %vm6554_vm3, %v3399_v15, %v3329_v33 }
 0x62d   : > { %3463 = vst [vmem:[%s6562_s24 + $0xf8] sm:$0xff] %v3431_v22 }
 0x62e   : > { %3833 = shalt.err (!%p3830_p8)
}
 0x62f   : > { %s3884_s22 = smov 128   ;;  %s3885_s24 = smov 8  }
 0x630   : > { %3685 = dma.vmem_to_hbm [thread:$0]  (%p3974_p5), %s3478_s27, 4096, %s3480_s28, %s3465_s13, %s3884_s22, %s3884_s22, %s3885_s24  }
 0x631 PF: > { %p3702_p9 = scmp.ge.s32.totalorder %s3876_s12, 2  ;;  %s3494_s21 = sand.u32 1, %s3864_s30  }
 0x632   : > { %s3495_s26 = scalar_lea.sflag [#allocation4], %s3494_s21 }
 0x633   : > { %p3695_p10 = pnand %p3702_p9, %p3978_p6 }
 0x635   : > { %p3696_p11 = pneg %p3695_p10 }
 0x637   : > { %3859 = dma.done.wait (%p3696_p11), %s3495_s26, 4096  }
 0x638   : > { %3861 = vsyncadd (%p3696_p11), %s3495_s26, 4294963200  ;;  %p21_p12 = scmp.ge.s32.totalorder %s3961_s15, 4   ;;  %s7766_s30 = smov %s3868_s10 }
 0x639   : > { %s7767_s10 = smov %s3872_s11  ;;  %s7768_s11 = smov %s3972_s18 }
 0x63a   : > { %s7769_s12 = smov %s3961_s15  ;;  %23 = sbr.rel (!%p21_p12) target bundleno = 7 (0x7), region = 100 }
 0x63f   :  { %3501 = vsyncpa [#allocation3], 1 }
 0x640   :  { %3503 = vsyncpa [#allocation3 + $0x1], 1 }
 0x641   :  { %3504 = vsyncpa [#allocation6], 1 }
 0x642   :  { %3505 = vsyncpa [#allocation4], 1 }
 0x643   :  { %3507 = vsyncpa [#allocation4 + $0x1], 1 }

</bundles_post_ra>
